<compile_context>
chip_gen: v6e
topology: v6e:2x2x1
jax: 0.10.0
libtpu: 0.0.40
codegen_flags: <defaults>
</compile_context>

<pallas_src>
import jax
import jax.numpy as jnp
from jax import lax
from jax.experimental import pallas as pl
from jax.experimental.pallas import tpu as pltpu

LANE = 128
SUB = 8


def _round_up(x, m):
    return (x + m - 1) // m * m


# ------------------------------- wrapper -------------------------------------
def bottleneck_forward(x, w1, b1, w2, b2, w3, b3, *, tile_h=16):
    """x: (N, H, W, Cin) NHWC f32; params are BN-folded (see make_params)."""
    N, H, W, Cin = x.shape
    P = w1.shape[1]
    Cout = w3.shape[1]
    assert Cout == Cin, "identity shortcut requires Cout == Cin"
    assert W % SUB == 0, "W must be a multiple of 8 (sublane alignment)"

    # Largest divisor of H not exceeding tile_h (bigger tiles amortize per-step
    # overhead and fill the MXU; prefer TH*W a multiple of 256 on v6e/v7x).
    TH = max(1, min(tile_h, H))
    while H % TH:
        TH -= 1
    nt = H // TH

    f32, bf16 = jnp.float32, jnp.bfloat16
    Cp = _round_up(Cin, LANE)        # lane-dense in/out channels
    Pp = _round_up(P, LANE)          # lane-dense mid channels
    W2p = _round_up(W + 2, SUB)      # sublane-aligned padded scratch width

    # ---- pad params to lane-dense bf16 shapes (no-op copies skipped if aligned)
    def pad2(w, r, c):
        w = w.astype(bf16)
        if w.shape == (r, c):
            return w
        return jnp.zeros((r, c), bf16).at[:w.shape[0], :w.shape[1]].set(w)

    def padb(b, c):
        b = b.astype(f32).reshape(1, -1)
        if b.shape[1] == c:
            return b
        return jnp.zeros((1, c), f32).at[:, :b.shape[1]].set(b)

    w1p = pad2(w1, Cp, Pp)
    b1p = padb(b1, Pp)
    if w2.shape == (3, 3, Pp, Pp):
        w2p = w2.astype(bf16)
    else:
        w2p = jnp.zeros((3, 3, Pp, Pp), bf16).at[:, :, :P, :P].set(w2.astype(bf16))
    w2r = w2p.reshape(9 * Pp, Pp)                       # im2col weight (9*Pp, Pp)
    b2p = padb(b2, Pp)
    w3p = pad2(w3, Pp, Cp)
    b3p = padb(b3, Cp)

    # ---- activations: bf16, lane-dense 2-D slab (N, H*W, Cp); NO row-pad copy
    xb = x.astype(bf16)
    if Cin != Cp:
        xb = jnp.zeros((N, H, W, Cp), bf16).at[..., :Cin].set(xb)
    xm = xb.reshape(N, H * W, Cp)

    # ----------------------------- kernel ------------------------------------
    def kernel(xm_ref, xt_ref, xb_ref, w1_ref, b1_ref, w2_ref, b2_ref,
               w3_ref, b3_ref, o_ref, h1p_ref):
        i = pl.program_id(1)
        nti = pl.num_programs(1)

        xmain = xm_ref[0]                                # (TH*W, Cp) bf16

        # conv1 + bn1 + relu on [top-halo; tile; bottom-halo] rows as ONE matmul.
        x_all = jnp.concatenate([xt_ref[0], xmain, xb_ref[0]], axis=0)
        h1 = jnp.maximum(
            jnp.dot(x_all, w1_ref[...], preferred_element_type=f32) + b1_ref[...],
            0.0)                                         # ((TH+2)*W, Pp) f32
        h1 = h1.astype(bf16).reshape(TH + 2, W, Pp)

        # Zero-padded h1 tile in sublane-aligned VMEM scratch, ONE dense store
        # (zero border columns folded into the stored value).
        zl = jnp.zeros((TH + 2, 1, Pp), bf16)
        zr = jnp.zeros((TH + 2, W2p - W - 1, Pp), bf16)
        h1p_ref[...] = jnp.concatenate([zl, h1, zr], axis=1)

        # At the image boundary the conv2 padding rows must be exact zeros.
        zrow = jnp.zeros((1, W2p, Pp), bf16)

        @pl.when(i == 0)
        def _():
            h1p_ref[0:1, :, :] = zrow

        @pl.when(i == nti - 1)
        def _():
            h1p_ref[TH + 1:TH + 2, :, :] = zrow

        # conv2 (3x3, pad=1, stride=1) + bn2 + relu as ONE im2col matmul.
        # kx shift hoisted: 3 column-shifted reads; ky windows along the cheap
        # major axis of those values.
        sh = [h1p_ref[:, kx:kx + W, :] for kx in range(3)]   # each (TH+2, W, Pp)
        cols = [sh[kx][ky:ky + TH] for ky in range(3) for kx in range(3)]
        patches = jnp.concatenate(cols, axis=-1).reshape(TH * W, 9 * Pp)
        h2 = jnp.maximum(
            jnp.dot(patches, w2_ref[...], preferred_element_type=f32) + b2_ref[...],
            0.0)                                         # (TH*W, Pp) f32

        # conv3 (1x1) + bn3, residual add (identity), relu.
        h3 = jnp.dot(h2.astype(bf16), w3_ref[...],
                     preferred_element_type=f32) + b3_ref[...]   # (TH*W, Cp)
        o_ref[0] = jnp.maximum(h3 + xmain.astype(f32), 0.0).astype(o_ref.dtype)

    # ---- VMEM budget & cost estimate -----------------------------------------
    act_in_blk = (TH * W + 2 * W) * Cp * 2               # bf16 x blocks (1 buf)
    act_out_blk = TH * W * Cp * 4                        # f32 out block (1 buf)
    weight_bytes = (Cp * Pp + 9 * Pp * Pp + Pp * Cp) * 2 + (2 * Pp + Cp) * 4
    scratch_bytes = (TH + 2) * W2p * Pp * 2
    temp_bytes = (TH * W * 9 * Pp) * 2 \
        + (TH + 2) * W * (2 * Cp + 6 * Pp) \
        + TH * W * (4 * Pp + 8 * Cp)
    need = 2 * (act_in_blk + act_out_blk + weight_bytes) + scratch_bytes + temp_bytes
    try:
        vmem_cap = int(pltpu.get_tpu_info().vmem_capacity_bytes)
    except Exception:
        vmem_cap = 64 * 1024 * 1024
    vmem_limit = int(min(vmem_cap * 3 // 4, max(2 * need, 32 * 1024 * 1024)))

    flops = 2 * N * H * W * (Cp * Pp + 9 * Pp * Pp + Pp * Cp)
    bytes_accessed = (N * (H + 2 * nt) * W * Cp * 2      # bf16 x (tile + halos)
                      + N * H * W * Cp * 4               # f32 out
                      + weight_bytes)
    cost = pl.CostEstimate(flops=flops, transcendentals=0,
                           bytes_accessed=bytes_accessed)

    out = pl.pallas_call(
        kernel,
        out_shape=jax.ShapeDtypeStruct((N, H * W, Cp), f32),
        grid_spec=pltpu.PrefetchScalarGridSpec(
            num_scalar_prefetch=0,
            grid=(N, nt),
            in_specs=[
                # main rows of the tile, lane-dense 2-D slab
                pl.BlockSpec((1, TH * W, Cp), lambda n, i: (n, i, 0)),
                # halo row above (clamped at the top image boundary)
                pl.BlockSpec((1, W, Cp),
                             lambda n, i: (n, jnp.maximum(i * TH - 1, 0), 0)),
                # halo row below (clamped at the bottom image boundary)
                pl.BlockSpec((1, W, Cp),
                             lambda n, i: (n, jnp.minimum((i + 1) * TH, H - 1), 0)),
                pl.BlockSpec((Cp, Pp), lambda n, i: (0, 0)),
                pl.BlockSpec((1, Pp), lambda n, i: (0, 0)),
                pl.BlockSpec((9 * Pp, Pp), lambda n, i: (0, 0)),
                pl.BlockSpec((1, Pp), lambda n, i: (0, 0)),
                pl.BlockSpec((Pp, Cp), lambda n, i: (0, 0)),
                pl.BlockSpec((1, Cp), lambda n, i: (0, 0)),
            ],
            out_specs=pl.BlockSpec((1, TH * W, Cp), lambda n, i: (n, i, 0)),
            scratch_shapes=[pltpu.VMEM((TH + 2, W2p, Pp), bf16)],
        ),
        compiler_params=pltpu.CompilerParams(
            dimension_semantics=("parallel", "parallel"),
            vmem_limit_bytes=vmem_limit,
        ),
        cost_estimate=cost,
    )(xm, xm, xm, w1p, b1p, w2r, b2p, w3p, b3p)

    return out.reshape(N, H, W, Cp)[..., :Cout]


# -------------------------- parameter construction ---------------------------
def make_params(key, inplanes, planes, eps=1e-5):
    expansion = 4
    outplanes = planes * expansion
    ks = jax.random.split(key, 16)

    def bn(k0, k1, k2, k3, c):
        gamma = jax.random.uniform(k0, (c,), jnp.float32, 0.5, 1.5)
        beta = 0.1 * jax.random.normal(k1, (c,), jnp.float32)
        mean = 0.1 * jax.random.normal(k2, (c,), jnp.float32)
        var = jax.random.uniform(k3, (c,), jnp.float32, 0.5, 1.5)
        scale = gamma / jnp.sqrt(var + eps)
        bias = beta - mean * scale
        return scale, bias

    # conv1: 1x1 (Cin -> P), stored (Cin, P); BN folded into weight/bias
    w1 = 0.1 * jax.random.normal(ks[0], (inplanes, planes), jnp.float32)
    s1, b1 = bn(ks[1], ks[2], ks[3], ks[4], planes)
    w1 = w1 * s1[None, :]
    b1 = b1.reshape(1, planes)

    # conv2: 3x3 (P -> P), stored HWIO (3, 3, P, P)
    w2 = 0.1 * jax.random.normal(ks[5], (3, 3, planes, planes), jnp.float32)
    s2, b2 = bn(ks[6], ks[7], ks[8], ks[9], planes)
    w2 = w2 * s2[None, None, None, :]
    b2 = b2.reshape(1, planes)

    # conv3: 1x1 (P -> 4P), stored (P, 4P)
    w3 = 0.1 * jax.random.normal(ks[10], (planes, outplanes), jnp.float32)
    s3, b3 = bn(ks[11], ks[12], ks[13], ks[14], outplanes)
    w3 = w3 * s3[None, :]
    b3 = b3.reshape(1, outplanes)

    return w1, b1, w2, b2, w3, b3


# ------------------------------ reference ------------------------------------
def reference_forward(x, w1, b1, w2, b2, w3, b3):
    # Mirrors the kernel's MXU operand precision: weights AND the activations
    # fed to each matmul (x, h1, h2) are rounded to bf16; accumulation is f32.
    r = lambda a: a.astype(jnp.bfloat16).astype(jnp.float32)
    xr = r(x)
    h1 = jax.nn.relu(jnp.einsum('nhwc,cp->nhwp', xr, r(w1)) + b1)
    h2 = lax.conv_general_dilated(
        r(h1), r(w2), window_strides=(1, 1), padding='SAME',
        dimension_numbers=('NHWC', 'HWIO', 'NHWC')) + b2
    h2 = jax.nn.relu(h2)
    h3 = jnp.einsum('nhwp,pc->nhwc', r(h2), r(w3)) + b3
    return jax.nn.relu(h3 + xr)


if __name__ == "__main__":
    # Small shapes: inplanes=16, planes=4 so planes*expansion == inplanes and the
    # identity residual is valid (stride=1, downsample=None).
    N, H, W = 2, 16, 16
    inplanes, planes = 16, 4

    key = jax.random.PRNGKey(0)
    kx, kp = jax.random.split(key)
    x = jax.random.normal(kx, (N, H, W, inplanes), jnp.float32)  # NHWC
    params = make_params(kp, inplanes, planes)

    out = bottleneck_forward(x, *params, tile_h=16)
    out = jax.block_until_ready(out)

    ref = reference_forward(x, *params)
    assert out.shape == (N, H, W, planes * 4)
    max_err = float(jnp.max(jnp.abs(out - ref)))
    assert jnp.allclose(out, ref, rtol=2e-2, atol=2e-2), \
        f"mismatch vs reference, max abs err = {max_err}"

    print("KERNEL_OK")
</pallas_src>

<mosaic_0001>
module attributes {stable_mosaic.version = 11 : i64} {
  func.func @kernel(%arg0: i32, %arg1: i32, %arg2: memref<1x256x128xbf16, #tpu.memory_space<vmem>>, %arg3: memref<1x16x128xbf16, #tpu.memory_space<vmem>>, %arg4: memref<1x16x128xbf16, #tpu.memory_space<vmem>>, %arg5: memref<128x128xbf16, #tpu.memory_space<vmem>>, %arg6: memref<1x128xf32, #tpu.memory_space<vmem>>, %arg7: memref<1152x128xbf16, #tpu.memory_space<vmem>>, %arg8: memref<1x128xf32, #tpu.memory_space<vmem>>, %arg9: memref<128x128xbf16, #tpu.memory_space<vmem>>, %arg10: memref<1x128xf32, #tpu.memory_space<vmem>>, %arg11: memref<1x256x128xf32, #tpu.memory_space<vmem>>, %arg12: memref<18x24x128xbf16, #tpu.memory_space<vmem>>) attributes {dimension_semantics = [#tpu.dimension_semantics<parallel>, #tpu.dimension_semantics<parallel>], iteration_bounds = array<i64: 2, 1>, scalar_prefetch = 0 : i64, scratch_operands = 1 : i64, tpu.core_type = #tpu.core_type<tc>, window_params = [{transform_indices = @transform_0, window_bounds = array<i64: 1, 256, 128>}, {transform_indices = @transform_1, window_bounds = array<i64: 1, 16, 128>}, {transform_indices = @transform_2, window_bounds = array<i64: 1, 16, 128>}, {pipeline_mode = #tpu.pipeline_mode<synchronous>, transform_indices = @transform_3, window_bounds = array<i64: 128, 128>}, {pipeline_mode = #tpu.pipeline_mode<synchronous>, transform_indices = @transform_4, window_bounds = array<i64: 1, 128>}, {pipeline_mode = #tpu.pipeline_mode<synchronous>, transform_indices = @transform_5, window_bounds = array<i64: 1152, 128>}, {pipeline_mode = #tpu.pipeline_mode<synchronous>, transform_indices = @transform_6, window_bounds = array<i64: 1, 128>}, {pipeline_mode = #tpu.pipeline_mode<synchronous>, transform_indices = @transform_7, window_bounds = array<i64: 128, 128>}, {pipeline_mode = #tpu.pipeline_mode<synchronous>, transform_indices = @transform_8, window_bounds = array<i64: 1, 128>}, {transform_indices = @transform_9, window_bounds = array<i64: 1, 256, 128>}]} {
    %c0 = arith.constant 0 : index
    %c0_0 = arith.constant 0 : index
    %c0_1 = arith.constant 0 : index
    %0 = vector.load %arg2[%c0, %c0_0, %c0_1] : memref<1x256x128xbf16, #tpu.memory_space<vmem>>, vector<1x256x128xbf16>
    %1 = vector.shape_cast %0 : vector<1x256x128xbf16> to vector<256x128xbf16>
    %c0_2 = arith.constant 0 : index
    %c0_3 = arith.constant 0 : index
    %c0_4 = arith.constant 0 : index
    %2 = vector.load %arg3[%c0_2, %c0_3, %c0_4] : memref<1x16x128xbf16, #tpu.memory_space<vmem>>, vector<1x16x128xbf16>
    %3 = vector.shape_cast %2 : vector<1x16x128xbf16> to vector<16x128xbf16>
    %c0_5 = arith.constant 0 : index
    %c0_6 = arith.constant 0 : index
    %c0_7 = arith.constant 0 : index
    %4 = vector.load %arg4[%c0_5, %c0_6, %c0_7] : memref<1x16x128xbf16, #tpu.memory_space<vmem>>, vector<1x16x128xbf16>
    %5 = vector.shape_cast %4 : vector<1x16x128xbf16> to vector<16x128xbf16>
    %6 = tpu.concatenate %3, %1, %5 in 0 : vector<16x128xbf16>, vector<256x128xbf16>, vector<16x128xbf16> -> vector<288x128xbf16>
    %c0_8 = arith.constant 0 : index
    %c0_9 = arith.constant 0 : index
    %7 = vector.load %arg5[%c0_8, %c0_9] : memref<128x128xbf16, #tpu.memory_space<vmem>>, vector<128x128xbf16>
    %cst = arith.constant dense<0.000000e+00> : vector<288x128xf32>
    %8 = tpu.matmul %6, %7, %cst {dimension_numbers = #tpu.dot_dimension_numbers<[1], [0], [0], [1], [0, 0, 1, 1], [], []>} : vector<288x128xbf16>, vector<128x128xbf16>, vector<288x128xf32> -> vector<288x128xf32>
    %c0_10 = arith.constant 0 : index
    %c0_11 = arith.constant 0 : index
    %9 = vector.load %arg6[%c0_10, %c0_11] : memref<1x128xf32, #tpu.memory_space<vmem>>, vector<1x128xf32>
    %10 = vector.broadcast %9 : vector<1x128xf32> to vector<288x128xf32>
    %11 = arith.addf %8, %10 : vector<288x128xf32>
    %cst_12 = arith.constant 0.000000e+00 : f32
    %12 = vector.broadcast %cst_12 : f32 to vector<288x128xf32>
    %13 = arith.maximumf %11, %12 : vector<288x128xf32>
    %14 = arith.truncf %13 : vector<288x128xf32> to vector<288x128xbf16>
    %15 = vector.shape_cast %14 : vector<288x128xbf16> to vector<18x16x128xbf16>
    %cst_13 = arith.constant 0.000000e+00 : bf16
    %16 = vector.broadcast %cst_13 : bf16 to vector<18x1x128xbf16>
    %cst_14 = arith.constant 0.000000e+00 : bf16
    %17 = vector.broadcast %cst_14 : bf16 to vector<18x7x128xbf16>
    %18 = tpu.concatenate %16, %15, %17 in 1 : vector<18x1x128xbf16>, vector<18x16x128xbf16>, vector<18x7x128xbf16> -> vector<18x24x128xbf16>
    %c0_15 = arith.constant 0 : index
    %c0_16 = arith.constant 0 : index
    %c0_17 = arith.constant 0 : index
    %19 = vector.load %arg12[%c0_15, %c0_16, %c0_17] : memref<18x24x128xbf16, #tpu.memory_space<vmem>>, vector<18x24x128xbf16>
    tpu.vector_store %arg12[%c0_15, %c0_16, %c0_17], %18 {strides = array<i32>} : memref<18x24x128xbf16, #tpu.memory_space<vmem>>, vector<18x24x128xbf16>,
    %cst_18 = arith.constant 0.000000e+00 : bf16
    %20 = vector.broadcast %cst_18 : bf16 to vector<1x24x128xbf16>
    %c0_i32 = arith.constant 0 : i32
    %21 = arith.cmpi eq, %arg1, %c0_i32 : i32
    %22 = arith.extui %21 : i1 to i32
    %c0_i32_19 = arith.constant 0 : i32
    %23 = arith.cmpi ne, %22, %c0_i32_19 : i32
    scf.if %23 {
      %c0_44 = arith.constant 0 : index
      %c0_45 = arith.constant 0 : index
      %c0_46 = arith.constant 0 : index
      %61 = vector.load %arg12[%c0_44, %c0_45, %c0_46] : memref<18x24x128xbf16, #tpu.memory_space<vmem>>, vector<1x24x128xbf16>
      tpu.vector_store %arg12[%c0_44, %c0_45, %c0_46], %20 {strides = array<i32>} : memref<18x24x128xbf16, #tpu.memory_space<vmem>>, vector<1x24x128xbf16>,
    } else {
    }
    %c0_i32_20 = arith.constant 0 : i32
    %24 = arith.cmpi eq, %arg1, %c0_i32_20 : i32
    %25 = arith.extui %24 : i1 to i32
    %c0_i32_21 = arith.constant 0 : i32
    %26 = arith.cmpi ne, %25, %c0_i32_21 : i32
    scf.if %26 {
      %c17 = arith.constant 17 : index
      %c0_44 = arith.constant 0 : index
      %c0_45 = arith.constant 0 : index
      %61 = vector.load %arg12[%c17, %c0_44, %c0_45] : memref<18x24x128xbf16, #tpu.memory_space<vmem>>, vector<1x24x128xbf16>
      tpu.vector_store %arg12[%c17, %c0_44, %c0_45], %20 {strides = array<i32>} : memref<18x24x128xbf16, #tpu.memory_space<vmem>>, vector<1x24x128xbf16>,
    } else {
    }
    %c0_22 = arith.constant 0 : index
    %c0_23 = arith.constant 0 : index
    %c0_24 = arith.constant 0 : index
    %27 = vector.load %arg12[%c0_22, %c0_23, %c0_24] : memref<18x24x128xbf16, #tpu.memory_space<vmem>>, vector<18x16x128xbf16>
    %c0_25 = arith.constant 0 : index
    %c1 = arith.constant 1 : index
    %c0_26 = arith.constant 0 : index
    %28 = vector.load %arg12[%c0_25, %c1, %c0_26] : memref<18x24x128xbf16, #tpu.memory_space<vmem>>, vector<18x16x128xbf16>
    %c0_27 = arith.constant 0 : index
    %c2 = arith.constant 2 : index
    %c0_28 = arith.constant 0 : index
    %29 = vector.load %arg12[%c0_27, %c2, %c0_28] : memref<18x24x128xbf16, #tpu.memory_space<vmem>>, vector<18x16x128xbf16>
    %30 = vector.extract_strided_slice %27 {offsets = [0, 0, 0], sizes = [16, 16, 128], strides = [1, 1, 1]} : vector<18x16x128xbf16> to vector<16x16x128xbf16>
    %31 = vector.extract_strided_slice %28 {offsets = [0, 0, 0], sizes = [16, 16, 128], strides = [1, 1, 1]} : vector<18x16x128xbf16> to vector<16x16x128xbf16>
    %32 = vector.extract_strided_slice %29 {offsets = [0, 0, 0], sizes = [16, 16, 128], strides = [1, 1, 1]} : vector<18x16x128xbf16> to vector<16x16x128xbf16>
    %33 = vector.extract_strided_slice %27 {offsets = [1, 0, 0], sizes = [16, 16, 128], strides = [1, 1, 1]} : vector<18x16x128xbf16> to vector<16x16x128xbf16>
    %34 = vector.extract_strided_slice %28 {offsets = [1, 0, 0], sizes = [16, 16, 128], strides = [1, 1, 1]} : vector<18x16x128xbf16> to vector<16x16x128xbf16>
    %35 = vector.extract_strided_slice %29 {offsets = [1, 0, 0], sizes = [16, 16, 128], strides = [1, 1, 1]} : vector<18x16x128xbf16> to vector<16x16x128xbf16>
    %36 = vector.extract_strided_slice %27 {offsets = [2, 0, 0], sizes = [16, 16, 128], strides = [1, 1, 1]} : vector<18x16x128xbf16> to vector<16x16x128xbf16>
    %37 = vector.extract_strided_slice %28 {offsets = [2, 0, 0], sizes = [16, 16, 128], strides = [1, 1, 1]} : vector<18x16x128xbf16> to vector<16x16x128xbf16>
    %38 = vector.extract_strided_slice %29 {offsets = [2, 0, 0], sizes = [16, 16, 128], strides = [1, 1, 1]} : vector<18x16x128xbf16> to vector<16x16x128xbf16>
    %39 = tpu.concatenate %30, %31, %32, %33, %34, %35, %36, %37, %38 in 2 : vector<16x16x128xbf16>, vector<16x16x128xbf16>, vector<16x16x128xbf16>, vector<16x16x128xbf16>, vector<16x16x128xbf16>, vector<16x16x128xbf16>, vector<16x16x128xbf16>, vector<16x16x128xbf16>, vector<16x16x128xbf16> -> vector<16x16x1152xbf16>
    %40 = vector.shape_cast %39 : vector<16x16x1152xbf16> to vector<256x1152xbf16>
    %c0_29 = arith.constant 0 : index
    %c0_30 = arith.constant 0 : index
    %41 = vector.load %arg7[%c0_29, %c0_30] : memref<1152x128xbf16, #tpu.memory_space<vmem>>, vector<1152x128xbf16>
    %cst_31 = arith.constant dense<0.000000e+00> : vector<256x128xf32>
    %42 = tpu.matmul %40, %41, %cst_31 {dimension_numbers = #tpu.dot_dimension_numbers<[1], [0], [0], [1], [0, 0, 1, 1], [], []>} : vector<256x1152xbf16>, vector<1152x128xbf16>, vector<256x128xf32> -> vector<256x128xf32>
    %c0_32 = arith.constant 0 : index
    %c0_33 = arith.constant 0 : index
    %43 = vector.load %arg8[%c0_32, %c0_33] : memref<1x128xf32, #tpu.memory_space<vmem>>, vector<1x128xf32>
    %44 = vector.broadcast %43 : vector<1x128xf32> to vector<256x128xf32>
    %45 = arith.addf %42, %44 : vector<256x128xf32>
    %cst_34 = arith.constant 0.000000e+00 : f32
    %46 = vector.broadcast %cst_34 : f32 to vector<256x128xf32>
    %47 = arith.maximumf %45, %46 : vector<256x128xf32>
    %48 = arith.truncf %47 : vector<256x128xf32> to vector<256x128xbf16>
    %c0_35 = arith.constant 0 : index
    %c0_36 = arith.constant 0 : index
    %49 = vector.load %arg9[%c0_35, %c0_36] : memref<128x128xbf16, #tpu.memory_space<vmem>>, vector<128x128xbf16>
    %cst_37 = arith.constant dense<0.000000e+00> : vector<256x128xf32>
    %50 = tpu.matmul %48, %49, %cst_37 {dimension_numbers = #tpu.dot_dimension_numbers<[1], [0], [0], [1], [0, 0, 1, 1], [], []>} : vector<256x128xbf16>, vector<128x128xbf16>, vector<256x128xf32> -> vector<256x128xf32>
    %c0_38 = arith.constant 0 : index
    %c0_39 = arith.constant 0 : index
    %51 = vector.load %arg10[%c0_38, %c0_39] : memref<1x128xf32, #tpu.memory_space<vmem>>, vector<1x128xf32>
    %52 = vector.broadcast %51 : vector<1x128xf32> to vector<256x128xf32>
    %53 = arith.addf %50, %52 : vector<256x128xf32>
    %54 = arith.extf %1 : vector<256x128xbf16> to vector<256x128xf32>
    %55 = arith.addf %53, %54 : vector<256x128xf32>
    %cst_40 = arith.constant 0.000000e+00 : f32
    %56 = vector.broadcast %cst_40 : f32 to vector<256x128xf32>
    %57 = arith.maximumf %55, %56 : vector<256x128xf32>
    %c0_41 = arith.constant 0 : index
    %c0_42 = arith.constant 0 : index
    %c0_43 = arith.constant 0 : index
    %58 = vector.load %arg11[%c0_41, %c0_42, %c0_43] : memref<1x256x128xf32, #tpu.memory_space<vmem>>, vector<1x256x128xf32>
    %59 = vector.shape_cast %58 : vector<1x256x128xf32> to vector<256x128xf32>
    %60 = vector.shape_cast %57 : vector<256x128xf32> to vector<1x256x128xf32>
    tpu.vector_store %arg11[%c0_41, %c0_42, %c0_43], %60 {strides = array<i32>} : memref<1x256x128xf32, #tpu.memory_space<vmem>>, vector<1x256x128xf32>,
    return
  }
  func.func @transform_0(%arg0: i32, %arg1: i32) -> (i32, i32, i32) {
    %c0_i32 = arith.constant 0 : i32
    %c0_i32_0 = arith.constant 0 : i32
    return %arg0, %arg1, %c0_i32 : i32, i32, i32
  }
  func.func @transform_1(%arg0: i32, %arg1: i32) -> (i32, i32, i32) {
    %c16_i32 = arith.constant 16 : i32
    %0 = arith.muli %arg1, %c16_i32 : i32
    %c1_i32 = arith.constant 1 : i32
    %1 = arith.subi %0, %c1_i32 : i32
    %c0_i32 = arith.constant 0 : i32
    %2 = arith.maxsi %1, %c0_i32 : i32
    %c0_i32_0 = arith.constant 0 : i32
    %c0_i32_1 = arith.constant 0 : i32
    return %arg0, %2, %c0_i32_0 : i32, i32, i32
  }
  func.func @transform_2(%arg0: i32, %arg1: i32) -> (i32, i32, i32) {
    %c1_i32 = arith.constant 1 : i32
    %0 = arith.addi %arg1, %c1_i32 : i32
    %c16_i32 = arith.constant 16 : i32
    %1 = arith.muli %0, %c16_i32 : i32
    %c15_i32 = arith.constant 15 : i32
    %2 = arith.minsi %1, %c15_i32 : i32
    %c0_i32 = arith.constant 0 : i32
    %c0_i32_0 = arith.constant 0 : i32
    return %arg0, %2, %c0_i32 : i32, i32, i32
  }
  func.func @transform_3(%arg0: i32, %arg1: i32) -> (i32, i32) {
    %c0_i32 = arith.constant 0 : i32
    %c0_i32_0 = arith.constant 0 : i32
    %c0_i32_1 = arith.constant 0 : i32
    return %c0_i32, %c0_i32_0 : i32, i32
  }
  func.func @transform_4(%arg0: i32, %arg1: i32) -> (i32, i32) {
    %c0_i32 = arith.constant 0 : i32
    %c0_i32_0 = arith.constant 0 : i32
    %c0_i32_1 = arith.constant 0 : i32
    return %c0_i32, %c0_i32_0 : i32, i32
  }
  func.func @transform_5(%arg0: i32, %arg1: i32) -> (i32, i32) {
    %c0_i32 = arith.constant 0 : i32
    %c0_i32_0 = arith.constant 0 : i32
    %c0_i32_1 = arith.constant 0 : i32
    return %c0_i32, %c0_i32_0 : i32, i32
  }
  func.func @transform_6(%arg0: i32, %arg1: i32) -> (i32, i32) {
    %c0_i32 = arith.constant 0 : i32
    %c0_i32_0 = arith.constant 0 : i32
    %c0_i32_1 = arith.constant 0 : i32
    return %c0_i32, %c0_i32_0 : i32, i32
  }
  func.func @transform_7(%arg0: i32, %arg1: i32) -> (i32, i32) {
    %c0_i32 = arith.constant 0 : i32
    %c0_i32_0 = arith.constant 0 : i32
    %c0_i32_1 = arith.constant 0 : i32
    return %c0_i32, %c0_i32_0 : i32, i32
  }
  func.func @transform_8(%arg0: i32, %arg1: i32) -> (i32, i32) {
    %c0_i32 = arith.constant 0 : i32
    %c0_i32_0 = arith.constant 0 : i32
    %c0_i32_1 = arith.constant 0 : i32
    return %c0_i32, %c0_i32_0 : i32, i32
  }
  func.func @transform_9(%arg0: i32, %arg1: i32) -> (i32, i32, i32) {
    %c0_i32 = arith.constant 0 : i32
    %c0_i32_0 = arith.constant 0 : i32
    return %arg0, %arg1, %c0_i32 : i32, i32, i32
  }
}

</mosaic_0001>

<bundles_post_ra>
// kernel: tpu_custom_call.1
= control target key start
LH: loop header
LB: loop body
LE: loop exit
PB: predicated region body
PF: predicated region fallthrough
CT: control target
= control target key end

     0   :  { %s6899_s0 = inlined_call_operand.hbm [shape: bf16[2,256,128], index: 0, kind: input, shape index: {}]   ;;  %s6900_s1 = inlined_call_operand.hbm [shape: bf16[2,256,128], index: 1, kind: input, shape index: {}]   ;;  %s6901_s2 = inlined_call_operand.hbm [shape: bf16[2,256,128], index: 2, kind: input, shape index: {}]   ;;  %s6902_s3 = inlined_call_operand.hbm [shape: bf16[128,128], index: 3, kind: input, shape index: {}]   ;;  %s6903_s4 = inlined_call_operand.vmem [shape: f32[1,128], index: 4, kind: input, shape index: {}]   ;;  %s6904_s5 = inlined_call_operand.hbm [shape: bf16[1152,128], index: 5, kind: input, shape index: {}]   ;;  %s6905_s6 = inlined_call_operand.vmem [shape: f32[1,128], index: 6, kind: input, shape index: {}]   ;;  %s6906_s7 = inlined_call_operand.hbm [shape: bf16[128,128], index: 7, kind: input, shape index: {}]   ;;  %s6907_s8 = inlined_call_operand.vmem [shape: f32[1,128], index: 8, kind: input, shape index: {}]   ;;  %s6908_s9 = inlined_call_operand.hbm [shape: f32[2,256,128], index: 9, kind: output, shape index: {}]  }
   0x1   :  { %6923 = sst [smem:[#allocation28_spill]] %s6900_s1 }
   0x2   :  { %6924 = sst [smem:[#allocation29_spill]] %s6902_s3 }
   0x3   :  { %6925 = sst [smem:[#allocation30_spill]] %s6904_s5 }
   0x4   :  { %6926 = sst [smem:[#allocation31_spill]] %s6906_s7 }
   0x5   :  { %6927 = sst [smem:[#allocation32_spill]] %s6908_s9 }
   0x6   :  { %14 = vsyncpa [#allocation4], 0 }
   0x7   :  { %16 = vsyncpa [#allocation4 + $0x1], 0 }
   0x8   :  { %17 = vsyncpa [#allocation7], 0 }
   0x9   :  { %19 = vsyncpa [#allocation7 + $0x1], 0 }
   0xa   :  { %20 = vsyncpa [#allocation10], 0 }
   0xb   :  { %21 = vsyncpa [#allocation13], 0 }
   0xc   :  { %22 = vsyncpa [#allocation5], 0 }
   0xd   :  { %24 = vsyncpa [#allocation5 + $0x1], 0  ;;  %s5740_s30 = smov 0   ;;  %s5742_s10 = smov 0  }
   0xe   :  { %s5744_s11 = smov 0   ;;  %s5746_s12 = smov 0  }
   0xf   :  { %s5748_s13 = smov 0   ;;  %s5750_s14 = smov 0  }
  0x10 LB: > { %6928 = sst [smem:[#allocation20_spill]] %s5656_s30  ;;  %s5771_s15 = sadd.s32 4294967295, %s5676_s14   ;;  %s5676_s14 = sphi %s5750_s14, %s30_s14   ;;  %s5672_s13 = sphi %s5748_s13, %s6968_s13   ;;  %s5668_s12 = sphi %s5746_s12, %s6967_s12   ;;  %s5664_s11 = sphi %s5744_s11, %s6966_s11   ;;  %s5660_s10 = sphi %s5742_s10, %s6970_s10   ;;  %s5656_s30 = sphi %s5740_s30, %s6969_s30  }
  0x11   : > { %6929 = sst [smem:[#allocation21_spill]] %s5664_s11  ;;  %s4145_s16 = sadd.s32 4294967294, %s5676_s14  }
  0x12   : > { %6930 = sst [smem:[#allocation22_spill]] %s5668_s12  ;;  %p58_p0 = scmp.ne.s32.totalorder %s5664_s11, %s5660_s10 }
  0x13   : > { %6931 = sst [smem:[#allocation23_spill]] %s5672_s13  ;;  %p59_p1 = scmp.eq.s32.totalorder %s5676_s14, 0 }
  0x14   : > { %p64_p2 = scmp.ne.s32.totalorder %s5660_s10, %s5656_s30  ;;  %p6909_p3 = scmp.eq.s32.totalorder %s5771_s15, 0 }
  0x15   : > { %p5780_p4 = por %p59_p1, %p58_p0  ;;  %p288_p5 = scmp.eq.s32.totalorder %s5771_s15, 1 }
  0x16   : > { %p5787_p6 = por %p6909_p3, %p64_p2  ;;  %p294_p7 = scmp.eq.s32.totalorder %s4145_s16, 1 }
  0x17   : > { %p5791_p8 = por %p288_p5, %p58_p0  ;;  %p4146_p9 = scmp.ge.s32.totalorder %s5676_s14, 1 }
  0x18   : > { %p5796_p10 = por %p294_p7, %p64_p2  ;;  %p301_p11 = scmp.lt.s32.totalorder %s5676_s14, 3 }
  0x19   : > { %s6934_s19 = scalar_select %p5791_p8, 1, 0 }
  0x1a   : > { %s6936_s20 = scalar_select %p5796_p10, 1, 0 }
  0x1b   : > { %6935 = sst [smem:[#allocation24_spill]] %s6934_s19  ;;  %p5801_p12 = pnand %p4146_p9, %p301_p11 }
  0x1c   : > { %6937 = sst [smem:[#allocation25_spill]] %s6936_s20  ;;  %s5678_s22 = smov [#allocation9]  }
  0x1d   : > { %s313_s23 = sshll.u32 %s5678_s22, 4  ;;  %p5120_p13 = pneg %p5801_p12  ;;  %s314_s23 = int_to_ptr.vmem [resolvable:$true] %s313_s23 }
  0x1e   : > { %s42_s25 = sadd.s32 1, %s5672_s13  ;;  %s51_s26 = sadd.s32 1, %s5664_s11 }
  0x1f   : > { %p5810_p1 = pnand %p5120_p13, %p6909_p3  ;;  %p5816_p2 = scmp.ge.s32.totalorder %s42_s25, 2 }
  0x20   : > { %s5433_s28 = scalar_lea.vmem %s314_s23, 1024  ;;  %p5441_p13 = scmp.lt.s32.totalorder %s314_s23, %s314_s23 }
  0x21   : > { %p5424_p5 = pneg %p5810_p1  ;;  %p5434_p7 = scmp.ne.s32.totalorder %s314_s23, %s5433_s28 }
  0x22   : > { %p5442_p0 = scmp.lt.s32.totalorder %s5433_s28, %s5433_s28 }
  0x23   : > { %p5436_p9 = pnand %p5434_p7, %p5424_p5 }
  0x24   : > { %p5443_p3 = por %p5442_p0, %p5441_p13 }
  0x25   : > { %p5437_p11 = pneg %p5436_p9 }
  0x27   : > { %p5444_p10 = pnand %p5443_p3, %p5437_p11 }
  0x29   : > { %5447 = shalt.err (!%p5444_p10)
}
  0x2a   : > { %s6915_s29 = smov 64   ;;  %s6917_s16 = smov 4  }
  0x2b   : > { %s6941_s3 = sld [smem:[#allocation29_spill]]  ;;  %s6972_s25 = smov (%p5816_p2, %s42_s25), 0 }
  0x2c   : > { %6942 = sst [smem:[#allocation26_spill]] %s6972_s25  ;;  %p5147_p3 = scmp.lt.s32.totalorder %s5676_s14, 2 }
  0x2d   : > { %s5839_s20 = sand.u32 1, %s5664_s11   ;;  %s46_s30 = ssub.s32 %s5672_s13, %s6972_s25 }
  0x2e   : > { %s5844_s9 = sshll.u32 %s5672_s13, 11  ;;  %p49_p10 = scmp.eq.s32.totalorder %s46_s30, 0 }
  0x2f   : > { %p5848_p0 = pnand %p5147_p3, %p5780_p4  ;;  %s4154_s27 = sshll.u32 %s5839_s20, 3 }
  0x30   : > { %s5855_s22 = scalar_select %p49_p10, %s5664_s11, %s51_s26  }
  0x31   : > { %5123 = dma.hbm_to_vmem [thread:$0]  (!%p5810_p1), %s6941_s3, 1024, %s314_s23, [#allocation10], %s6915_s29, %s6915_s29, %s6917_s16  }
  0x32   : > { %s385_s23 = sand.u32 1, %s5676_s14   ;;  %6944 = sst [smem:[#allocation27_spill]] %s5855_s22 }
  0x33   : > { %s6945_s1 = sld [smem:[#allocation28_spill]]  ;;  %s389_s3 = scalar_lea.vmem [#allocation6], %s4154_s27 }
  0x34   : > { %s402_s25 = sshll.u32 %s389_s3, 4  ;;  %s416_s13 = scalar_lea.vmem [#allocation8], %s4154_s27  ;;  %s403_s25 = int_to_ptr.vmem [resolvable:$true] %s402_s25 }
  0x35   : > { %s429_s30 = sshll.u32 %s416_s13, 4  ;;  %s5861_s17 = scalar_lea.sflag [#allocation7], %s385_s23  ;;  %s5874_s30 = int_to_ptr.vmem [resolvable:$true] %s429_s30 }
  0x36   : > { %p6921_p4 = pneg %p5848_p0  ;;  %s5461_s12 = scalar_lea.vmem %s403_s25, 128 }
  0x37   : > { %p5462_p2 = scmp.ne.s32.totalorder %s403_s25, %s5461_s12  ;;  %s5681_s26 = smov [#allocation6]  }
  0x38   : > { %s5466_s22 = sshll.u32 %s5681_s26, 4  ;;  %s5467_s22 = int_to_ptr.vmem [resolvable:$false] %s5466_s22 }
  0x39   : > { %s401_s16 = scalar_lea.hbm %s6945_s1, %s5844_s9  ;;  %p5464_p7 = pnand %p5462_p2, %p6921_p4 }
  0x3a   : > { %s5468_s29 = scalar_lea.vmem %s5467_s22, 256  ;;  %p5469_p11 = scmp.lt.s32.totalorder %s403_s25, %s5467_s22 }
  0x3b   : > { %p5465_p9 = pneg %p5464_p7  ;;  %p5470_p13 = scmp.lt.s32.totalorder %s5468_s29, %s5461_s12 }
  0x3d   : > { %p5471_p3 = por %p5470_p13, %p5469_p11 }
  0x3f   : > { %p5472_p10 = pnand %p5471_p3, %p5465_p9 }
  0x41   : > { %5475 = shalt.err (!%p5472_p10)
}
  0x42   : > { %s6946_s3 = smov 4   ;;  %s6947_s13 = smov 64  }
  0x43   : > { %5136 = dma.hbm_to_vmem [thread:$0]  (!%p5848_p0), %s401_s16, 128, %s403_s25, %s5861_s17, %s6947_s13, %s6947_s13, %s6946_s3  }
  0x44   : > { %s5682_s23 = smov [#allocation11]   ;;  %s5683_s28 = smov [#allocation12]  }
  0x45   : > { %s329_s27 = sshll.u32 %s5682_s23, 4  ;;  %s345_s26 = sshll.u32 %s5683_s28, 4  ;;  %s330_s27 = int_to_ptr.vmem [resolvable:$true] %s329_s27  ;;  %s346_s26 = int_to_ptr.vmem [resolvable:$true] %s345_s26 }
  0x46   : > { %s5487_s22 = scalar_lea.vmem %s330_s27, 9216  ;;  %p5495_p11 = scmp.lt.s32.totalorder %s330_s27, %s330_s27 }
  0x47   : > { %p5488_p2 = scmp.ne.s32.totalorder %s330_s27, %s5487_s22  ;;  %p5496_p13 = scmp.lt.s32.totalorder %s5487_s22, %s5487_s22 }
  0x49   : > { %p5490_p7 = pnand %p5488_p2, %p5424_p5  ;;  %p5497_p3 = por %p5496_p13, %p5495_p11 }
  0x4b   : > { %p5491_p9 = pneg %p5490_p7 }
  0x4d   : > { %p5498_p10 = pnand %p5497_p3, %p5491_p9 }
  0x4f   : > { %5501 = shalt.err (!%p5498_p10)
}
  0x50   : > { %s6948_s5 = sld [smem:[#allocation30_spill]]  ;;  %s5513_s16 = scalar_lea.vmem %s346_s26, 1024 }
  0x51   : > { %p5514_p4 = scmp.ne.s32.totalorder %s346_s26, %s5513_s16  ;;  %p5521_p11 = scmp.lt.s32.totalorder %s346_s26, %s346_s26 }
  0x52   : > { %p5522_p9 = scmp.lt.s32.totalorder %s5513_s16, %s5513_s16 }
  0x53   : > { %p5516_p2 = pnand %p5514_p4, %p5424_p5 }
  0x54   : > { %p5523_p13 = por %p5522_p9, %p5521_p11 }
  0x55   : > { %p5517_p7 = pneg %p5516_p2 }
  0x56   : > { %5126 = dma.hbm_to_vmem [thread:$0]  (!%p5810_p1), %s6948_s5, 9216, %s330_s27, [#allocation10], %s6947_s13, %s6947_s13, %s6946_s3  }
  0x57   : > { %p5524_p3 = pnand %p5523_p13, %p5517_p7 }
  0x59   : > { %5527 = shalt.err (!%p5524_p3)
}
  0x5a   : > { %s6949_s7 = sld [smem:[#allocation31_spill]]  ;;  %s4151_s27 = sshll.u32 %s5839_s20, 7 }
  0x5b   : > { %s374_s12 = scalar_lea.hbm %s6899_s0, %s5844_s9  ;;  %s4411_s25 = sadd.s32 1920, %s5844_s9 }
  0x5c   : > { %s366_s16 = scalar_lea.vmem [#allocation3], %s4151_s27  ;;  %s5907_s11 = scalar_lea.hbm %s6901_s2, %s4411_s25 }
  0x5d   : > { %s375_s24 = sshll.u32 %s366_s16, 4  ;;  %s363_s29 = scalar_lea.sflag [#allocation4], %s5839_s20  ;;  %s376_s24 = int_to_ptr.vmem [resolvable:$true] %s375_s24 }
  0x5e   : > { %s5541_s23 = scalar_lea.vmem %s376_s24, 2048  ;;  %p6950_p4 = pneg %p5848_p0 }
  0x5f   : > { %p5542_p5 = scmp.ne.s32.totalorder %s376_s24, %s5541_s23 }
  0x60   : > { %5129 = dma.hbm_to_vmem [thread:$0]  (!%p5810_p1), %s6949_s7, 1024, %s346_s26, [#allocation13], %s6947_s13, %s6947_s13, %s6946_s3  }
  0x61   : > { %p5544_p1 = pnand %p5542_p5, %p6950_p4  ;;  %s5684_s26 = smov [#allocation3]  }
  0x62   : > { %s5546_s7 = sshll.u32 %s5684_s26, 4  ;;  %s5547_s7 = int_to_ptr.vmem [resolvable:$false] %s5546_s7 }
  0x63   : > { %p5545_p10 = pneg %p5544_p1  ;;  %s5548_s28 = scalar_lea.vmem %s5547_s7, 4096 }
  0x64   : > { %p5549_p2 = scmp.lt.s32.totalorder %s376_s24, %s5547_s7  ;;  %p5550_p7 = scmp.lt.s32.totalorder %s5548_s28, %s5541_s23 }
  0x66   : > { %p5551_p11 = por %p5550_p7, %p5549_p2 }
  0x68   : > { %p5552_p9 = pnand %p5551_p11, %p5545_p10 }
  0x6a   : > { %5555 = shalt.err (!%p5552_p9)
}
  0x6b   : > { %5133 = dma.hbm_to_vmem [thread:$0]  (!%p5848_p0), %s374_s12, 2048, %s376_s24, %s363_s29, %s6947_s13, %s6947_s13, %s6946_s3  }
  0x6c   : > { %s5569_s1 = scalar_lea.vmem %s5874_s30, 128  ;;  %p6951_p3 = pmov %p6950_p4 }
  0x6d   : > { %p5570_p13 = scmp.ne.s32.totalorder %s5874_s30, %s5569_s1  ;;  %s5685_s5 = smov [#allocation8]  }
  0x6e   : > { %s5574_s7 = sshll.u32 %s5685_s5, 4  ;;  %s5575_s7 = int_to_ptr.vmem [resolvable:$false] %s5574_s7 }
  0x6f   : > { %p5572_p5 = pnand %p5570_p13, %p6951_p3  ;;  %s5576_s9 = scalar_lea.vmem %s5575_s7, 256 }
  0x70   : > { %p5577_p1 = scmp.lt.s32.totalorder %s5874_s30, %s5575_s7  ;;  %p5578_p10 = scmp.lt.s32.totalorder %s5576_s9, %s5569_s1 }
  0x71   : > { %p5573_p4 = pneg %p5572_p5 }
  0x72   : > { %p5579_p2 = por %p5578_p10, %p5577_p1 }
  0x74   : > { %p5580_p7 = pnand %p5579_p2, %p5573_p4 }
  0x76   : > { %5583 = shalt.err (!%p5580_p7)
}
  0x77   : > { %5139 = dma.hbm_to_vmem [thread:$0]  (!%p5848_p0), %s5907_s11, 128, %s5874_s30, %s5861_s17, %s6947_s13, %s6947_s13, %s6946_s3  }
  0x78   : > { %441 = sbr.rel (%p5801_p12) target bundleno = 1137 (0x471), region = 56  ;;  %s5935_s20 = sand.u32 (!%p5801_p12), 1, %s5660_s10  }
  0x79   : > { %s4161_s27 = sshll.u32 (!%p5801_p12), %s5935_s20, 7  ;;  %s444_s22 = scalar_lea.sflag (!%p5801_p12), [#allocation4], %s5935_s20 }
  0x7a   : > { %s5939_s12 = scalar_lea.vmem (!%p5801_p12), [#allocation3], %s4161_s27 }
  0x7d   : > { %5635 = dma.done.wait (%p5787_p6), %s444_s22, 2048  }
  0x7e   : > { %5637 = vsyncadd (%p5787_p6), %s444_s22, 4294965248  ;;  %s452_s11 = sand.u32 1, %s5771_s15   ;;  %s4162_s19 = sshll.u32 %s5935_s20, 3 }
  0x7f   : > { %s453_s21 = scalar_lea.sflag [#allocation7], %s452_s11  ;;  %s456_s30 = scalar_lea.vmem [#allocation6], %s4162_s19 }
  0x80   : > { %5639 = dma.done.wait (%p5787_p6), %s453_s21, 256  }
  0x81   : > { %5641 = vsyncadd (%p5787_p6), %s453_s21, 4294967040  ;;  %s5951_s17 = scalar_lea.vmem [#allocation8], %s4162_s19  ;;  %p6952_p12 = scmp.eq.s32.totalorder %s5771_s15, 0 }
  0x83   : > { %5643 = dma.done.wait (%p6952_p12), [#allocation10], 10240   ;;  %p6953_p0 = pmov %p6952_p12 }
  0x85   : > { %5645 = vsyncadd (%p6953_p0), [#allocation10], 4294957056  ;;  %p6954_p11 = pmov %p6953_p0 }
  0x86   : > { %p6955_p9 = pmov %p6953_p0 }
  0x87   : > { %5647 = dma.done.wait (%p6954_p11), [#allocation13], 1024  }
  0x88   : > { %5649 = vsyncadd (%p6955_p9), [#allocation13], 4294966272  ;;  %v5208_v0 = vld [vmem:[#allocation9 + $0x38] sm:$0xff]   ;;  %v5209_v1 = vld [vmem:[#allocation9 + $0x30] sm:$0xff]   ;;  %vm1143_vm0 = vcmask 1040384   ;;  %vm2034_vm3 = vcmask 1046528  }
  0x89   : > { %4936 = vmatprep.subr.bf16.mxu0 %v5208_v0  ;;  %v5210_v2 = vld [vmem:[#allocation9 + $0x28] sm:$0xff]   ;;  %v5211_v3 = vld [vmem:[#allocation9 + $0x20] sm:$0xff]   ;;  %v5212_v5 = vld [vmem:[#allocation9 + $0x18] sm:$0xff]   ;;  %vm1144_vm1 = vsmask.f32 256  ;;  %s4167_s23 = sshll.u32 %s5935_s20, 8 }
  0x8a   : > { %4937 = vmatpush3.bf16.msra.mxu0 %v5208_v0  ;;  %v5216_v4 = vld [vmem:[%s456_s30] sm:$0xff]   ;;  %v5213_v6 = vld [vmem:[#allocation9 + $0x10] sm:$0xff]   ;;  %v5234_v11 = vld [vmem:[#allocation11 + $0xf8] sm:$0xff]   ;;  %vm1777_vm4 = vsmask.f32 7424  ;;  %s6767_s26 = scalar_lea.vmem [#allocation14], %s4167_s23 }
  0x8b   : > { %4938 = vmatprep.subr.bf16.mxu0 %v5209_v1  ;;  %4952 = vmatprep.mubr.bf16.mxu0 %v5216_v4  ;;  %v5214_v7 = vld [vmem:[#allocation9 + $0x8] sm:$0xff]   ;;  %v5215_v8 = vld [vmem:[#allocation9] sm:$0xff]   ;;  %v5235_v12 = vld [vmem:[#allocation11 + $0xb8] sm:$0xff]   ;;  %s6958_s28 = sld [smem:[#allocation22_spill]]  ;;  %s3979_s7 = sshll.u32 %s6767_s26, 4  ;;  %s6849_s7 = int_to_ptr.vmem [resolvable:$true] %s3979_s7 }
  0x8c   : > { %v535_v9 = vld [vmem:[%s5939_s12] sm:$0xff]   ;;  %v537_v10 = vld [vmem:[%s5939_s12 + $0x8] sm:$0xff]   ;;  %v5236_v13 = vld [vmem:[#allocation11 + $0xf0] sm:$0xff]   ;;  %s6960_s22 = sld [smem:[#allocation32_spill]]  ;;  %s3964_s11 = scalar_lea.sflag [#allocation5], %s5935_s20 }
  0x8d   : > { %v539_v14 = vld [vmem:[%s5939_s12 + $0x10] sm:$0xff]   ;;  %v541_v16 = vld [vmem:[%s5939_s12 + $0x18] sm:$0xff]   ;;  %v5238_v17 = vld [vmem:[#allocation11 + $0xe8] sm:$0xff]   ;;  %s5584_s19 = scalar_lea.vmem %s6849_s7, 4096  ;;  %s5687_s21 = smov [#allocation14]  }
  0x8e   : > { %4939 = vmatpush3.bf16.msra.mxu0 %v5209_v1  ;;  %v5237_v15 = vld [vmem:[#allocation11 + $0xb0] sm:$0xff]   ;;  %v5239_v18 = vld [vmem:[#allocation11 + $0xa8] sm:$0xff]   ;;  %v5240_v19 = vld [vmem:[#allocation11 + $0xe0] sm:$0xff]   ;;  %p5585_p6 = scmp.ne.s32.totalorder %s6849_s7, %s5584_s19  ;;  %s5588_s30 = sshll.u32 %s5687_s21, 4  ;;  %s5589_s30 = int_to_ptr.vmem [resolvable:$false] %s5588_s30 }
  0x8f   : > { %4940 = vmatprep.subr.bf16.mxu0 %v5210_v2  ;;  %v543_v20 = vld [vmem:[%s5939_s12 + $0x20] sm:$0xff]   ;;  %v545_v22 = vld [vmem:[%s5939_s12 + $0x28] sm:$0xff]   ;;  %v5242_v23 = vld [vmem:[#allocation11 + $0xd8] sm:$0xff]   ;;  %p5591_p5 = scmp.lt.s32.totalorder %s6849_s7, %s5589_s30 }
  0x90   : > { %v5241_v21 = vld [vmem:[#allocation11 + $0xa0] sm:$0xff]   ;;  %v547_v24 = vld [vmem:[%s5939_s12 + $0x30] sm:$0xff]   ;;  %v549_v25 = vld [vmem:[%s5939_s12 + $0x38] sm:$0xff]   ;;  %p5586_p13 = pnand %p5585_p6, %p5791_p8 }
  0x91   : > { %v551_v26 = vld [vmem:[%s5939_s12 + $0x40] sm:$0xff]   ;;  %v553_v27 = vld [vmem:[%s5939_s12 + $0x48] sm:$0xff]   ;;  %v555_v28 = vld [vmem:[%s5939_s12 + $0x50] sm:$0xff]   ;;  %s4412_s5 = sshll.u32 %s6958_s28, 12 }
  0x92   : > { %4941 = vmatpush3.bf16.msra.mxu0 %v5210_v2  ;;  %v557_v29 = vld [vmem:[%s5939_s12 + $0x58] sm:$0xff]   ;;  %v559_v30 = vld [vmem:[%s5939_s12 + $0x60] sm:$0xff]   ;;  %v561_v31 = vld [vmem:[%s5939_s12 + $0x68] sm:$0xff]   ;;  %p5587_p3 = pneg %p5586_p13 }
  0x93   : > { %4942 = vmatprep.subr.bf16.mxu0 %v5211_v3  ;;  %v563_v32 = vld [vmem:[%s5939_s12 + $0x70] sm:$0xff]   ;;  %v565_v33 = vld [vmem:[%s5939_s12 + $0x78] sm:$0xff]   ;;  %v5250_v40 = vld [vmem:[#allocation11 + $0x68] sm:$0xff]  }
  0x94   : > { %v5233_v34 = vld [vmem:[%s5951_s17] sm:$0xff]   ;;  %v5252_v41 = vld [vmem:[#allocation11 + $0x28] sm:$0xff]   ;;  %v5254_v42 = vld [vmem:[#allocation11 + $0x60] sm:$0xff]   ;;  %s5590_s17 = scalar_lea.vmem %s5589_s30, 8192 }
  0x95   : > { %v5243_v35 = vld [vmem:[#allocation11 + $0x98] sm:$0xff]   ;;  %v5248_v38 = vld [vmem:[#allocation11 + $0x70] sm:$0xff]   ;;  %v5255_v43 = vld [vmem:[#allocation11 + $0x20] sm:$0xff]   ;;  %p5592_p4 = scmp.lt.s32.totalorder %s5590_s17, %s5584_s19 }
  0x96   : > { %4943 = vmatpush3.bf16.msra.mxu0 %v5211_v3  ;;  %v5245_v36 = vld [vmem:[#allocation11 + $0x78] sm:$0xff]   ;;  %v5249_v39 = vld [vmem:[#allocation11 + $0x30] sm:$0xff]   ;;  %v5251_v48 = vld [vmem:[#allocation11 + $0xc8] sm:$0xff]  }
  0x97   : > { %4944 = vmatprep.subr.bf16.mxu0 %v5212_v5  ;;  %v5247_v37 = vld [vmem:[#allocation11 + $0x38] sm:$0xff]   ;;  %4440 = vmatprep.subr.bf16.mxu1 %v5245_v36  ;;  %v5244_v44 = vld [vmem:[#allocation11 + $0xd0] sm:$0xff]   ;;  %v5253_v49 = vld [vmem:[#allocation11 + $0x88] sm:$0xff]   ;;  %p5593_p1 = por %p5592_p4, %p5591_p5 }
  0x98   : > { %4441 = vmatpush3.bf16.msra.mxu1 %v5247_v37  ;;  %v5246_v45 = vld [vmem:[#allocation11 + $0x90] sm:$0xff]   ;;  %v5256_v46 = vld [vmem:[#allocation11 + $0x58] sm:$0xff]   ;;  %v5258_v52 = vld [vmem:[#allocation11 + $0xc0] sm:$0xff]  }
  0x99   : > { %4442 = vmatprep.subr.bf16.mxu1 %v5248_v38  ;;  %v5257_v47 = vld [vmem:[#allocation11 + $0x18] sm:$0xff]   ;;  %v5260_v50 = vld [vmem:[#allocation11 + $0x50] sm:$0xff]   ;;  %v5259_v53 = vld [vmem:[#allocation11 + $0x80] sm:$0xff]   ;;  %p5594_p10 = pnand %p5593_p1, %p5587_p3 }
  0x9a   : > { %4945 = vmatpush3.bf16.msra.mxu0 %v5212_v5  ;;  %v5261_v51 = vld [vmem:[#allocation11 + $0x10] sm:$0xff]   ;;  %v5263_v54 = vld [vmem:[#allocation11 + $0x48] sm:$0xff]   ;;  %v5269_v56 = vld [vmem:[#allocation11 + $0x40] sm:$0xff]  }
  0x9b   : > { %4946 = vmatprep.subr.bf16.mxu0 %v5213_v6  ;;  %v5264_v55 = vld [vmem:[#allocation11 + $0x8] sm:$0xff]   ;;  %v5270_v57 = vld [vmem:[#allocation11] sm:$0xff]   ;;  %v5265_v58 = vld [vmem:[#allocation11 + $0x1f8] sm:$0xff]  }
  0x9c   : > { %4443 = vmatpush3.bf16.msra.mxu1 %v5249_v39  ;;  %v5290_v59 = vld [vmem:[#allocation11 + $0x178] sm:$0xff]   ;;  %v5981_v61 = vld [vmem:[%s6903_s4] ss:$0 sm:$0xff]  ;;  %vm5988_vm2 = vmand %vm1143_vm0, %vm1144_vm1 }
  0x9d   : > { %4444 = vmatprep.subr.bf16.mxu1 %v5250_v40 }
  0x9e   : > { %4947 = vmatpush3.bf16.msra.mxu0 %v5213_v6 }
  0x9f   : > { %4948 = vmatprep.subr.bf16.mxu0 %v5214_v7 }
  0xa0   : > { %4445 = vmatpush3.bf16.msra.mxu1 %v5252_v41 }
  0xa1   : > { %4446 = vmatprep.subr.bf16.mxu1 %v5254_v42 }
  0xa2   : > { %4949 = vmatpush3.bf16.msra.mxu0 %v5214_v7 }
  0xa3   : > { %4950 = vmatprep.subr.bf16.mxu0 %v5215_v8 }
  0xa4   : > { %4447 = vmatpush3.bf16.msra.mxu1 %v5255_v43 }
  0xa5   : > { %4448 = vmatprep.subr.bf16.mxu1 %v5256_v46 }
  0xa6   : > { %4951 = vmatpush3.bf16.msra.mxu0 %v5215_v8 }
  0xa7   : > { %4552 = vmatprep.subr.bf16.mxu0 %v5234_v11 }
  0xa8   : > { %4449 = vmatpush3.bf16.msra.mxu1 %v5257_v47 }
  0xa9   : > { %4953 = vmatmul.mubr.bf16.vlgmr.msra.gmra.mxu0 %v535_v9  ;;  %4450 = vmatprep.subr.bf16.mxu1 %v5260_v50  ;;  %v5686_v50 = vmov 0  }
  0xaa   : > { %4956 = vmatprep.mubr.bf16.mxu0 %v537_v10  ;;  %4553 = vmatpush3.bf16.msra.mxu0 %v5235_v12 }
  0xab   : > { %4554 = vmatprep.subr.bf16.mxu0 %v5236_v13 }
  0xac   : > { %4451 = vmatpush3.bf16.msra.mxu1 %v5261_v51 }
  0xad   : > { %4452 = vmatprep.subr.bf16.mxu1 %v5263_v54 }
  0xae   : > { %4555 = vmatpush3.bf16.msra.mxu0 %v5237_v15 }
  0xaf   : > { %4556 = vmatprep.subr.bf16.mxu0 %v5238_v17 }
  0xb0   : > { %4453 = vmatpush3.bf16.msra.mxu1 %v5264_v55 }
  0xb1   : > { %4957 = vmatmul.mubr.bf16.gmra.mxu0 %v539_v14  ;;  %4454 = vmatprep.subr.bf16.mxu1 %v5269_v56 }
  0xb2   : > { %4960 = vmatprep.mubr.bf16.mxu0 %v541_v16  ;;  %4557 = vmatpush3.bf16.msra.mxu0 %v5239_v18 }
  0xb3   : > { %4558 = vmatprep.subr.bf16.mxu0 %v5240_v19 }
  0xb4   : > { %4455 = vmatpush3.bf16.msra.mxu1 %v5270_v57 }
  0xb5   : > { %4664 = vmatprep.subr.bf16.mxu1 %v5290_v59 }
  0xb6   : > { %4559 = vmatpush3.bf16.msra.mxu0 %v5241_v21 }
  0xb7   : > { %4560 = vmatprep.subr.bf16.mxu0 %v5242_v23 }
  0xb9   : > { %4961 = vmatmul.mubr.bf16.gmra.mxu0 %v543_v20 }
  0xba   : > { %4964 = vmatprep.mubr.bf16.mxu0 %v545_v22  ;;  %4561 = vmatpush3.bf16.msra.mxu0 %v5243_v35 }
  0xbb   : > { %4562 = vmatprep.subr.bf16.mxu0 %v5244_v44 }
  0xbe   : > { %4563 = vmatpush3.bf16.msra.mxu0 %v5246_v45 }
  0xbf   : > { %4564 = vmatprep.subr.bf16.mxu0 %v5251_v48 }
  0xc1   : > { %4965 = vmatmul.mubr.bf16.gmra.mxu0 %v547_v24 }
  0xc2   : > { %4968 = vmatprep.mubr.bf16.mxu0 %v549_v25  ;;  %4565 = vmatpush3.bf16.msra.mxu0 %v5253_v49 }
  0xc3   : > { %4566 = vmatprep.subr.bf16.mxu0 %v5258_v52 }
  0xc6   : > { %4567 = vmatpush3.bf16.msra.mxu0 %v5259_v53 }
  0xc7   : > { %4776 = vmatprep.subr.bf16.mxu0 %v5265_v58 }
  0xc9   : > { %4969 = vmatmul.mubr.bf16.gmra.mxu0 %v551_v26 }
  0xca   : > { %4972 = vmatprep.mubr.bf16.mxu0 %v553_v27 }
  0xd1   : > { %4973 = vmatmul.mubr.bf16.gmra.mxu0 %v555_v28 }
  0xd2   : > { %4976 = vmatprep.mubr.bf16.mxu0 %v557_v29 }
  0xd9   : > { %4977 = vmatmul.mubr.bf16.gmra.mxu0 %v559_v30 }
  0xda   : > { %4980 = vmatprep.mubr.bf16.mxu0 %v561_v31 }
  0xe1   : > { %4981 = vmatmul.mubr.bf16.gmra.mxu0 %v563_v32 }
  0xe2   : > { %4984 = vmatprep.mubr.bf16.mxu0 %v565_v33 }
  0xe9   : > { %4985 = vmatmul.mubr.bf16.gmra.mxu0 %v5233_v34 }
 0x169   : > { %v4954_v60 = vpop.f32.mrf.mxu0 }
 0x16a   : > { %v793_v63 = vadd.f32 %v4954_v60, %v5981_v61 }
 0x16b   : > { %v784_v62 = vpop.f32.mrf.mxu0 }
 0x16c   : > { %v785_v1 = vadd.f32 %v5981_v61, %v784_v62  ;;  %v929_v4 = vmax.f32 %v793_v63, 0.0 }
 0x16d   : > { %v4955_v0 = vpop.f32.mrf.mxu0 }
 0x16e   : > { %v796_v2 = vadd.f32 %v4955_v0, %v5981_v61  ;;  %v927_v8 = vmax.f32 %v785_v1, 0.0 }
 0x16f   : > { %v787_v3 = vpop.f32.mrf.mxu0 }
 0x170   : > { %v930_v5 = vmax.f32 %v796_v2, 0.0  ;;  %v788_v6 = vadd.f32 %v5981_v61, %v787_v3 }
 0x171   : > { %v4958_v7 = vpop.f32.mrf.mxu0 }
 0x172   : > { %v964_v9 = vpack.c.bf16 %v930_v5, %v929_v4  ;;  %v928_v10 = vmax.f32 %v788_v6, 0.0  ;;  %v809_v11 = vadd.f32 %v4958_v7, %v5981_v61 }
 0x173   : > { %v800_v12 = vpop.f32.mrf.mxu0 }
 0x174   : > { %v989_v13 = vshrl.u32 %v964_v9, 16  ;;  %v963_v14 = vpack.c.bf16 %v928_v10, %v927_v8  ;;  %v992_v15 = vshll.u32 %v964_v9, 16  ;;  %v801_v17 = vadd.f32 %v5981_v61, %v800_v12 }
 0x175   : > { %v4959_v18 = vpop.f32.mrf.mxu0  ;;  %v933_v21 = vmax.f32 %v809_v11, 0.0 }
 0x176   : > { %v991_v19 = vrot.slane %v989_v13, 7  ;;  %v982_v20 = vshrl.u32 %v963_v14, 16  ;;  %v812_v22 = vadd.f32 %v4959_v18, %v5981_v61  ;;  %v985_v23 = vshll.u32 %v963_v14, 16 }
 0x177   : > { %v803_v24 = vpop.f32.mrf.mxu0  ;;  %v931_v30 = vmax.f32 %v801_v17, 0.0 }
 0x178   : > { %v994_v25 = vor.u32 %v992_v15, %v991_v19  ;;  %v1165_v26 = vsel %vm5988_vm2, %v991_v19, 0  ;;  %v984_v27 = vrot.slane %v982_v20, 7  ;;  %v934_v28 = vmax.f32 %v812_v22, 0.0 }
 0x179   : > { %v4200_v29 = vcombine.low %v1165_v26, %v1165_v26  ;;  %v804_v31 = vadd.f32 %v5981_v61, %v803_v24  ;;  %v4962_v32 = vpop.f32.mrf.mxu0 }
 0x17a   : > { %v1147_v33 = vsel %vm5988_vm2, 0, %v994_v25  ;;  %v987_v34 = vor.u32 %v985_v23, %v984_v27  ;;  %v1164_v35 = vsel %vm5988_vm2, %v984_v27, 0  ;;  %v966_v36 = vpack.c.bf16 %v934_v28, %v933_v21 }
 0x17b   : > { %v4198_v37 = vcombine.low %v1147_v33, %v1147_v33  ;;  %v4199_v38 = vcombine.high %v1147_v33, %v1147_v33  ;;  %1385 = vst [vmem:[#allocation2 + $0x14] sm:$0xf] %v4200_v29  ;;  %v4197_v39 = vcombine.low %v1164_v35, %v1164_v35  ;;  %v932_v40 = vmax.f32 %v804_v31, 0.0  ;;  %v816_v41 = vpop.f32.mrf.mxu0 }
 0x17c   : > { %v1146_v42 = vsel %vm5988_vm2, 0, %v987_v34  ;;  %v1003_v43 = vshrl.u32 %v966_v36, 16  ;;  %v825_v44 = vadd.f32 %v4962_v32, %v5981_v61  ;;  %v817_v48 = vadd.f32 %v5981_v61, %v816_v41 }
 0x17d   : > { %1383 = vst [vmem:[#allocation2 + $0xc] sm:$0xf] %v4198_v37  ;;  %1384 = vst [vmem:[#allocation2 + $0x10] sm:$0xf] %v4199_v38  ;;  %v4195_v45 = vcombine.low %v1146_v42, %v1146_v42  ;;  %v4196_v46 = vcombine.high %v1146_v42, %v1146_v42  ;;  %v965_v47 = vpack.c.bf16 %v932_v40, %v931_v30  ;;  %v4963_v49 = vpop.f32.mrf.mxu0  ;;  %v1006_v52 = vshll.u32 %v966_v36, 16 }
 0x17e   : > { %1382 = vst [vmem:[#allocation2 + $0x8] sm:$0xf] %v4197_v39  ;;  %v1005_v51 = vrot.slane %v1003_v43, 7  ;;  %v937_v53 = vmax.f32 %v825_v44, 0.0  ;;  %v828_v54 = vadd.f32 %v4963_v49, %v5981_v61  ;;  %v935_v56 = vmax.f32 %v817_v48, 0.0  ;;  %v5268_v39 = vld [vmem:[#allocation11 + $0x1b8] sm:$0xff]  }
 0x17f   : > { %1440 = vst [vmem:[#allocation2 + $0x8] sm:$0xf] %v5686_v50  ;;  %1380 = vst [vmem:[#allocation2] sm:$0xf] %v4195_v45  ;;  %v996_v55 = vshrl.u32 %v965_v47, 16  ;;  %v819_v57 = vpop.f32.mrf.mxu0  ;;  %v999_v1 = vshll.u32 %v965_v47, 16 }
 0x180   : > { %1381 = vst [vmem:[#allocation2 + $0x4] sm:$0xf] %v4196_v46  ;;  %1438 = vst [vmem:[#allocation2] sm:$0xf] %v5686_v50  ;;  %v1008_v58 = vor.u32 %v1006_v52, %v1005_v51  ;;  %v1167_v59 = vsel %vm5988_vm2, %v1005_v51, 0  ;;  %v938_v60 = vmax.f32 %v828_v54, 0.0  ;;  %v820_v62 = vadd.f32 %v5981_v61, %v819_v57 }
 0x181   : > { %1439 = vst [vmem:[#allocation2 + $0x4] sm:$0xf] %v5686_v50  ;;  %v4206_v63 = vcombine.low %v1167_v59, %v1167_v59  ;;  %v998_v0 = vrot.slane %v996_v55, 7  ;;  %v4966_v2 = vpop.f32.mrf.mxu0  ;;  %v5280_v52 = vld [vmem:[#allocation11 + $0x1f0] sm:$0xff]  }
 0x182   : > { %v1149_v3 = vsel %vm5988_vm2, 0, %v1008_v58  ;;  %v968_v4 = vpack.c.bf16 %v938_v60, %v937_v53  ;;  %v936_v5 = vmax.f32 %v820_v62, 0.0  ;;  %v841_v6 = vadd.f32 %v4966_v2, %v5981_v61  ;;  %v6017_v12 = vld [vmem:[#allocation2 + $0x14] ss:$0 sps:$4 sm:$0x11]  }
 0x183   : > { %v4204_v7 = vcombine.low %v1149_v3, %v1149_v3  ;;  %v4205_v8 = vcombine.high %v1149_v3, %v1149_v3  ;;  %1391 = vst [vmem:[#allocation2 + $0x2c] sm:$0xf] %v4206_v63  ;;  %v1001_v9 = vor.u32 %v999_v1, %v998_v0  ;;  %v1166_v10 = vsel %vm5988_vm2, %v998_v0, 0  ;;  %v832_v11 = vpop.f32.mrf.mxu0 }
 0x184   : > { %v4203_v13 = vcombine.low %v1166_v10, %v1166_v10  ;;  %v1017_v14 = vshrl.u32 %v968_v4, 16  ;;  %v1020_v15 = vshll.u32 %v968_v4, 16  ;;  %v967_v17 = vpack.c.bf16 %v936_v5, %v935_v56  ;;  %v6021_v19 = vld [vmem:[#allocation2 + $0xc] sm:$0xff]  }
 0x185   : > { %1389 = vst [vmem:[#allocation2 + $0x24] sm:$0xf] %v4204_v7  ;;  %1390 = vst [vmem:[#allocation2 + $0x28] sm:$0xf] %v4205_v8  ;;  %v1148_v18 = vsel %vm5988_vm2, 0, %v1001_v9  ;;  %v941_v20 = vmax.f32 %v841_v6, 0.0  ;;  %v833_v21 = vadd.f32 %v5981_v61, %v832_v11  ;;  %v4967_v22 = vpop.f32.mrf.mxu0  ;;  %2943 = vmatprep.mubr.bf16.mxu0 %v6021_v19 }
 0x186   : > { %v1798_v23 = vshll.u32 %v6017_v12, 16  ;;  %v4201_v24 = vcombine.low %v1148_v18, %v1148_v18  ;;  %v4202_v25 = vcombine.high %v1148_v18, %v1148_v18  ;;  %1388 = vst [vmem:[#allocation2 + $0x20] sm:$0xf] %v4203_v13  ;;  %v1019_v26 = vrot.slane %v1017_v14, 7  ;;  %v1484_v51 = vld [vmem:[#allocation2 + $0xc] sm:$0xf] }
 0x187   : > { %v1010_v27 = vshrl.u32 %v967_v17, 16  ;;  %v6025_v28 = vld [vmem:[#allocation2 + $0x8] ss:$0 sps:$4 sm:$0x11]   ;;  %v1013_v29 = vshll.u32 %v967_v17, 16  ;;  %v939_v30 = vmax.f32 %v833_v21, 0.0  ;;  %v844_v33 = vadd.f32 %v4967_v22, %v5981_v61  ;;  %v835_v34 = vpop.f32.mrf.mxu0 }
 0x188   : > { %v1482_v31 = vld [vmem:[#allocation2 + $0x4] sm:$0xf]  ;;  %v1535_v32 = vld [vmem:[#allocation2] sm:$0xe]  ;;  %1386 = vst [vmem:[#allocation2 + $0x18] sm:$0xf] %v4201_v24  ;;  %v1022_v35 = vor.u32 %v1020_v15, %v1019_v26  ;;  %v836_v43 = vadd.f32 %v5981_v61, %v835_v34 }
 0x189   : > { %1387 = vst [vmem:[#allocation2 + $0x1c] sm:$0xf] %v4202_v25  ;;  %v1169_v36 = vsel %vm5988_vm2, %v1019_v26, 0  ;;  %v1012_v37 = vrot.slane %v1010_v27, 7  ;;  %v4297_v38 = vcombine.low %v1535_v32, %v1482_v31  ;;  %v2036_v41 = vrot.slane %v6025_v28, 1  ;;  %v4970_v45 = vpop.f32.mrf.mxu0  ;;  %v5282_v9 = vld [vmem:[#allocation11 + $0x1b0] sm:$0xff]  }
 0x18a   : > { %v4212_v40 = vcombine.low %v1169_v36, %v1169_v36  ;;  %v942_v42 = vmax.f32 %v844_v33, 0.0  ;;  %v1481_v44 = vld [vmem:[#allocation2] sm:$0xf]  ;;  %v1151_v46 = vsel %vm5988_vm2, 0, %v1022_v35  ;;  %v1485_v57 = vld [vmem:[#allocation2 + $0x10] sm:$0xf]  ;;  %v6048_v18 = vadd.f32 %v4970_v45, %v5981_v61 }
 0x18b   : > { %v1015_v47 = vor.u32 %v1013_v29, %v1012_v37  ;;  %v1168_v48 = vsel %vm5988_vm2, %v1012_v37, 0  ;;  %v2035_v49 = vrot.slane %v4297_v38, 1  ;;  %v4210_v53 = vcombine.low %v1151_v46, %v1151_v46  ;;  %v1536_v58 = vld [vmem:[#allocation2 + $0xc] sm:$0xe]  ;;  %v6037_v59 = vpop.f32.mrf.mxu0  ;;  %v5291_v11 = vld [vmem:[#allocation11 + $0x1e8] sm:$0xff]   ;;  %v5293_v36 = vld [vmem:[#allocation11 + $0x138] sm:$0xff]  }
 0x18c   : > { %v4211_v54 = vcombine.high %v1151_v46, %v1151_v46  ;;  %1397 = vst [vmem:[#allocation2 + $0x44] sm:$0xf] %v4212_v40  ;;  %v4209_v55 = vcombine.low %v1168_v48, %v1168_v48  ;;  %v970_v56 = vpack.c.bf16 %v942_v42, %v941_v20  ;;  %v940_v63 = vmax.f32 %v836_v43, 0.0  ;;  %v5273_v32 = vld [vmem:[#allocation2] sm:$0xff]  }
 0x18d   : > { %v1150_v60 = vsel %vm5988_vm2, 0, %v1015_v47  ;;  %v2037_v62 = vsel %vm2034_vm3, %v2035_v49, %v2036_v41  ;;  %v4265_v0 = vcombine.low %v1481_v44, %v1482_v31  ;;  %1395 = vst [vmem:[#allocation2 + $0x3c] sm:$0xf] %v4210_v53  ;;  %v1786_v8 = vshll.u32 %v6025_v28, 16  ;;  %v6043_v10 = vpop.f32.mrf.mxu0  ;;  %v6058_v41 = vld [vmem:[#allocation2 + $0x24] sm:$0xff]  }
 0x18e   : > { %1396 = vst [vmem:[#allocation2 + $0x40] sm:$0xf] %v4211_v54  ;;  %v4207_v1 = vcombine.low %v1150_v60, %v1150_v60  ;;  %v4208_v2 = vcombine.high %v1150_v60, %v1150_v60  ;;  %1394 = vst [vmem:[#allocation2 + $0x38] sm:$0xf] %v4209_v55  ;;  %2944 = vmatmul.mubr.bf16.vlgmr.msra.gmra.mxu0 %v2037_v62  ;;  %v1031_v3 = vshrl.u32 %v970_v56, 16  ;;  %v1034_v4 = vshll.u32 %v970_v56, 16 }
 0x18f   : > { %4777 = vmatpush3.bf16.msra.mxu0 %v5268_v39  ;;  %v969_v5 = vpack.c.bf16 %v940_v63, %v939_v30  ;;  %v1779_v6 = vshrl.u32 %v4265_v0, 16  ;;  %v1781_v7 = vshll.u32 %v4265_v0, 16  ;;  %v4267_v15 = vcombine.low %v1484_v51, %v1485_v57  ;;  %v1487_v34 = vld [vmem:[#allocation2 + $0x18] sm:$0xf]  ;;  %v851_v35 = vpop.f32.mrf.mxu0  ;;  %v5294_v43 = vld [vmem:[#allocation11 + $0x1a8] sm:$0xff]   ;;  %v5302_v51 = vld [vmem:[#allocation11 + $0x170] sm:$0xff]  }
 0x190   : > { %1392 = vst [vmem:[#allocation2 + $0x30] sm:$0xf] %v4207_v1  ;;  %1393 = vst [vmem:[#allocation2 + $0x34] sm:$0xf] %v4208_v2  ;;  %v1033_v13 = vrot.slane %v1031_v3, 7  ;;  %v6045_v14 = vld [vmem:[#allocation2 + $0x18] sm:$0xff]   ;;  %v4298_v17 = vcombine.low %v1536_v58, %v1485_v57  ;;  %4778 = vmatprep.subr.bf16.mxu0 %v5280_v52 }
 0x191   : > { %v1024_v20 = vshrl.u32 %v969_v5, 16  ;;  %v1027_v21 = vshll.u32 %v969_v5, 16  ;;  %v1783_v22 = vrot.slane %v1781_v7, 1  ;;  %v1788_v24 = vrot.slane %v1786_v8, 1  ;;  %2951 = vmatprep.mubr.bf16.mxu0 %v6045_v14  ;;  %v1488_v42 = vld [vmem:[#allocation2 + $0x1c] sm:$0xf]  ;;  %v6064_v49 = vpop.f32.mrf.mxu0 }
 0x192   : > { %v1036_v25 = vor.u32 %v1034_v4, %v1033_v13  ;;  %v1171_v26 = vsel %vm5988_vm2, %v1033_v13, 0  ;;  %v1791_v27 = vshrl.u32 %v4267_v15, 16  ;;  %v1793_v28 = vshll.u32 %v4267_v15, 16  ;;  %v6062_v47 = vld [vmem:[#allocation2 + $0x20] ss:$0 sps:$4 sm:$0x11]  }
 0x193   : > { %v4218_v29 = vcombine.low %v1171_v26, %v1171_v26  ;;  %v1026_v30 = vrot.slane %v1024_v20, 7  ;;  %v1784_v31 = vor.u32 %v1783_v22, %v1779_v6  ;;  %v1800_v33 = vrot.slane %v1798_v23, 1  ;;  %4779 = vmatpush3.bf16.msra.mxu0 %v5282_v9  ;;  %v1537_v48 = vld [vmem:[#allocation2 + $0x18] sm:$0xe]  ;;  %v1490_v55 = vld [vmem:[#allocation2 + $0x24] sm:$0xf]  ;;  %v6084_v8 = vpop.f32.mrf.mxu0 }
 0x194   : > { %v1153_v37 = vsel %vm5988_vm2, 0, %v1036_v25  ;;  %v1795_v38 = vrot.slane %v1793_v28, 1  ;;  %v2038_v39 = vrot.slane %v4298_v17, 1  ;;  %v2039_v40 = vrot.slane %v6017_v12, 1  ;;  %4780 = vmatprep.subr.bf16.mxu0 %v5291_v11  ;;  %v1491_v58 = vld [vmem:[#allocation2 + $0x28] sm:$0xf] }
 0x195   : > { %v4216_v44 = vcombine.low %v1153_v37, %v1153_v37  ;;  %v4217_v45 = vcombine.high %v1153_v37, %v1153_v37  ;;  %1403 = vst [vmem:[#allocation2 + $0x5c] sm:$0xf] %v4218_v29  ;;  %v1029_v23 = vor.u32 %v1027_v21, %v1026_v30  ;;  %v1170_v46 = vsel %vm5988_vm2, %v1026_v30, 0  ;;  %v5303_v60 = vld [vmem:[#allocation11 + $0x1e0] sm:$0xff]   ;;  %v1538_v1 = vld [vmem:[#allocation2 + $0x24] sm:$0xe] }
 0x196   : > { %v4215_v52 = vcombine.low %v1170_v46, %v1170_v46  ;;  %v1789_v12 = vsel %vm1777_vm4, %v1784_v31, %v1788_v24  ;;  %v1796_v53 = vor.u32 %v1795_v38, %v1791_v27  ;;  %v6068_v54 = vsel %vm2034_vm3, %v2038_v39, %v2039_v40  ;;  %v5305_v2 = vld [vmem:[#allocation11 + $0x130] sm:$0xff]   ;;  %v5306_v17 = vld [vmem:[#allocation11 + $0x1a0] sm:$0xff]   ;;  %v5315_v25 = vld [vmem:[#allocation11 + $0x1d8] sm:$0xff]  }
 0x197   : > { %1401 = vst [vmem:[#allocation2 + $0x54] sm:$0xf] %v4216_v44  ;;  %1402 = vst [vmem:[#allocation2 + $0x58] sm:$0xf] %v4217_v45  ;;  %v1152_v56 = vsel %vm5988_vm2, 0, %v1029_v23  ;;  %2782 = vmatprep.mubr.bf16.mxu1 %v1789_v12  ;;  %2952 = vmatmul.mubr.bf16.gmra.mxu0 %v6068_v54  ;;  %v4269_v57 = vcombine.low %v1487_v34, %v1488_v42  ;;  %v945_v3 = vmax.f32 %v6048_v18, 0.0  ;;  %v6096_v34 = vpop.f32.mrf.mxu0 }
 0x198   : > { %v4213_v62 = vcombine.low %v1152_v56, %v1152_v56  ;;  %v4214_v63 = vcombine.high %v1152_v56, %v1152_v56  ;;  %1400 = vst [vmem:[#allocation2 + $0x50] sm:$0xf] %v4215_v52  ;;  %2783 = vmatmul.mubr.bf16.vlgmr.msra.gmra.mxu1 %v5273_v32  ;;  %v6074_v0 = vsel %vm1777_vm4, %v1796_v53, %v1800_v33  ;;  %v1810_v5 = vshll.u32 %v6062_v47, 16  ;;  %v6082_v7 = vld [vmem:[#allocation2 + $0x2c] ss:$0 sps:$4 sm:$0x11]  }
 0x199   : > { %2959 = vmatprep.mubr.bf16.mxu0 %v6058_v41  ;;  %2790 = vmatprep.mubr.bf16.mxu1 %v6074_v0  ;;  %v1805_v4 = vshll.u32 %v4269_v57, 16  ;;  %v849_v6 = vadd.f32 %v5981_v61, %v6037_v59  ;;  %v4299_v9 = vcombine.low %v1537_v48, %v1488_v42  ;;  %v860_v11 = vadd.f32 %v6043_v10, %v5981_v61  ;;  %v5314_v18 = vld [vmem:[#allocation11 + $0x168] sm:$0xff]   ;;  %v1493_v24 = vld [vmem:[#allocation2 + $0x30] sm:$0xf]  ;;  %v6092_v29 = vld [vmem:[#allocation2 + $0x34] sm:$0xf] }
 0x19a   : > { %4665 = vmatpush3.bf16.msra.mxu1 %v5293_v36  ;;  %1398 = vst [vmem:[#allocation2 + $0x48] sm:$0xf] %v4213_v62  ;;  %1399 = vst [vmem:[#allocation2 + $0x4c] sm:$0xf] %v4214_v63  ;;  %v852_v13 = vadd.f32 %v5981_v61, %v851_v35  ;;  %v6089_v15 = vcombine.low %v1490_v55, %v1491_v58  ;;  %4781 = vmatpush3.bf16.msra.mxu0 %v5294_v43  ;;  %v1803_v20 = vshrl.u32 %v4269_v57, 16  ;;  %v5317_v35 = vld [vmem:[#allocation11 + $0x128] sm:$0xff]  }
 0x19b   : > { %v1807_v59 = vrot.slane %v1805_v4, 1  ;;  %v943_v21 = vmax.f32 %v849_v6, 0.0  ;;  %v4300_v22 = vcombine.low %v1538_v1, %v1491_v58  ;;  %4666 = vmatprep.subr.bf16.mxu1 %v5302_v51  ;;  %4782 = vmatprep.subr.bf16.mxu0 %v5303_v60  ;;  %v2041_v26 = vrot.slane %v4299_v9, 1  ;;  %v5318_v36 = vld [vmem:[#allocation11 + $0x198] sm:$0xff]   ;;  %v5326_v43 = vld [vmem:[#allocation11 + $0x160] sm:$0xff]   ;;  %v5330_v56 = vld [vmem:[#allocation11 + $0x190] sm:$0xff]   ;;  %v867_v60 = vpop.f32.mrf.mxu0 }
 0x19c   : > { %v2042_v27 = vrot.slane %v6062_v47, 1  ;;  %v946_v28 = vmax.f32 %v860_v11, 0.0  ;;  %v944_v10 = vmax.f32 %v852_v13, 0.0  ;;  %v1812_v31 = vrot.slane %v1810_v5, 1  ;;  %v6101_v39 = vld [vmem:[#allocation2 + $0x30] sm:$0xff]   ;;  %v5327_v47 = vld [vmem:[#allocation11 + $0x1d0] sm:$0xff]  }
 0x19d   : > { %v1808_v30 = vor.u32 %v1807_v59, %v1803_v20  ;;  %v1817_v32 = vshll.u32 %v6089_v15, 16  ;;  %v1822_v33 = vshll.u32 %v6082_v7, 16  ;;  %v2044_v42 = vrot.slane %v4300_v22, 1  ;;  %v5329_v48 = vld [vmem:[#allocation11 + $0x120] sm:$0xff]   ;;  %v5338_v57 = vld [vmem:[#allocation11 + $0x158] sm:$0xff]   ;;  %v5339_v9 = vld [vmem:[#allocation11 + $0x1c8] sm:$0xff]  }
 0x19e   : > { %4667 = vmatpush3.bf16.msra.mxu1 %v5305_v2  ;;  %v6099_v37 = vsel %vm2034_vm3, %v2041_v26, %v2042_v27  ;;  %v972_v38 = vpack.c.bf16 %v946_v28, %v945_v3  ;;  %v971_v40 = vpack.c.bf16 %v944_v10, %v943_v21  ;;  %4783 = vmatpush3.bf16.msra.mxu0 %v5306_v17  ;;  %v6116_v55 = vld [vmem:[#allocation2 + $0x38] ss:$0 sps:$4 sm:$0x11]   ;;  %v2045_v58 = vrot.slane %v6082_v7, 1  ;;  %v1539_v2 = vld [vmem:[#allocation2 + $0x30] sm:$0xe]  ;;  %v6130_v7 = vpop.f32.mrf.mxu0 }
 0x19f   : > { %4668 = vmatprep.subr.bf16.mxu1 %v5314_v18  ;;  %v6104_v44 = vsel %vm1777_vm4, %v1808_v30, %v1812_v31  ;;  %2960 = vmatmul.mubr.bf16.gmra.mxu0 %v6099_v37  ;;  %v1819_v45 = vrot.slane %v1817_v32, 1  ;;  %v6109_v23 = vadd.f32 %v6064_v49, %v5981_v61  ;;  %v6112_v46 = vcombine.low %v1493_v24, %v6092_v29  ;;  %v5341_v18 = vld [vmem:[#allocation11 + $0x118] sm:$0xff]   ;;  %v5342_v20 = vld [vmem:[#allocation11 + $0x188] sm:$0xff]   ;;  %v5350_v27 = vld [vmem:[#allocation11 + $0x150] sm:$0xff]  }
 0x1a0   : > { %4784 = vmatprep.subr.bf16.mxu0 %v5315_v25  ;;  %2791 = vmatmul.mubr.bf16.gmra.mxu1 %v6021_v19  ;;  %v1045_v51 = vshrl.u32 %v972_v38, 16  ;;  %v1048_v52 = vshll.u32 %v972_v38, 16  ;;  %v1038_v12 = vshrl.u32 %v971_v40, 16  ;;  %v1041_v53 = vshll.u32 %v971_v40, 16  ;;  %v6136_v22 = vld [vmem:[#allocation2 + $0x3c] sm:$0xff]   ;;  %v6148_v40 = vpop.f32.mrf.mxu0 }
 0x1a1   : > { %2967 = vmatprep.mubr.bf16.mxu0 %v6101_v39  ;;  %2798 = vmatprep.mubr.bf16.mxu1 %v6104_v44  ;;  %v1815_v49 = vshrl.u32 %v6089_v15, 16  ;;  %v1824_v63 = vrot.slane %v1822_v33, 1  ;;  %v1829_v1 = vshll.u32 %v6112_v46, 16  ;;  %v6123_v4 = vsel %vm2034_vm3, %v2044_v42, %v2045_v58  ;;  %v1496_v25 = vld [vmem:[#allocation2 + $0x3c] sm:$0xf] }
 0x1a2   : > { %4669 = vmatpush3.bf16.msra.mxu1 %v5317_v35  ;;  %v1047_v62 = vrot.slane %v1045_v51, 7  ;;  %v1040_v19 = vrot.slane %v1038_v12, 7  ;;  %4785 = vmatpush3.bf16.msra.mxu0 %v5318_v36  ;;  %v949_v5 = vmax.f32 %v6109_v23, 0.0  ;;  %v6128_v6 = vadd.f32 %v5981_v61, %v6084_v8  ;;  %v1497_v26 = vld [vmem:[#allocation2 + $0x40] sm:$0xf]  ;;  %v5351_v42 = vld [vmem:[#allocation11 + $0x1c0] sm:$0xff]  }
 0x1a3   : > { %4670 = vmatprep.subr.bf16.mxu1 %v5326_v43  ;;  %v1820_v3 = vor.u32 %v1819_v45, %v1815_v49  ;;  %4786 = vmatprep.subr.bf16.mxu0 %v5327_v47  ;;  %v1827_v8 = vshrl.u32 %v6112_v46, 16  ;;  %v4301_v24 = vcombine.low %v1539_v2, %v6092_v29  ;;  %v1831_v30 = vrot.slane %v1829_v1, 1  ;;  %v1540_v32 = vld [vmem:[#allocation2 + $0x3c] sm:$0xe]  ;;  %v1499_v12 = vld [vmem:[#allocation2 + $0x48] sm:$0xf] }
 0x1a4   : > { %v1050_v11 = vor.u32 %v1048_v52, %v1047_v62  ;;  %v1173_v13 = vsel %vm5988_vm2, %v1047_v62, 0  ;;  %v1043_v15 = vor.u32 %v1041_v53, %v1040_v19  ;;  %v1172_v17 = vsel %vm5988_vm2, %v1040_v19, 0  ;;  %v6146_v38 = vld [vmem:[#allocation2 + $0x44] ss:$0 sps:$4 sm:$0x11]   ;;  %v6179_v23 = vld [vmem:[#allocation11 + $0x238] sm:$0xff]  }
 0x1a5   : > { %v4224_v59 = vcombine.low %v1173_v13, %v1173_v13  ;;  %v4221_v21 = vcombine.low %v1172_v17, %v1172_v17  ;;  %v1834_v31 = vshll.u32 %v6116_v55, 16  ;;  %v6152_v43 = vsel %vm1777_vm4, %v1820_v3, %v1824_v63  ;;  %v6161_v53 = vld [vmem:[#allocation2 + $0x4c] sm:$0xf]  ;;  %v4979_v63 = vpop.f32.mrf.mxu0 }
 0x1a6   : > { %4671 = vmatpush3.bf16.msra.mxu1 %v5329_v48  ;;  %v1155_v28 = vsel %vm5988_vm2, 0, %v1050_v11  ;;  %v1154_v10 = vsel %vm5988_vm2, 0, %v1043_v15  ;;  %4787 = vmatpush3.bf16.msra.mxu0 %v5330_v56  ;;  %v947_v45 = vmax.f32 %v6128_v6, 0.0  ;;  %v2048_v46 = vrot.slane %v6116_v55, 1  ;;  %v6176_v11 = vld [vmem:[#allocation2 + $0x48] sm:$0xff]  }
 0x1a7   : > { %4672 = vmatprep.subr.bf16.mxu1 %v5338_v57  ;;  %v4222_v33 = vcombine.low %v1155_v28, %v1155_v28  ;;  %v4223_v35 = vcombine.high %v1155_v28, %v1155_v28  ;;  %1409 = vst [vmem:[#allocation2 + $0x74] sm:$0xf] %v4224_v59  ;;  %v4219_v29 = vcombine.low %v1154_v10, %v1154_v10  ;;  %1406 = vst [vmem:[#allocation2 + $0x68] sm:$0xf] %v4221_v21  ;;  %v5354_v57 = vld [vmem:[#allocation11 + $0x180] sm:$0xff]  }
 0x1a8   : > { %v4220_v36 = vcombine.high %v1154_v10, %v1154_v10  ;;  %2968 = vmatmul.mubr.bf16.gmra.mxu0 %v6123_v4  ;;  %2799 = vmatmul.mubr.bf16.gmra.mxu1 %v6045_v14  ;;  %v876_v47 = vadd.f32 %v6096_v34, %v5981_v61  ;;  %v2047_v48 = vrot.slane %v4301_v24, 1  ;;  %v868_v14 = vadd.f32 %v5981_v61, %v867_v60  ;;  %v5353_v34 = vld [vmem:[#allocation11 + $0x110] sm:$0xff]   ;;  %v5359_v60 = vld [vmem:[#allocation11 + $0x148] sm:$0xff]   ;;  %v6171_v6 = vld [vmem:[#allocation2 + $0x50] ss:$0 sps:$4 sm:$0x11]  }
 0x1a9   : > { %2975 = vmatprep.mubr.bf16.mxu0 %v6136_v22  ;;  %1407 = vst [vmem:[#allocation2 + $0x6c] sm:$0xf] %v4222_v33  ;;  %1408 = vst [vmem:[#allocation2 + $0x70] sm:$0xf] %v4223_v35  ;;  %2806 = vmatprep.mubr.bf16.mxu1 %v6152_v43  ;;  %v4275_v51 = vcombine.low %v1496_v25, %v1497_v26  ;;  %v4302_v52 = vcombine.low %v1540_v32, %v1497_v26  ;;  %v1836_v56 = vrot.slane %v1834_v31, 1  ;;  %v5362_v28 = vld [vmem:[#allocation11 + $0x140] sm:$0xff]  }
 0x1aa   : > { %1404 = vst [vmem:[#allocation2 + $0x60] sm:$0xf] %v4219_v29  ;;  %1405 = vst [vmem:[#allocation2 + $0x64] sm:$0xf] %v4220_v36  ;;  %4788 = vmatprep.subr.bf16.mxu0 %v5339_v9  ;;  %v950_v55 = vmax.f32 %v876_v47, 0.0  ;;  %4673 = vmatpush3.bf16.msra.mxu1 %v5341_v18  ;;  %v1832_v49 = vor.u32 %v1831_v30, %v1827_v8  ;;  %v948_v58 = vmax.f32 %v868_v14, 0.0 }
 0x1ab   : > { %4789 = vmatpush3.bf16.msra.mxu0 %v5342_v20  ;;  %v1841_v62 = vshll.u32 %v4275_v51, 16  ;;  %v1846_v19 = vshll.u32 %v6146_v38, 16  ;;  %4674 = vmatprep.subr.bf16.mxu1 %v5350_v27  ;;  %v889_v2 = vadd.f32 %v6130_v7, %v5981_v61  ;;  %v6169_v3 = vcombine.low %v1499_v12, %v6161_v53  ;;  %v5360_v18 = vld [vmem:[#allocation11 + $0x108] sm:$0xff]   ;;  %v6185_v26 = vld [vmem:[#allocation2 + $0x48] sm:$0xe]  ;;  %v883_v27 = vpop.f32.mrf.mxu0  ;;  %v5363_v47 = vld [vmem:[#allocation11 + $0x100] sm:$0xff]  }
 0x1ac   : > { %4790 = vmatprep.subr.bf16.mxu0 %v5351_v42  ;;  %v974_v1 = vpack.c.bf16 %v950_v55, %v949_v5  ;;  %v6174_v9 = vsel %vm2034_vm3, %v2047_v48, %v2048_v46  ;;  %v973_v13 = vpack.c.bf16 %v948_v58, %v947_v45  ;;  %v2050_v15 = vrot.slane %v4302_v52, 1 }
 0x1ad   : > { %v2051_v17 = vrot.slane %v6146_v38, 1  ;;  %v1839_v7 = vshrl.u32 %v4275_v51, 16  ;;  %v1843_v59 = vrot.slane %v1841_v62, 1  ;;  %v6182_v21 = vsel %vm1777_vm4, %v1832_v49, %v1836_v56 }
 0x1ae   : > { %v1059_v5 = vshrl.u32 %v974_v1, 16  ;;  %v1062_v20 = vshll.u32 %v974_v1, 16  ;;  %4675 = vmatpush3.bf16.msra.mxu1 %v5353_v34  ;;  %v1052_v8 = vshrl.u32 %v973_v13, 16  ;;  %v1055_v24 = vshll.u32 %v973_v13, 16  ;;  %v1502_v34 = vld [vmem:[#allocation2 + $0x54] sm:$0xf] }
 0x1af   : > { %4791 = vmatpush3.bf16.msra.mxu0 %v5354_v57  ;;  %v1848_v25 = vrot.slane %v1846_v19, 1  ;;  %4676 = vmatprep.subr.bf16.mxu1 %v5359_v60  ;;  %v953_v30 = vmax.f32 %v889_v2, 0.0  ;;  %v1853_v31 = vshll.u32 %v6169_v3, 16  ;;  %v1858_v32 = vshll.u32 %v6171_v6, 16  ;;  %v6208_v57 = vld [vmem:[#allocation2 + $0x58] sm:$0xf] }
 0x1b0   : > { %2976 = vmatmul.mubr.bf16.gmra.mxu0 %v6174_v9  ;;  %2807 = vmatmul.mubr.bf16.gmra.mxu1 %v6058_v41  ;;  %v1061_v10 = vrot.slane %v1059_v5, 7  ;;  %v1054_v33 = vrot.slane %v1052_v8, 7  ;;  %v6193_v35 = vsel %vm2034_vm3, %v2050_v15, %v2051_v17  ;;  %v881_v29 = vadd.f32 %v5981_v61, %v6148_v40  ;;  %v4982_v41 = vpop.f32.mrf.mxu0  ;;  %v6212_v2 = vld [vmem:[#allocation2 + $0x54] sm:$0xff]  }
 0x1b1   : > { %2983 = vmatprep.mubr.bf16.mxu0 %v6176_v11  ;;  %2814 = vmatprep.mubr.bf16.mxu1 %v6182_v21  ;;  %v892_v36 = vadd.f32 %v4979_v63, %v5981_v61  ;;  %v1844_v45 = vor.u32 %v1843_v59, %v1839_v7  ;;  %v1851_v46 = vshrl.u32 %v6169_v3, 16  ;;  %v1855_v56 = vrot.slane %v1853_v31, 1 }
 0x1b2   : > { %4988 = vmatprep.subr.bf16.mxu0 %v6179_v23  ;;  %v1064_v38 = vor.u32 %v1062_v20, %v1061_v10  ;;  %v1175_v42 = vsel %vm5988_vm2, %v1061_v10, 0  ;;  %4677 = vmatpush3.bf16.msra.mxu1 %v5360_v18  ;;  %v1057_v14 = vor.u32 %v1055_v24, %v1054_v33  ;;  %v1174_v51 = vsel %vm5988_vm2, %v1054_v33, 0  ;;  %v896_v63 = vpop.f32.mrf.mxu0  ;;  %v1542_v10 = vld [vmem:[#allocation2 + $0x54] sm:$0xe] }
 0x1b3   : > { %v4230_v48 = vcombine.low %v1175_v42, %v1175_v42  ;;  %v954_v40 = vmax.f32 %v892_v36, 0.0  ;;  %4678 = vmatprep.subr.bf16.mxu1 %v5362_v28  ;;  %v4227_v12 = vcombine.low %v1174_v51, %v1174_v51  ;;  %v4303_v55 = vcombine.low %v6185_v26, %v6161_v53  ;;  %v6227_v26 = vld [vmem:[#allocation2 + $0x5c] ss:$0 sps:$4 sm:$0x11]  }
 0x1b4   : > { %v1157_v52 = vsel %vm5988_vm2, 0, %v1064_v38  ;;  %v1156_v62 = vsel %vm5988_vm2, 0, %v1057_v14  ;;  %v951_v3 = vmax.f32 %v881_v29, 0.0  ;;  %v884_v13 = vadd.f32 %v5981_v61, %v883_v27  ;;  %v4983_v27 = vpop.f32.mrf.mxu0  ;;  %v6236_v38 = vld [vmem:[#allocation2 + $0x64] sm:$0xf] }
 0x1b5   : > { %v4228_v49 = vcombine.low %v1157_v52, %v1157_v52  ;;  %v4229_v58 = vcombine.high %v1157_v52, %v1157_v52  ;;  %1415 = vst [vmem:[#allocation2 + $0x8c] sm:$0xf] %v4230_v48  ;;  %v976_v19 = vpack.c.bf16 %v954_v40, %v953_v30  ;;  %v4225_v60 = vcombine.low %v1156_v62, %v1156_v62 }
 0x1b6   : > { %v4226_v1 = vcombine.high %v1156_v62, %v1156_v62  ;;  %1412 = vst [vmem:[#allocation2 + $0x80] sm:$0xf] %v4227_v12  ;;  %4679 = vmatpush3.bf16.msra.mxu1 %v5363_v47  ;;  %v6217_v17 = vcombine.low %v1502_v34, %v6208_v57  ;;  %v6222_v18 = vsel %vm1777_vm4, %v1844_v45, %v1848_v25  ;;  %v1860_v20 = vrot.slane %v1858_v32, 1  ;;  %v1505_v32 = vld [vmem:[#allocation2 + $0x60] sm:$0xf] }
 0x1b7   : > { %1413 = vst [vmem:[#allocation2 + $0x84] sm:$0xf] %v4228_v49  ;;  %1414 = vst [vmem:[#allocation2 + $0x88] sm:$0xf] %v4229_v58  ;;  %v1073_v53 = vshrl.u32 %v976_v19, 16  ;;  %v1076_v15 = vshll.u32 %v976_v19, 16  ;;  %5084 = vmatprep.subr.bf16.mxu1 %v6179_v23  ;;  %v1856_v5 = vor.u32 %v1855_v56, %v1851_v46  ;;  %v905_v31 = vadd.f32 %v4982_v41, %v5981_v61  ;;  %v899_v41 = vpop.f32.mrf.mxu0 }
 0x1b8   : > { %2984 = vmatmul.mubr.bf16.gmra.mxu0 %v6193_v35  ;;  %1410 = vst [vmem:[#allocation2 + $0x78] sm:$0xf] %v4225_v60  ;;  %1411 = vst [vmem:[#allocation2 + $0x7c] sm:$0xf] %v4226_v1  ;;  %2815 = vmatmul.mubr.bf16.gmra.mxu1 %v6101_v39  ;;  %v952_v7 = vmax.f32 %v884_v13, 0.0  ;;  %v2053_v59 = vrot.slane %v4303_v55, 1  ;;  %v4304_v61 = vcombine.low %v1542_v10, %v6208_v57 }
 0x1b9   : > { %2991 = vmatprep.mubr.bf16.mxu0 %v6212_v2  ;;  %2822 = vmatprep.mubr.bf16.mxu1 %v6222_v18  ;;  %v2054_v8 = vrot.slane %v6171_v6, 1  ;;  %v1075_v24 = vrot.slane %v1073_v53, 7  ;;  %v1865_v30 = vshll.u32 %v6217_v17, 16  ;;  %v6234_v33 = vsel %vm1777_vm4, %v1856_v5, %v1860_v20  ;;  %v6243_v46 = vld [vmem:[#allocation2 + $0x60] sm:$0xff]   ;;  %v4986_v19 = vpop.f32.mrf.mxu0 }
 0x1ba   : > { %v975_v28 = vpack.c.bf16 %v952_v7, %v951_v3  ;;  %v1870_v47 = vshll.u32 %v6227_v26, 16  ;;  %v1863_v40 = vshrl.u32 %v6217_v17, 16  ;;  %v957_v12 = vmax.f32 %v905_v31, 0.0  ;;  %v6255_v55 = vld [vmem:[%s6903_s4] ss:$0 sm:$0xff]  ;;  %v6275_v31 = vld [vmem:[#allocation2 + $0x6c] sm:$0xff]  }
 0x1bb   : > { %v1078_v39 = vor.u32 %v1076_v15, %v1075_v24  ;;  %v1177_v25 = vsel %vm5988_vm2, %v1075_v24, 0  ;;  %v6239_v42 = vsel %vm2034_vm3, %v2053_v59, %v2054_v8  ;;  %v1867_v52 = vrot.slane %v1865_v30, 1  ;;  %v1543_v53 = vld [vmem:[#allocation2 + $0x60] sm:$0xe]  ;;  %v912_v10 = vpop.f32.mrf.mxu0  ;;  %v6273_v30 = vld [vmem:[#allocation2 + $0x70] sm:$0xf] }
 0x1bc   : > { %v4236_v29 = vcombine.low %v1177_v25, %v1177_v25  ;;  %v1066_v6 = vshrl.u32 %v975_v28, 16  ;;  %v1069_v36 = vshll.u32 %v975_v28, 16  ;;  %v6250_v56 = vcombine.low %v1505_v32, %v6236_v38  ;;  %v5313_v8 = vld [vmem:[#allocation2 + $0x68] ss:$0 sps:$4 sm:$0x11]  }
 0x1bd   : > { %v1159_v45 = vsel %vm5988_vm2, 0, %v1078_v39  ;;  %v897_v34 = vadd.f32 %v6255_v55, %v896_v63  ;;  %v908_v58 = vadd.f32 %v6255_v55, %v4983_v27  ;;  %v900_v62 = vadd.f32 %v6255_v55, %v899_v41  ;;  %v1508_v25 = vld [vmem:[#allocation2 + $0x6c] sm:$0xf] }
 0x1be   : > { %v4234_v48 = vcombine.low %v1159_v45, %v1159_v45  ;;  %v4235_v14 = vcombine.high %v1159_v45, %v1159_v45  ;;  %1421 = vst [vmem:[#allocation2 + $0xa4] sm:$0xf] %v4236_v29  ;;  %v1068_v51 = vrot.slane %v1066_v6, 7  ;;  %v2056_v1 = vrot.slane %v4304_v61, 1 }
 0x1bf   : > { %v2057_v63 = vrot.slane %v6227_v26, 1  ;;  %v955_v3 = vmax.f32 %v897_v34, 0.0  ;;  %v958_v15 = vmax.f32 %v908_v58, 0.0  ;;  %v956_v17 = vmax.f32 %v900_v62, 0.0  ;;  %v1544_v62 = vld [vmem:[#allocation2 + $0x6c] sm:$0xe] }
 0x1c0   : > { %2992 = vmatmul.mubr.bf16.gmra.mxu0 %v6239_v42  ;;  %2823 = vmatmul.mubr.bf16.gmra.mxu1 %v6136_v22  ;;  %1419 = vst [vmem:[#allocation2 + $0x9c] sm:$0xf] %v4234_v48  ;;  %1420 = vst [vmem:[#allocation2 + $0xa0] sm:$0xf] %v4235_v14  ;;  %v1071_v57 = vor.u32 %v1069_v36, %v1068_v51  ;;  %v1176_v49 = vsel %vm5988_vm2, %v1068_v51, 0  ;;  %v1868_v7 = vor.u32 %v1867_v52, %v1863_v40  ;;  %v4987_v51 = vpop.f32.mrf.mxu0 }
 0x1c1   : > { %2999 = vmatprep.mubr.bf16.mxu0 %v6243_v46  ;;  %2830 = vmatprep.mubr.bf16.mxu1 %v6234_v33  ;;  %v4233_v60 = vcombine.low %v1176_v49, %v1176_v49  ;;  %v1872_v59 = vrot.slane %v1870_v47, 1  ;;  %v1877_v24 = vshll.u32 %v6250_v56, 16  ;;  %v978_v27 = vpack.c.bf16 %v958_v15, %v957_v12  ;;  %v5321_v58 = vld [vmem:[#allocation2 + $0x74] ss:$0 sps:$4 sm:$0x11]  }
 0x1c2   : > { %v1158_v13 = vsel %vm5988_vm2, 0, %v1071_v57  ;;  %v977_v28 = vpack.c.bf16 %v956_v17, %v955_v3  ;;  %v6270_v26 = vsel %vm2034_vm3, %v2056_v1, %v2057_v63  ;;  %v4305_v39 = vcombine.low %v1543_v53, %v6236_v38  ;;  %v1511_v3 = vld [vmem:[#allocation2 + $0x78] sm:$0xf] }
 0x1c3   : > { %v4231_v5 = vcombine.low %v1158_v13, %v1158_v13  ;;  %v4232_v20 = vcombine.high %v1158_v13, %v1158_v13  ;;  %1418 = vst [vmem:[#allocation2 + $0x98] sm:$0xf] %v4233_v60  ;;  %v1087_v32 = vshrl.u32 %v978_v27, 16  ;;  %v1090_v29 = vshll.u32 %v978_v27, 16  ;;  %v6291_v13 = vld [vmem:[#allocation2 + $0x7c] sm:$0xf] }
 0x1c4   : > { %v1080_v6 = vshrl.u32 %v977_v28, 16  ;;  %v1083_v36 = vshll.u32 %v977_v28, 16  ;;  %v6278_v45 = vsel %vm1777_vm4, %v1868_v7, %v1872_v59  ;;  %v1875_v47 = vshrl.u32 %v6250_v56, 16  ;;  %v6301_v28 = vld [vmem:[#allocation2 + $0x78] sm:$0xff]  }
 0x1c5   : > { %1416 = vst [vmem:[#allocation2 + $0x90] sm:$0xf] %v4231_v5  ;;  %1417 = vst [vmem:[#allocation2 + $0x94] sm:$0xf] %v4232_v20  ;;  %v1882_v61 = vshll.u32 %v5313_v8, 16  ;;  %v1879_v38 = vrot.slane %v1877_v24, 1  ;;  %v4283_v14 = vcombine.low %v1508_v25, %v6273_v30  ;;  %v921_v12 = vadd.f32 %v6255_v55, %v4986_v19  ;;  %v915_v20 = vpop.f32.mrf.mxu0 }
 0x1c6   : > { %v1089_v41 = vrot.slane %v1087_v32, 7  ;;  %v1082_v48 = vrot.slane %v1080_v6, 7  ;;  %v2059_v40 = vrot.slane %v4305_v39, 1  ;;  %v2060_v52 = vrot.slane %v5313_v8, 1 }
 0x1c7   : > { %v1884_v60 = vrot.slane %v1882_v61, 1  ;;  %v913_v53 = vadd.f32 %v6255_v55, %v912_v10  ;;  %v1880_v15 = vor.u32 %v1879_v38, %v1875_v47  ;;  %v1889_v5 = vshll.u32 %v4283_v14, 16  ;;  %v5325_v38 = vld [vmem:[#allocation2 + $0x80] ss:$0 sps:$4 sm:$0x11]  }
 0x1c8   : > { %3000 = vmatmul.mubr.bf16.gmra.mxu0 %v6270_v26  ;;  %2831 = vmatmul.mubr.bf16.gmra.mxu1 %v6176_v11  ;;  %v1092_v34 = vor.u32 %v1090_v29, %v1089_v41  ;;  %v1179_v56 = vsel %vm5988_vm2, %v1089_v41, 0  ;;  %v1085_v57 = vor.u32 %v1083_v36, %v1082_v48  ;;  %v1178_v49 = vsel %vm5988_vm2, %v1082_v48, 0 }
 0x1c9   : > { %3007 = vmatprep.mubr.bf16.mxu0 %v6275_v31  ;;  %2838 = vmatprep.mubr.bf16.mxu1 %v6278_v45  ;;  %v4242_v1 = vcombine.low %v1179_v56, %v1179_v56  ;;  %v4239_v63 = vcombine.low %v1178_v49, %v1178_v49  ;;  %v6299_v27 = vsel %vm2034_vm3, %v2059_v40, %v2060_v52  ;;  %v961_v39 = vmax.f32 %v921_v12, 0.0  ;;  %v1514_v56 = vld [vmem:[#allocation2 + $0x84] sm:$0xf] }
 0x1ca   : > { %v1161_v19 = vsel %vm5988_vm2, 0, %v1092_v34  ;;  %v1160_v17 = vsel %vm5988_vm2, 0, %v1085_v57  ;;  %v4306_v10 = vcombine.low %v1544_v62, %v6273_v30  ;;  %v4285_v25 = vcombine.low %v1511_v3, %v6291_v13  ;;  %v6314_v57 = vld [vmem:[#allocation2 + $0x88] sm:$0xf] }
 0x1cb   : > { %v4240_v7 = vcombine.low %v1161_v19, %v1161_v19  ;;  %v4241_v59 = vcombine.high %v1161_v19, %v1161_v19  ;;  %1427 = vst [vmem:[#allocation2 + $0xbc] sm:$0xf] %v4242_v1  ;;  %v4237_v8 = vcombine.low %v1160_v17, %v1160_v17  ;;  %v4238_v24 = vcombine.high %v1160_v17, %v1160_v17 }
 0x1cc   : > { %1424 = vst [vmem:[#allocation2 + $0xb0] sm:$0xf] %v4239_v63  ;;  %v959_v32 = vmax.f32 %v913_v53, 0.0  ;;  %v924_v29 = vadd.f32 %v6255_v55, %v4987_v51  ;;  %v916_v6 = vadd.f32 %v6255_v55, %v915_v20  ;;  %v6310_v36 = vsel %vm1777_vm4, %v1880_v15, %v1884_v60  ;;  %v1545_v51 = vld [vmem:[#allocation2 + $0x78] sm:$0xe]  ;;  %v6319_v15 = vld [vmem:[#allocation2 + $0x84] sm:$0xff]  }
 0x1cd   : > { %1425 = vst [vmem:[#allocation2 + $0xb4] sm:$0xf] %v4240_v7  ;;  %1426 = vst [vmem:[#allocation2 + $0xb8] sm:$0xf] %v4241_v59  ;;  %v1887_v30 = vshrl.u32 %v4283_v14, 16  ;;  %v1891_v47 = vrot.slane %v1889_v5, 1  ;;  %v4307_v19 = vcombine.low %v1545_v51, %v6291_v13  ;;  %v4287_v7 = vcombine.low %v1514_v56, %v6314_v57 }
 0x1ce   : > { %1422 = vst [vmem:[#allocation2 + $0xa8] sm:$0xf] %v4237_v8  ;;  %1423 = vst [vmem:[#allocation2 + $0xac] sm:$0xf] %v4238_v24  ;;  %v1894_v61 = vshll.u32 %v5321_v58, 16  ;;  %v962_v41 = vmax.f32 %v924_v29, 0.0 }
 0x1cf   : > { %v960_v48 = vmax.f32 %v916_v6, 0.0  ;;  %v2062_v40 = vrot.slane %v4306_v10, 1  ;;  %v2063_v52 = vrot.slane %v5321_v58, 1  ;;  %v1901_v12 = vshll.u32 %v4285_v25, 16 }
 0x1d0   : > { %3008 = vmatmul.mubr.bf16.gmra.mxu0 %v6299_v27  ;;  %2839 = vmatmul.mubr.bf16.gmra.mxu1 %v6212_v2  ;;  %v980_v55 = vpack.c.bf16 %v962_v41, %v961_v39  ;;  %v1892_v49 = vor.u32 %v1891_v47, %v1887_v30  ;;  %v1896_v62 = vrot.slane %v1894_v61, 1  ;;  %v1906_v60 = vshll.u32 %v5325_v38, 16  ;;  %v1546_v30 = vld [vmem:[#allocation2 + $0x84] sm:$0xe] }
 0x1d1   : > { %3015 = vmatprep.mubr.bf16.mxu0 %v6301_v28  ;;  %2846 = vmatprep.mubr.bf16.mxu1 %v6310_v36  ;;  %v979_v34 = vpack.c.bf16 %v960_v48, %v959_v32  ;;  %v6317_v53 = vsel %vm2034_vm3, %v2062_v40, %v2063_v52  ;;  %v1899_v58 = vshrl.u32 %v4285_v25, 16  ;;  %v1903_v17 = vrot.slane %v1901_v12, 1  ;;  %v5333_v48 = vld [vmem:[#allocation2 + $0x8c] ss:$0 sps:$4 sm:$0x11]  }
 0x1d2   : > { %v1101_v14 = vshrl.u32 %v980_v55, 16  ;;  %v1104_v1 = vshll.u32 %v980_v55, 16  ;;  %v6326_v59 = vsel %vm1777_vm4, %v1892_v49, %v1896_v62  ;;  %v1908_v8 = vrot.slane %v1906_v60, 1  ;;  %v6342_v49 = vld [vmem:[#allocation2 + $0x90] sm:$0xff]  }
 0x1d3   : > { %v1094_v63 = vshrl.u32 %v979_v34, 16  ;;  %v1097_v3 = vshll.u32 %v979_v34, 16  ;;  %v2065_v25 = vrot.slane %v4307_v19, 1  ;;  %v2066_v32 = vrot.slane %v5325_v38, 1  ;;  %v1517_v38 = vld [vmem:[#allocation2 + $0x90] sm:$0xf] }
 0x1d4   : > { %v1103_v5 = vrot.slane %v1101_v14, 7  ;;  %v1904_v47 = vor.u32 %v1903_v17, %v1899_v58  ;;  %v1913_v40 = vshll.u32 %v4287_v7, 16  ;;  %v1518_v34 = vld [vmem:[#allocation2 + $0x94] sm:$0xf]  ;;  %v4308_v16 = vcombine.low %v1546_v30, %v6314_v57  ;;  %v1547_v19 = vld [vmem:[#allocation2 + $0x90] sm:$0xe] }
 0x1d5   : > { %v1096_v20 = vrot.slane %v1094_v63, 7  ;;  %v6340_v56 = vsel %vm2034_vm3, %v2065_v25, %v2066_v32  ;;  %v1918_v62 = vshll.u32 %v5333_v48, 16  ;;  %v1911_v14 = vshrl.u32 %v4287_v7, 16  ;;  %v5337_v58 = vld [vmem:[#allocation2 + $0x98] ss:$0 sps:$4 sm:$0x11]  }
 0x1d6   : > { %v1106_v24 = vor.u32 %v1104_v1, %v1103_v5  ;;  %v1181_v13 = vsel %vm5988_vm2, %v1103_v5, 0  ;;  %v6350_v60 = vsel %vm1777_vm4, %v1904_v47, %v1908_v8  ;;  %v1915_v1 = vrot.slane %v1913_v40, 1  ;;  %v6357_v8 = vld [vmem:[#allocation2 + $0x9c] sm:$0xff]   ;;  %v5345_v47 = vld [vmem:[#allocation2 + $0xa4] ss:$0 sps:$4 sm:$0x11]  }
 0x1d7   : > { %v1099_v10 = vor.u32 %v1097_v3, %v1096_v20  ;;  %v1180_v39 = vsel %vm5988_vm2, %v1096_v20, 0  ;;  %v4248_v29 = vcombine.low %v1181_v13, %v1181_v13  ;;  %v4289_v63 = vcombine.low %v1517_v38, %v1518_v34  ;;  %v1520_v20 = vld [vmem:[#allocation2 + $0x9c] sm:$0xf] }
 0x1d8   : > { %3016 = vmatmul.mubr.bf16.gmra.mxu0 %v6317_v53  ;;  %2847 = vmatmul.mubr.bf16.gmra.mxu1 %v6243_v46  ;;  %v4245_v6 = vcombine.low %v1180_v39, %v1180_v39  ;;  %v1163_v61 = vsel %vm5988_vm2, 0, %v1106_v24  ;;  %v2068_v57 = vrot.slane %v4308_v16, 1  ;;  %v2069_v3 = vrot.slane %v5333_v48, 1  ;;  %v1521_v24 = vld [vmem:[#allocation2 + $0xa0] sm:$0xf] }
 0x1d9   : > { %3023 = vmatprep.mubr.bf16.mxu0 %v6319_v15  ;;  %2854 = vmatprep.mubr.bf16.mxu1 %v6326_v59  ;;  %v1162_v41 = vsel %vm5988_vm2, 0, %v1099_v10  ;;  %v4246_v52 = vcombine.low %v1163_v61, %v1163_v61  ;;  %v4247_v51 = vcombine.high %v1163_v61, %v1163_v61  ;;  %1433 = vst [vmem:[#allocation2 + $0xd4] sm:$0xf] %v4248_v29  ;;  %v1920_v5 = vrot.slane %v1918_v62, 1  ;;  %v1548_v61 = vld [vmem:[#allocation2 + $0x9c] sm:$0xe] }
 0x1da   : > { %v4243_v12 = vcombine.low %v1162_v41, %v1162_v41  ;;  %v4244_v55 = vcombine.high %v1162_v41, %v1162_v41  ;;  %1430 = vst [vmem:[#allocation2 + $0xc8] sm:$0xf] %v4245_v6  ;;  %1444 = vst [vmem:[#allocation2 + $0xd4] sm:$0xf] %v5686_v50  ;;  %v1916_v17 = vor.u32 %v1915_v1, %v1911_v14  ;;  %v1930_v7 = vshll.u32 %v5337_v58, 16 }
 0x1db   : > { %1431 = vst [vmem:[#allocation2 + $0xcc] sm:$0xf] %v4246_v52  ;;  %1432 = vst [vmem:[#allocation2 + $0xd0] sm:$0xf] %v4247_v51  ;;  %v6355_v13 = vsel %vm2034_vm3, %v2068_v57, %v2069_v3  ;;  %v4309_v10 = vcombine.low %v1547_v19, %v1518_v34  ;;  %v1923_v25 = vshrl.u32 %v4289_v63, 16  ;;  %v4291_v29 = vcombine.low %v1520_v20, %v1521_v24 }
 0x1dc   : > { %1428 = vst [vmem:[#allocation2 + $0xc0] sm:$0xf] %v4243_v12  ;;  %1429 = vst [vmem:[#allocation2 + $0xc4] sm:$0xf] %v4244_v55  ;;  %v6362_v39 = vsel %vm1777_vm4, %v1916_v17, %v1920_v5  ;;  %v2072_v30 = vrot.slane %v5337_v58, 1  ;;  %v1932_v48 = vrot.slane %v1930_v7, 1  ;;  %v4310_v38 = vcombine.low %v1548_v61, %v1521_v24 }
 0x1dd   : > { %1442 = vst [vmem:[#allocation2 + $0xcc] sm:$0xf] %v5686_v50  ;;  %1443 = vst [vmem:[#allocation2 + $0xd0] sm:$0xf] %v5686_v50  ;;  %v1925_v50 = vshll.u32 %v4289_v63, 16  ;;  %v2071_v6 = vrot.slane %v4309_v10, 1 }
 0x1de   : > { %v1937_v40 = vshll.u32 %v4291_v29, 16  ;;  %v1523_v52 = vld [vmem:[#allocation2 + $0xa8] sm:$0xf]  ;;  %v1524_v51 = vld [vmem:[#allocation2 + $0xac] sm:$0xf]  ;;  %v1942_v34 = vshll.u32 %v5345_v47, 16 }
 0x1df   : > { %v1927_v32 = vrot.slane %v1925_v50, 1  ;;  %v6367_v12 = vsel %vm2034_vm3, %v2071_v6, %v2072_v30  ;;  %v6369_v55 = vld [vmem:[#allocation2 + $0xa8] sm:$0xff]   ;;  %v1935_v62 = vshrl.u32 %v4291_v29, 16  ;;  %v4293_v1 = vcombine.low %v1523_v52, %v1524_v51  ;;  %v5349_v3 = vld [vmem:[#allocation2 + $0xb0] ss:$0 sps:$4 sm:$0x11]  }
 0x1e0   : > { %3024 = vmatmul.mubr.bf16.gmra.mxu0 %v6340_v56  ;;  %2855 = vmatmul.mubr.bf16.gmra.mxu1 %v6275_v31  ;;  %v1939_v14 = vrot.slane %v1937_v40, 1  ;;  %v2074_v63 = vrot.slane %v4310_v38, 1  ;;  %v2075_v57 = vrot.slane %v5345_v47, 1  ;;  %v1549_v58 = vld [vmem:[#allocation2 + $0xa8] sm:$0xe]  ;;  %v1944_v17 = vrot.slane %v1942_v34, 1 }
 0x1e1   : > { %3031 = vmatprep.mubr.bf16.mxu0 %v6342_v49  ;;  %2862 = vmatprep.mubr.bf16.mxu1 %v6350_v60  ;;  %v1928_v41 = vor.u32 %v1927_v32, %v1923_v25  ;;  %v1949_v5 = vshll.u32 %v4293_v1, 16  ;;  %v1526_v50 = vld [vmem:[#allocation2 + $0xb4] sm:$0xf]  ;;  %v1527_v20 = vld [vmem:[#allocation2 + $0xb8] sm:$0xf]  ;;  %v4311_v7 = vcombine.low %v1549_v58, %v1524_v51  ;;  %v1954_v25 = vshll.u32 %v5349_v3, 16 }
 0x1e2   : > { %v1940_v19 = vor.u32 %v1939_v14, %v1935_v62  ;;  %v6379_v24 = vsel %vm2034_vm3, %v2074_v63, %v2075_v57  ;;  %v6381_v10 = vld [vmem:[#allocation2 + $0xb4] sm:$0xff]   ;;  %v1947_v29 = vshrl.u32 %v4293_v1, 16  ;;  %v4295_v30 = vcombine.low %v1526_v50, %v1527_v20  ;;  %v5357_v52 = vld [vmem:[#allocation2 + $0xbc] ss:$0 sps:$4 sm:$0x11]  }
 0x1e3   : > { %v6374_v16 = vsel %vm1777_vm4, %v1928_v41, %v1932_v48  ;;  %v1951_v6 = vrot.slane %v1949_v5, 1  ;;  %v2077_v47 = vrot.slane %v4311_v7, 1  ;;  %v2078_v61 = vrot.slane %v5349_v3, 1  ;;  %v1550_v41 = vld [vmem:[#allocation2 + $0xb4] sm:$0xe]  ;;  %v6393_v34 = vld [vmem:[#allocation2 + $0xc0] sm:$0xff]  }
 0x1e4   : > { %v6386_v32 = vsel %vm1777_vm4, %v1940_v19, %v1944_v17  ;;  %v1956_v40 = vrot.slane %v1954_v25, 1  ;;  %v1961_v51 = vshll.u32 %v4295_v30, 16  ;;  %v4312_v62 = vcombine.low %v1550_v41, %v1527_v20  ;;  %v5364_v20 = vld [vmem:[#allocation11 + $0x230] sm:$0xff]   ;;  %v5403_v7 = vld [vmem:[#allocation2 + $0x18] sm:$0xff]   ;;  %v5365_v25 = vld [vmem:[#allocation11 + $0x228] sm:$0xff]  }
 0x1e5   : > { %v1952_v48 = vor.u32 %v1951_v6, %v1947_v29  ;;  %v6391_v38 = vsel %vm2034_vm3, %v2077_v47, %v2078_v61  ;;  %v1959_v1 = vshrl.u32 %v4295_v30, 16  ;;  %v1966_v57 = vshll.u32 %v5357_v52, 16  ;;  %v5404_v29 = vld [vmem:[#allocation2 + $0x24] sm:$0xff]   ;;  %v5366_v6 = vld [vmem:[#allocation11 + $0x220] sm:$0xff]   ;;  %v5405_v30 = vld [vmem:[#allocation2 + $0x30] sm:$0xff]  }
 0x1e6   : > { %v1963_v63 = vrot.slane %v1961_v51, 1  ;;  %v2080_v3 = vrot.slane %v4312_v62, 1  ;;  %v2081_v58 = vrot.slane %v5357_v52, 1  ;;  %v5368_v47 = vld [vmem:[#allocation11 + $0x210] sm:$0xff]  }
 0x1e7   : > { %v6398_v14 = vsel %vm1777_vm4, %v1952_v48, %v1956_v40  ;;  %v1968_v17 = vrot.slane %v1966_v57, 1 }
 0x1e8   : > { %3032 = vmatmul.mubr.bf16.gmra.mxu0 %v6355_v13  ;;  %2863 = vmatmul.mubr.bf16.gmra.mxu1 %v6301_v28  ;;  %v1964_v19 = vor.u32 %v1963_v63, %v1959_v1  ;;  %v6403_v5 = vsel %vm2034_vm3, %v2080_v3, %v2081_v58 }
 0x1e9   : > { %3039 = vmatprep.mubr.bf16.mxu0 %v6357_v8  ;;  %2870 = vmatprep.mubr.bf16.mxu1 %v6362_v39 }
 0x1ea   : > { %v6408_v50 = vsel %vm1777_vm4, %v1964_v19, %v1968_v17 }
 0x1f0   : > { %3040 = vmatmul.mubr.bf16.gmra.mxu0 %v6367_v12  ;;  %2871 = vmatmul.mubr.bf16.gmra.mxu1 %v6319_v15 }
 0x1f1   : > { %3047 = vmatprep.mubr.bf16.mxu0 %v6369_v55  ;;  %2878 = vmatprep.mubr.bf16.mxu1 %v6374_v16 }
 0x1f8   : > { %3048 = vmatmul.mubr.bf16.gmra.mxu0 %v6379_v24  ;;  %2879 = vmatmul.mubr.bf16.gmra.mxu1 %v6342_v49 }
 0x1f9   : > { %3055 = vmatprep.mubr.bf16.mxu0 %v6381_v10  ;;  %2886 = vmatprep.mubr.bf16.mxu1 %v6386_v32 }
 0x200   : > { %3056 = vmatmul.mubr.bf16.gmra.mxu0 %v6391_v38  ;;  %2887 = vmatmul.mubr.bf16.gmra.mxu1 %v6357_v8 }
 0x201   : > { %3063 = vmatprep.mubr.bf16.mxu0 %v6393_v34  ;;  %2894 = vmatprep.mubr.bf16.mxu1 %v6398_v14 }
 0x208   : > { %3064 = vmatmul.mubr.bf16.gmra.mxu0 %v6403_v5  ;;  %2895 = vmatmul.mubr.bf16.gmra.mxu1 %v6369_v55 }
 0x209   : > { %3265 = vmatprep.mubr.bf16.mxu0 %v6104_v44  ;;  %2902 = vmatprep.mubr.bf16.mxu1 %v6408_v50 }
 0x210   : > { %3266 = vmatmul.mubr.bf16.vlgmr.msra.gmra.mxu0 %v5403_v7  ;;  %2903 = vmatmul.mubr.bf16.gmra.mxu1 %v6381_v10 }
 0x211   : > { %4989 = vmatpush3.bf16.msra.mxu0 %v6179_v23  ;;  %3104 = vmatprep.mubr.bf16.mxu1 %v6068_v54  ;;  %v5367_v54 = vld [vmem:[#allocation11 + $0x218] sm:$0xff]  }
 0x212   : > { %3273 = vmatprep.mubr.bf16.mxu0 %v6152_v43  ;;  %4990 = vmatprep.subr.bf16.mxu0 %v5364_v20 }
 0x215   : > { %4991 = vmatpush3.bf16.msra.mxu0 %v5364_v20 }
 0x216   : > { %4992 = vmatprep.subr.bf16.mxu0 %v5365_v25 }
 0x218   : > { %3274 = vmatmul.mubr.bf16.gmra.mxu0 %v5404_v29  ;;  %3105 = vmatmul.mubr.bf16.vlgmr.msra.gmra.mxu1 %v6074_v0  ;;  %v5369_v0 = vld [vmem:[#allocation11 + $0x208] sm:$0xff]  }
 0x219   : > { %3281 = vmatprep.mubr.bf16.mxu0 %v6182_v21  ;;  %3112 = vmatprep.mubr.bf16.mxu1 %v6099_v37 }
 0x21a   : > { %5092 = vmatpush3.bf16.msra.mxu1 %v6179_v23  ;;  %4993 = vmatpush3.bf16.msra.mxu0 %v5365_v25  ;;  %v5372_v23 = vld [vmem:[#allocation11 + $0x200] sm:$0xff]  }
 0x21b   : > { %5085 = vmatprep.subr.bf16.mxu1 %v5364_v20  ;;  %4994 = vmatprep.subr.bf16.mxu0 %v5366_v6 }
 0x21e   : > { %5093 = vmatpush3.bf16.msra.mxu1 %v5364_v20  ;;  %4995 = vmatpush3.bf16.msra.mxu0 %v5366_v6 }
 0x21f   : > { %5086 = vmatprep.subr.bf16.mxu1 %v5365_v25  ;;  %4996 = vmatprep.subr.bf16.mxu0 %v5367_v54 }
 0x220   : > { %3282 = vmatmul.mubr.bf16.gmra.mxu0 %v5405_v30  ;;  %3113 = vmatmul.mubr.bf16.gmra.mxu1 %v6104_v44 }
 0x221   : > { %3289 = vmatprep.mubr.bf16.mxu0 %v6222_v18  ;;  %3120 = vmatprep.mubr.bf16.mxu1 %v6123_v4 }
 0x222   : > { %5094 = vmatpush3.bf16.msra.mxu1 %v5365_v25  ;;  %4997 = vmatpush3.bf16.msra.mxu0 %v5367_v54  ;;  %v6466_v25 = vld [vmem:[#allocation2 + $0xc4] sm:$0xf] }
 0x223   : > { %5087 = vmatprep.subr.bf16.mxu1 %v5366_v6  ;;  %4998 = vmatprep.subr.bf16.mxu0 %v5368_v47 }
 0x226   : > { %5095 = vmatpush3.bf16.msra.mxu1 %v5366_v6  ;;  %4999 = vmatpush3.bf16.msra.mxu0 %v5368_v47 }
 0x227   : > { %5088 = vmatprep.subr.bf16.mxu1 %v5367_v54  ;;  %5000 = vmatprep.subr.bf16.mxu0 %v5369_v0 }
 0x228   : > { %3290 = vmatmul.mubr.bf16.gmra.mxu0 %v6136_v22  ;;  %3121 = vmatmul.mubr.bf16.gmra.mxu1 %v6152_v43 }
 0x229   : > { %3297 = vmatprep.mubr.bf16.mxu0 %v6234_v33  ;;  %3128 = vmatprep.mubr.bf16.mxu1 %v6174_v9 }
 0x22a   : > { %5096 = vmatpush3.bf16.msra.mxu1 %v5367_v54  ;;  %5001 = vmatpush3.bf16.msra.mxu0 %v5369_v0 }
 0x22b   : > { %5089 = vmatprep.subr.bf16.mxu1 %v5368_v47  ;;  %5002 = vmatprep.subr.bf16.mxu0 %v5372_v23 }
 0x22e   : > { %5097 = vmatpush3.bf16.msra.mxu1 %v5368_v47  ;;  %5003 = vmatpush3.bf16.msra.mxu0 %v5372_v23 }
 0x22f   : > { %5090 = vmatprep.subr.bf16.mxu1 %v5369_v0 }
 0x230   : > { %3298 = vmatmul.mubr.bf16.gmra.mxu0 %v6176_v11  ;;  %3129 = vmatmul.mubr.bf16.gmra.mxu1 %v6182_v21 }
 0x231   : > { %3305 = vmatprep.mubr.bf16.mxu0 %v6278_v45  ;;  %3136 = vmatprep.mubr.bf16.mxu1 %v6193_v35 }
 0x232   : > { %5098 = vmatpush3.bf16.msra.mxu1 %v5369_v0 }
 0x233   : > { %5091 = vmatprep.subr.bf16.mxu1 %v5372_v23 }
 0x236   : > { %5099 = vmatpush3.bf16.msra.mxu1 %v5372_v23 }
 0x238   : > { %3306 = vmatmul.mubr.bf16.gmra.mxu0 %v6212_v2  ;;  %3137 = vmatmul.mubr.bf16.gmra.mxu1 %v6222_v18 }
 0x239   : > { %3313 = vmatprep.mubr.bf16.mxu0 %v6310_v36  ;;  %3144 = vmatprep.mubr.bf16.mxu1 %v6239_v42 }
 0x240   : > { %3314 = vmatmul.mubr.bf16.gmra.mxu0 %v6243_v46  ;;  %3145 = vmatmul.mubr.bf16.gmra.mxu1 %v6234_v33 }
 0x241   : > { %3321 = vmatprep.mubr.bf16.mxu0 %v6326_v59  ;;  %3152 = vmatprep.mubr.bf16.mxu1 %v6270_v26 }
 0x248   : > { %3322 = vmatmul.mubr.bf16.gmra.mxu0 %v6275_v31  ;;  %3153 = vmatmul.mubr.bf16.gmra.mxu1 %v6278_v45  ;;  %v6454_v31 = vld [vmem:[%s6905_s6] ss:$0 sm:$0xff] }
 0x249   : > { %3329 = vmatprep.mubr.bf16.mxu0 %v6350_v60  ;;  %3160 = vmatprep.mubr.bf16.mxu1 %v6299_v27 }
 0x24e   : > { %v4568_v44 = vpop.f32.mrf.mxu0 }
 0x250   : > { %3330 = vmatmul.mubr.bf16.gmra.mxu0 %v6301_v28  ;;  %3161 = vmatmul.mubr.bf16.gmra.mxu1 %v6310_v36  ;;  %v4569_v22 = vpop.f32.mrf.mxu0 }
 0x251   : > { %3337 = vmatprep.mubr.bf16.mxu0 %v6362_v39  ;;  %3168 = vmatprep.mubr.bf16.mxu1 %v6317_v53  ;;  %v4570_v43 = vadd.f32 %v4569_v22, %v4568_v44 }
 0x252   : > { %v4571_v11 = vpop.f32.mrf.mxu0 }
 0x254   : > { %v4572_v21 = vpop.f32.mrf.mxu0 }
 0x255   : > { %v4573_v2 = vadd.f32 %v4572_v21, %v4571_v11  ;;  %v6477_v11 = vld [vmem:[#allocation2 + $0xc8] ss:$0 sps:$4 sm:$0x11]  }
 0x257   : > { %v4574_v18 = vpop.f32.mrf.mxu0 }
 0x258   : > { %3338 = vmatmul.mubr.bf16.gmra.mxu0 %v6319_v15  ;;  %v4456_v33 = vpop.f32.mrf.mxu1  ;;  %3169 = vmatmul.mubr.bf16.gmra.mxu1 %v6326_v59 }
 0x259   : > { %3345 = vmatprep.mubr.bf16.mxu0 %v6374_v16  ;;  %3176 = vmatprep.mubr.bf16.mxu1 %v6340_v56  ;;  %v4575_v46 = vpop.f32.mrf.mxu0 }
 0x25a   : > { %v4457_v45 = vpop.f32.mrf.mxu1  ;;  %v4576_v28 = vadd.f32 %v4575_v46, %v4574_v18  ;;  %v1532_v18 = vld [vmem:[#allocation2 + $0xcc] sm:$0xf] }
 0x25b   : > { %v4458_v36 = vadd.f32 %v4457_v45, %v4456_v33  ;;  %v4577_v61 = vpop.f32.mrf.mxu0 }
 0x25c   : > { %v4459_v41 = vpop.f32.mrf.mxu1 }
 0x25d   : > { %v2785_v15 = vadd.f32 %v4458_v36, %v6454_v31  ;;  %v4578_v48 = vpop.f32.mrf.mxu0 }
 0x25e   : > { %v4460_v40 = vpop.f32.mrf.mxu1  ;;  %v4579_v59 = vadd.f32 %v4578_v48, %v4577_v61 }
 0x25f   : > { %v4461_v52 = vadd.f32 %v4460_v40, %v4459_v41  ;;  %v4580_v51 = vpop.f32.mrf.mxu0  ;;  %v6458_v62 = vadd.f32 %v4570_v43, %v2785_v15  ;;  %v2121_v40 = vshll.u32 %v6477_v11, 16 }
 0x260   : > { %3346 = vmatmul.mubr.bf16.gmra.mxu0 %v6342_v49  ;;  %v4462_v1 = vpop.f32.mrf.mxu1  ;;  %3177 = vmatmul.mubr.bf16.gmra.mxu1 %v6350_v60  ;;  %v1529_v49 = vld [vmem:[#allocation2 + $0xc0] sm:$0xf] }
 0x261   : > { %3353 = vmatprep.mubr.bf16.mxu0 %v6386_v32  ;;  %v2788_v63 = vadd.f32 %v4461_v52, %v6454_v31  ;;  %3184 = vmatprep.mubr.bf16.mxu1 %v6355_v13  ;;  %v4581_v57 = vpop.f32.mrf.mxu0  ;;  %v4314_v0 = vcombine.low %v1529_v49, %v6466_v25 }
 0x262   : > { %v4463_v3 = vpop.f32.mrf.mxu1  ;;  %v4582_v58 = vadd.f32 %v4581_v57, %v4580_v51 }
 0x263   : > { %v4464_v19 = vadd.f32 %v4463_v3, %v4462_v1  ;;  %v4583_v17 = vpop.f32.mrf.mxu0  ;;  %v6464_v20 = vadd.f32 %v4573_v2, %v2788_v63  ;;  %v2116_v45 = vshll.u32 %v4314_v0, 16  ;;  %v2114_v1 = vshrl.u32 %v4314_v0, 16 }
 0x264   : > { %v4465_v7 = vpop.f32.mrf.mxu1 }
 0x265   : > { %v2793_v29 = vadd.f32 %v4464_v19, %v6454_v31  ;;  %v4584_v60 = vpop.f32.mrf.mxu0  ;;  %v2118_v63 = vrot.slane %v2116_v45, 1 }
 0x266   : > { %v4466_v6 = vpop.f32.mrf.mxu1  ;;  %v4585_v54 = vadd.f32 %v4584_v60, %v4583_v17  ;;  %v6493_v17 = vld [vmem:[#allocation2 + $0xd4] ss:$0 sps:$4 sm:$0x11]  }
 0x267   : > { %v4467_v30 = vadd.f32 %v4466_v6, %v4465_v7  ;;  %v6471_v23 = vadd.f32 %v4576_v28, %v2793_v29  ;;  %v2119_v6 = vor.u32 %v2118_v63, %v2114_v1 }
 0x268   : > { %v4586_v47 = vpop.f32.mrf.mxu0  ;;  %3354 = vmatmul.mubr.bf16.gmra.mxu0 %v6357_v8  ;;  %v4468_v44 = vpop.f32.mrf.mxu1  ;;  %3185 = vmatmul.mubr.bf16.gmra.mxu1 %v6362_v39  ;;  %v6479_v8 = vld [vmem:[#allocation2 + $0xd0] sm:$0xf] }
 0x269   : > { %3361 = vmatprep.mubr.bf16.mxu0 %v6398_v14  ;;  %v2796_v22 = vadd.f32 %v4467_v30, %v6454_v31  ;;  %3192 = vmatprep.mubr.bf16.mxu1 %v6367_v12  ;;  %v4318_v41 = vcombine.low %v1532_v18, %v6479_v8 }
 0x26a   : > { %v4587_v43 = vpop.f32.mrf.mxu0  ;;  %v4469_v21 = vpop.f32.mrf.mxu1 }
 0x26b   : > { %v4588_v2 = vadd.f32 %v4587_v43, %v4586_v47  ;;  %v4470_v33 = vadd.f32 %v4469_v21, %v4468_v44  ;;  %v6481_v28 = vadd.f32 %v4579_v59, %v2796_v22  ;;  %v2150_v7 = vshll.u32 %v4318_v41, 16 }
 0x26c   : > { %v4589_v46 = vpop.f32.mrf.mxu0  ;;  %v4471_v39 = vpop.f32.mrf.mxu1  ;;  %v2148_v44 = vshrl.u32 %v4318_v41, 16  ;;  %v2155_v43 = vshll.u32 %v6493_v17, 16 }
 0x26d   : > { %v2801_v36 = vadd.f32 %v4470_v33, %v6454_v31  ;;  %v2152_v22 = vrot.slane %v2150_v7, 1 }
 0x26e   : > { %v4590_v61 = vpop.f32.mrf.mxu0  ;;  %v4472_v15 = vpop.f32.mrf.mxu1 }
 0x26f   : > { %v4591_v48 = vadd.f32 %v4590_v61, %v4589_v46  ;;  %v4473_v52 = vadd.f32 %v4472_v15, %v4471_v39  ;;  %v6487_v57 = vadd.f32 %v4582_v58, %v2801_v36  ;;  %v2123_v58 = vrot.slane %v2121_v40, 1 }
 0x270   : > { %v4592_v51 = vpop.f32.mrf.mxu0  ;;  %3362 = vmatmul.mubr.bf16.gmra.mxu0 %v6369_v55  ;;  %v4474_v59 = vpop.f32.mrf.mxu1  ;;  %3193 = vmatmul.mubr.bf16.gmra.mxu1 %v6374_v16  ;;  %v2153_v41 = vor.u32 %v2152_v22, %v2148_v44  ;;  %v2157_v15 = vrot.slane %v2155_v43, 1  ;;  %v5376_v43 = vld [vmem:[#allocation2 + $0xcc] sm:$0xff]  }
 0x271   : > { %3369 = vmatprep.mubr.bf16.mxu0 %v6408_v50  ;;  %v2804_v3 = vadd.f32 %v4473_v52, %v6454_v31  ;;  %3200 = vmatprep.mubr.bf16.mxu1 %v6379_v24  ;;  %v6501_v45 = vsel %vm1777_vm4, %v2119_v6, %v2123_v58 }
 0x272   : > { %v4593_v19 = vpop.f32.mrf.mxu0  ;;  %v4475_v49 = vpop.f32.mrf.mxu1 }
 0x273   : > { %v4594_v29 = vadd.f32 %v4593_v19, %v4592_v51  ;;  %v4476_v55 = vadd.f32 %v4475_v49, %v4474_v59  ;;  %v6495_v30 = vadd.f32 %v4585_v54, %v2804_v3  ;;  %v2158_v3 = vsel %vm1777_vm4, %v2153_v41, %v2157_v15 }
 0x274   : > { %v4595_v60 = vpop.f32.mrf.mxu0  ;;  %v4477_v47 = vpop.f32.mrf.mxu1 }
 0x275   : > { %v2809_v16 = vadd.f32 %v4476_v55, %v6454_v31 }
 0x276   : > { %v4596_v0 = vpop.f32.mrf.mxu0  ;;  %v4478_v21 = vpop.f32.mrf.mxu1 }
 0x277   : > { %v4597_v18 = vadd.f32 %v4596_v0, %v4595_v60  ;;  %v4479_v33 = vadd.f32 %v4478_v21, %v4477_v47  ;;  %v6503_v39 = vadd.f32 %v4588_v2, %v2809_v16 }
 0x278   : > { %v4598_v46 = vpop.f32.mrf.mxu0  ;;  %3370 = vmatmul.mubr.bf16.gmra.mxu0 %v6381_v10  ;;  %v4480_v54 = vpop.f32.mrf.mxu1  ;;  %3201 = vmatmul.mubr.bf16.gmra.mxu1 %v6386_v32  ;;  %v1551_v32 = vld [vmem:[#allocation2 + $0xc0] sm:$0xe] }
 0x279   : > { %3377 = vmatprep.mubr.bf16.mxu0 %v6501_v45  ;;  %v2812_v36 = vadd.f32 %v4479_v33, %v6454_v31  ;;  %3208 = vmatprep.mubr.bf16.mxu1 %v6391_v38  ;;  %v2130_v33 = vrot.slane %v6477_v11, 1 }
 0x27a   : > { %v4599_v61 = vpop.f32.mrf.mxu0  ;;  %v4481_v40 = vpop.f32.mrf.mxu1 }
 0x27b   : > { %v4600_v52 = vadd.f32 %v4599_v61, %v4598_v46  ;;  %v4482_v10 = vadd.f32 %v4481_v40, %v4480_v54  ;;  %v6509_v1 = vadd.f32 %v4591_v48, %v2812_v36  ;;  %v4316_v48 = vcombine.low %v1551_v32, %v6466_v25 }
 0x27c   : > { %v4601_v51 = vpop.f32.mrf.mxu0  ;;  %v4483_v2 = vpop.f32.mrf.mxu1 }
 0x27d   : > { %v2817_v63 = vadd.f32 %v4482_v10, %v6454_v31 }
 0x27e   : > { %v4602_v59 = vpop.f32.mrf.mxu0  ;;  %v4484_v19 = vpop.f32.mrf.mxu1 }
 0x27f   : > { %v4603_v7 = vadd.f32 %v4602_v59, %v4601_v51  ;;  %v4485_v49 = vadd.f32 %v4484_v19, %v4483_v2  ;;  %v6514_v60 = vadd.f32 %v4594_v29, %v2817_v63  ;;  %v2129_v29 = vrot.slane %v4316_v48, 1 }
 0x280   : > { %v4604_v55 = vpop.f32.mrf.mxu0  ;;  %3378 = vmatmul.mubr.bf16.gmra.mxu0 %v6393_v34  ;;  %v4486_v6 = vpop.f32.mrf.mxu1  ;;  %3209 = vmatmul.mubr.bf16.gmra.mxu1 %v6398_v14 }
 0x281   : > { %3385 = vmatprep.mubr.bf16.mxu0 %v2158_v3  ;;  %v2820_v58 = vadd.f32 %v4485_v49, %v6454_v31  ;;  %3216 = vmatprep.mubr.bf16.mxu1 %v6403_v5 }
 0x282   : > { %v4605_v47 = vpop.f32.mrf.mxu0  ;;  %v4487_v16 = vpop.f32.mrf.mxu1 }
 0x283   : > { %v4606_v0 = vadd.f32 %v4605_v47, %v4604_v55  ;;  %v4488_v44 = vadd.f32 %v4487_v16, %v4486_v6  ;;  %v6520_v21 = vadd.f32 %v4597_v18, %v2820_v58  ;;  %v6528_v18 = vsel %vm2034_vm3, %v2129_v29, %v2130_v33 }
 0x284   : > { %v4607_v22 = vpop.f32.mrf.mxu0  ;;  %v4489_v34 = vpop.f32.mrf.mxu1 }
 0x285   : > { %v2825_v14 = vadd.f32 %v4488_v44, %v6454_v31 }
 0x286   : > { %v4608_v25 = vpop.f32.mrf.mxu0  ;;  %v4490_v46 = vpop.f32.mrf.mxu1 }
 0x287   : > { %v4609_v54 = vadd.f32 %v4608_v25, %v4607_v22  ;;  %v4491_v36 = vadd.f32 %v4490_v46, %v4489_v34  ;;  %v6524_v41 = vadd.f32 %v4600_v52, %v2825_v14 }
 0x288   : > { %v4610_v61 = vpop.f32.mrf.mxu0  ;;  %3386 = vmatmul.mubr.bf16.gmra.mxu0 %v5376_v43  ;;  %v4492_v15 = vpop.f32.mrf.mxu1  ;;  %3217 = vmatmul.mubr.bf16.gmra.mxu1 %v6408_v50 }
 0x289   : > { %5004 = vmatprep.mubr.bf16.mxu0 %v6099_v37  ;;  %v2828_v11 = vadd.f32 %v4491_v36, %v6454_v31  ;;  %3224 = vmatprep.mubr.bf16.mxu1 %v6528_v18 }
 0x28a   : > { %v4611_v40 = vpop.f32.mrf.mxu0  ;;  %v4493_v10 = vpop.f32.mrf.mxu1 }
 0x28b   : > { %v4612_v51 = vadd.f32 %v4611_v40, %v4610_v61  ;;  %v4494_v2 = vadd.f32 %v4493_v10, %v4492_v15  ;;  %v6533_v59 = vadd.f32 %v4603_v7, %v2828_v11 }
 0x28c   : > { %v4613_v63 = vpop.f32.mrf.mxu0  ;;  %v4495_v52 = vpop.f32.mrf.mxu1 }
 0x28d   : > { %v2833_v32 = vadd.f32 %v4494_v2, %v6454_v31 }
 0x28e   : > { %v4614_v50 = vpop.f32.mrf.mxu0  ;;  %v4496_v3 = vpop.f32.mrf.mxu1 }
 0x28f   : > { %v4615_v19 = vadd.f32 %v4614_v50, %v4613_v63  ;;  %v4497_v49 = vadd.f32 %v4496_v3, %v4495_v52  ;;  %v6537_v37 = vadd.f32 %v4606_v0, %v2833_v32  ;;  %v1552_v3 = vld [vmem:[#allocation2 + $0xcc] sm:$0xe] }
 0x290   : > { %v4616_v55 = vpop.f32.mrf.mxu0  ;;  %5005 = vmatmul.mubr.bf16.vlgmr.msra.gmra.mxu0 %v6123_v4  ;;  %v4498_v6 = vpop.f32.mrf.mxu1  ;;  %3225 = vmatmul.mubr.bf16.gmra.mxu1 %v6501_v45 }
 0x291   : > { %5008 = vmatprep.mubr.bf16.mxu0 %v6174_v9  ;;  %v2836_v7 = vadd.f32 %v4497_v49, %v6454_v31  ;;  %5020 = vmatprep.mubr.bf16.mxu1 %v6340_v56 }
 0x292   : > { %v4617_v48 = vpop.f32.mrf.mxu0  ;;  %v4499_v58 = vpop.f32.mrf.mxu1 }
 0x293   : > { %v4618_v47 = vadd.f32 %v4617_v48, %v4616_v55  ;;  %v4500_v16 = vadd.f32 %v4499_v58, %v4498_v6  ;;  %v6543_v22 = vadd.f32 %v4609_v54, %v2836_v7 }
 0x294   : > { %v4619_v44 = vpop.f32.mrf.mxu0  ;;  %v4501_v43 = vpop.f32.mrf.mxu1 }
 0x295   : > { %v2841_v4 = vadd.f32 %v4500_v16, %v6454_v31 }
 0x296   : > { %v4620_v0 = vpop.f32.mrf.mxu0  ;;  %v4502_v34 = vpop.f32.mrf.mxu1 }
 0x297   : > { %v4621_v29 = vadd.f32 %v4620_v0, %v4619_v44  ;;  %v4503_v45 = vadd.f32 %v4502_v34, %v4501_v43  ;;  %v6547_v9 = vadd.f32 %v4612_v51, %v2841_v4  ;;  %v2164_v0 = vrot.slane %v6493_v17, 1 }
 0x298   : > { %v4622_v33 = vpop.f32.mrf.mxu0  ;;  %5009 = vmatmul.mubr.bf16.gmra.mxu0 %v6193_v35  ;;  %v4504_v56 = vpop.f32.mrf.mxu1  ;;  %5021 = vmatmul.mubr.bf16.vlgmr.msra.gmra.mxu1 %v6355_v13 }
 0x299   : > { %5012 = vmatprep.mubr.bf16.mxu0 %v6239_v42  ;;  %v2844_v14 = vadd.f32 %v4503_v45, %v6454_v31  ;;  %5024 = vmatprep.mubr.bf16.mxu1 %v6367_v12 }
 0x29a   : > { %v4623_v25 = vpop.f32.mrf.mxu0  ;;  %v4505_v46 = vpop.f32.mrf.mxu1 }
 0x29b   : > { %v4624_v54 = vadd.f32 %v4623_v25, %v4622_v33  ;;  %v4506_v36 = vadd.f32 %v4505_v46, %v4504_v56  ;;  %v6553_v15 = vadd.f32 %v4615_v19, %v2844_v14 }
 0x29c   : > { %v4625_v61 = vpop.f32.mrf.mxu0  ;;  %v4507_v11 = vpop.f32.mrf.mxu1 }
 0x29d   : > { %v2849_v35 = vadd.f32 %v4506_v36, %v6454_v31 }
 0x29e   : > { %v4626_v40 = vpop.f32.mrf.mxu0  ;;  %v4508_v10 = vpop.f32.mrf.mxu1 }
 0x29f   : > { %v4627_v51 = vadd.f32 %v4626_v40, %v4625_v61  ;;  %v4509_v13 = vadd.f32 %v4508_v10, %v4507_v11  ;;  %v6557_v42 = vadd.f32 %v4618_v47, %v2849_v35 }
 0x2a0   : > { %v4628_v2 = vpop.f32.mrf.mxu0  ;;  %5013 = vmatmul.mubr.bf16.gmra.mxu0 %v6270_v26  ;;  %v4510_v12 = vpop.f32.mrf.mxu1  ;;  %5025 = vmatmul.mubr.bf16.gmra.mxu1 %v6379_v24  ;;  %v4320_v24 = vcombine.low %v1552_v3, %v6479_v8 }
 0x2a1   : > { %5016 = vmatprep.mubr.bf16.mxu0 %v6299_v27  ;;  %v2852_v63 = vadd.f32 %v4509_v13, %v6454_v31  ;;  %5028 = vmatprep.mubr.bf16.mxu1 %v6391_v38 }
 0x2a2   : > { %v4629_v52 = vpop.f32.mrf.mxu0  ;;  %v4511_v32 = vpop.f32.mrf.mxu1  ;;  %v2163_v4 = vrot.slane %v4320_v24, 1 }
 0x2a3   : > { %v4630_v50 = vadd.f32 %v4629_v52, %v4628_v2  ;;  %v4512_v19 = vadd.f32 %v4511_v32, %v4510_v12  ;;  %v6563_v55 = vadd.f32 %v4621_v29, %v2852_v63 }
 0x2a4   : > { %v4631_v49 = vpop.f32.mrf.mxu0  ;;  %v4513_v26 = vpop.f32.mrf.mxu1  ;;  %v2165_v14 = vsel %vm2034_vm3, %v2163_v4, %v2164_v0 }
 0x2a5   : > { %v2857_v6 = vadd.f32 %v4512_v19, %v6454_v31 }
 0x2a6   : > { %v4632_v7 = vpop.f32.mrf.mxu0  ;;  %v4514_v48 = vpop.f32.mrf.mxu1 }
 0x2a7   : > { %v4633_v27 = vadd.f32 %v4632_v7, %v4631_v49  ;;  %v4515_v58 = vadd.f32 %v4514_v48, %v4513_v26  ;;  %v6568_v38 = vadd.f32 %v4624_v54, %v2857_v6 }
 0x2a8   : > { %v4634_v47 = vpop.f32.mrf.mxu0  ;;  %5017 = vmatmul.mubr.bf16.gmra.mxu0 %v6317_v53  ;;  %v4516_v16 = vpop.f32.mrf.mxu1  ;;  %5029 = vmatmul.mubr.bf16.gmra.mxu1 %v6403_v5 }
 0x2a9   : > { %v2860_v44 = vadd.f32 %v4515_v58, %v6454_v31  ;;  %5032 = vmatprep.mubr.bf16.mxu1 %v6528_v18 }
 0x2aa   : > { %v4635_v43 = vpop.f32.mrf.mxu0  ;;  %v4517_v8 = vpop.f32.mrf.mxu1 }
 0x2ab   : > { %v4636_v34 = vadd.f32 %v4635_v43, %v4634_v47  ;;  %v4518_v29 = vadd.f32 %v4517_v8, %v4516_v16  ;;  %v6574_v33 = vadd.f32 %v4627_v51, %v2860_v44 }
 0x2ac   : > { %v4637_v45 = vpop.f32.mrf.mxu0  ;;  %v4519_v53 = vpop.f32.mrf.mxu1 }
 0x2ad   : > { %v2865_v56 = vadd.f32 %v4518_v29, %v6454_v31 }
 0x2ae   : > { %v4638_v5 = vpop.f32.mrf.mxu0  ;;  %v4520_v25 = vpop.f32.mrf.mxu1 }
 0x2af   : > { %v4639_v46 = vadd.f32 %v4638_v5, %v4637_v45  ;;  %v4521_v54 = vadd.f32 %v4520_v25, %v4519_v53  ;;  %v6578_v36 = vadd.f32 %v4630_v50, %v2865_v56  ;;  %v5378_v56 = vld [vmem:[#allocation12 + $0x38] sm:$0xff]  }
 0x2b0   : > { %v4640_v18 = vpop.f32.mrf.mxu0  ;;  %v4522_v61 = vpop.f32.mrf.mxu1  ;;  %5033 = vmatmul.mubr.bf16.gmra.mxu1 %v2165_v14  ;;  %5036 = vmatprep.subr.bf16.mxu1 %v5378_v56 }
 0x2b1   : > { %v2868_v17 = vadd.f32 %v4521_v54, %v6454_v31  ;;  %5037 = vmatpush3.bf16.msra.mxu1 %v5378_v56 }
 0x2b2   : > { %v4641_v11 = vpop.f32.mrf.mxu0  ;;  %v4523_v35 = vpop.f32.mrf.mxu1 }
 0x2b3   : > { %v4642_v40 = vadd.f32 %v4641_v11, %v4640_v18  ;;  %v4524_v10 = vadd.f32 %v4523_v35, %v4522_v61  ;;  %v6581_v13 = vadd.f32 %v4633_v27, %v2868_v17  ;;  %v5379_v11 = vld [vmem:[#allocation12 + $0x30] sm:$0xff]  }
 0x2b4   : > { %v4643_v51 = vpop.f32.mrf.mxu0  ;;  %v4525_v2 = vpop.f32.mrf.mxu1  ;;  %5038 = vmatprep.subr.bf16.mxu1 %v5379_v11 }
 0x2b5   : > { %v2873_v12 = vadd.f32 %v4524_v10, %v6454_v31  ;;  %5039 = vmatpush3.bf16.msra.mxu1 %v5379_v11 }
 0x2b6   : > { %v4644_v63 = vpop.f32.mrf.mxu0  ;;  %v4526_v52 = vpop.f32.mrf.mxu1 }
 0x2b7   : > { %v4645_v32 = vadd.f32 %v4644_v63, %v4643_v51  ;;  %v4527_v3 = vadd.f32 %v4526_v52, %v4525_v2  ;;  %v6584_v19 = vadd.f32 %v4636_v34, %v2873_v12 }
 0x2b8   : > { %v4646_v50 = vpop.f32.mrf.mxu0  ;;  %v4528_v49 = vpop.f32.mrf.mxu1 }
 0x2b9   : > { %v2876_v26 = vadd.f32 %v4527_v3, %v6454_v31 }
 0x2ba   : > { %v4647_v6 = vpop.f32.mrf.mxu0  ;;  %v4529_v7 = vpop.f32.mrf.mxu1 }
 0x2bb   : > { %v4648_v24 = vadd.f32 %v4647_v6, %v4646_v50  ;;  %v4530_v48 = vadd.f32 %v4529_v7, %v4528_v49  ;;  %v6587_v27 = vadd.f32 %v4639_v46, %v2876_v26 }
 0x2bc   : > { %v4649_v58 = vpop.f32.mrf.mxu0  ;;  %v4531_v47 = vpop.f32.mrf.mxu1 }
 0x2bd   : > { %v2881_v16 = vadd.f32 %v4530_v48, %v6454_v31 }
 0x2be   : > { %v4650_v44 = vpop.f32.mrf.mxu0  ;;  %v4532_v43 = vpop.f32.mrf.mxu1 }
 0x2bf   : > { %v4651_v4 = vadd.f32 %v4650_v44, %v4649_v58  ;;  %v4533_v0 = vadd.f32 %v4532_v43, %v4531_v47  ;;  %v6590_v34 = vadd.f32 %v4642_v40, %v2881_v16  ;;  %v5381_v58 = vld [vmem:[#allocation12 + $0x20] sm:$0xff]  }
 0x2c0   : > { %v4652_v8 = vpop.f32.mrf.mxu0  ;;  %v4534_v29 = vpop.f32.mrf.mxu1 }
 0x2c1   : > { %v2884_v45 = vadd.f32 %v4533_v0, %v6454_v31 }
 0x2c2   : > { %v4653_v53 = vpop.f32.mrf.mxu0  ;;  %v4535_v14 = vpop.f32.mrf.mxu1 }
 0x2c3   : > { %v4654_v5 = vadd.f32 %v4653_v53, %v4652_v8  ;;  %v4536_v25 = vadd.f32 %v4535_v14, %v4534_v29  ;;  %v6593_v54 = vadd.f32 %v4645_v32, %v2884_v45  ;;  %v5380_v32 = vld [vmem:[#allocation12 + $0x28] sm:$0xff]   ;;  %v5382_v45 = vld [vmem:[#allocation12 + $0x18] sm:$0xff]  }
 0x2c4   : > { %v4655_v46 = vpop.f32.mrf.mxu0  ;;  %v4537_v18 = vpop.f32.mrf.mxu1  ;;  %5040 = vmatprep.subr.bf16.mxu1 %v5380_v32 }
 0x2c5   : > { %v2889_v61 = vadd.f32 %v4536_v25, %v6454_v31  ;;  %5041 = vmatpush3.bf16.msra.mxu1 %v5380_v32 }
 0x2c6   : > { %v4656_v17 = vpop.f32.mrf.mxu0  ;;  %v4538_v35 = vpop.f32.mrf.mxu1  ;;  %5042 = vmatprep.subr.bf16.mxu1 %v5381_v58 }
 0x2c7   : > { %v4657_v40 = vadd.f32 %v4656_v17, %v4655_v46  ;;  %v4539_v10 = vadd.f32 %v4538_v35, %v4537_v18  ;;  %v6596_v2 = vadd.f32 %v4648_v24, %v2889_v61  ;;  %v5383_v17 = vld [vmem:[#allocation12 + $0x10] sm:$0xff]  }
 0x2c8   : > { %v4658_v51 = vpop.f32.mrf.mxu0  ;;  %v4540_v12 = vpop.f32.mrf.mxu1 }
 0x2c9   : > { %v2892_v63 = vadd.f32 %v4539_v10, %v6454_v31  ;;  %5043 = vmatpush3.bf16.msra.mxu1 %v5381_v58 }
 0x2ca   : > { %v4659_v52 = vpop.f32.mrf.mxu0  ;;  %v4541_v3 = vpop.f32.mrf.mxu1  ;;  %5044 = vmatprep.subr.bf16.mxu1 %v5382_v45 }
 0x2cb   : > { %v4660_v50 = vadd.f32 %v4659_v52, %v4658_v51  ;;  %v4542_v49 = vadd.f32 %v4541_v3, %v4540_v12  ;;  %v6599_v6 = vadd.f32 %v4651_v4, %v2892_v63 }
 0x2cc   : > { %v4661_v26 = vpop.f32.mrf.mxu0  ;;  %v4543_v7 = vpop.f32.mrf.mxu1 }
 0x2cd   : > { %v2897_v48 = vadd.f32 %v4542_v49, %v6454_v31  ;;  %5045 = vmatpush3.bf16.msra.mxu1 %v5382_v45 }
 0x2ce   : > { %v4662_v24 = vpop.f32.mrf.mxu0  ;;  %v4544_v47 = vpop.f32.mrf.mxu1  ;;  %5046 = vmatprep.subr.bf16.mxu1 %v5383_v17 }
 0x2cf   : > { %v4663_v16 = vadd.f32 %v4662_v24, %v4661_v26  ;;  %v4545_v44 = vadd.f32 %v4544_v47, %v4543_v7  ;;  %v6602_v0 = vadd.f32 %v4654_v5, %v2897_v48  ;;  %v5384_v48 = vld [vmem:[#allocation12 + $0x8] sm:$0xff]  }
 0x2d0   : > { %v4792_v43 = vpop.f32.mrf.mxu0  ;;  %v4546_v8 = vpop.f32.mrf.mxu1 }
 0x2d1   : > { %v2900_v29 = vadd.f32 %v4545_v44, %v6454_v31  ;;  %5047 = vmatpush3.bf16.msra.mxu1 %v5383_v17 }
 0x2d2   : > { %v4793_v4 = vpop.f32.mrf.mxu0  ;;  %v4547_v53 = vpop.f32.mrf.mxu1  ;;  %5048 = vmatprep.subr.bf16.mxu1 %v5384_v48 }
 0x2d3   : > { %v4794_v56 = vadd.f32 %v4793_v4, %v4792_v43  ;;  %v4548_v14 = vadd.f32 %v4547_v53, %v4546_v8  ;;  %v6605_v46 = vadd.f32 %v4657_v40, %v2900_v29  ;;  %v5385_v53 = vld [vmem:[#allocation12] sm:$0xff]  }
 0x2d4   : > { %v4795_v25 = vpop.f32.mrf.mxu0  ;;  %v4549_v18 = vpop.f32.mrf.mxu1 }
 0x2d5   : > { %v2905_v61 = vadd.f32 %v4548_v14, %v6454_v31  ;;  %5049 = vmatpush3.bf16.msra.mxu1 %v5384_v48 }
 0x2d6   : > { %v4796_v5 = vpop.f32.mrf.mxu0  ;;  %v4550_v11 = vpop.f32.mrf.mxu1  ;;  %5050 = vmatprep.subr.bf16.mxu1 %v5385_v53 }
 0x2d7   : > { %v4797_v35 = vadd.f32 %v4796_v5, %v4795_v25  ;;  %v4551_v10 = vadd.f32 %v4550_v11, %v4549_v18  ;;  %v6608_v12 = vadd.f32 %v4660_v50, %v2905_v61 }
 0x2d8   : > { %v4798_v51 = vpop.f32.mrf.mxu0  ;;  %v4680_v63 = vpop.f32.mrf.mxu1 }
 0x2d9   : > { %v2908_v52 = vadd.f32 %v4551_v10, %v6454_v31  ;;  %5051 = vmatpush3.bf16.msra.mxu1 %v5385_v53 }
 0x2da   : > { %v4799_v40 = vpop.f32.mrf.mxu0  ;;  %v4681_v32 = vpop.f32.mrf.mxu1 }
 0x2db   : > { %v4800_v3 = vadd.f32 %v4799_v40, %v4798_v51  ;;  %v4682_v49 = vadd.f32 %v4681_v32, %v4680_v63  ;;  %v6611_v7 = vadd.f32 %v4663_v16, %v2908_v52 }
 0x2dc   : > { %v4801_v26 = vpop.f32.mrf.mxu0  ;;  %v4683_v24 = vpop.f32.mrf.mxu1 }
 0x2dd   : > { %v3107_v58 = vadd.f32 %v4682_v49, %v6458_v62 }
 0x2de   : > { %v4802_v47 = vpop.f32.mrf.mxu0  ;;  %v4684_v50 = vpop.f32.mrf.mxu1 }
 0x2df   : > { %v4803_v44 = vadd.f32 %v4802_v47, %v4801_v26  ;;  %v4685_v43 = vadd.f32 %v4684_v50, %v4683_v24  ;;  %v6614_v29 = vadd.f32 %v4794_v56, %v3107_v58 }
 0x2e0   : > { %v4804_v8 = vpop.f32.mrf.mxu0  ;;  %v4686_v31 = vpop.f32.mrf.mxu1 }
 0x2e1   : > { %v3110_v4 = vadd.f32 %v4685_v43, %v6464_v20 }
 0x2e2   : > { %v4805_v45 = vpop.f32.mrf.mxu0  ;;  %v4687_v16 = vpop.f32.mrf.mxu1 }
 0x2e3   : > { %v4806_v14 = vadd.f32 %v4805_v45, %v4804_v8  ;;  %v4688_v25 = vadd.f32 %v4687_v16, %v4686_v31  ;;  %v6617_v61 = vadd.f32 %v4797_v35, %v3110_v4 }
 0x2e4   : > { %v4807_v18 = vpop.f32.mrf.mxu0  ;;  %v4689_v62 = vpop.f32.mrf.mxu1 }
 0x2e5   : > { %v3115_v5 = vadd.f32 %v4688_v25, %v6471_v23 }
 0x2e6   : > { %v4808_v17 = vpop.f32.mrf.mxu0  ;;  %v4690_v11 = vpop.f32.mrf.mxu1 }
 0x2e7   : > { %v4809_v56 = vadd.f32 %v4808_v17, %v4807_v18  ;;  %v4691_v10 = vadd.f32 %v4690_v11, %v4689_v62  ;;  %v6620_v63 = vadd.f32 %v4800_v3, %v3115_v5 }
 0x2e8   : > { %v4810_v51 = vpop.f32.mrf.mxu0  ;;  %v4692_v20 = vpop.f32.mrf.mxu1 }
 0x2e9   : > { %v3118_v52 = vadd.f32 %v4691_v10, %v6481_v28 }
 0x2ea   : > { %v4811_v40 = vpop.f32.mrf.mxu0  ;;  %v4693_v32 = vpop.f32.mrf.mxu1 }
 0x2eb   : > { %v4812_v49 = vadd.f32 %v4811_v40, %v4810_v51  ;;  %v4694_v35 = vadd.f32 %v4693_v32, %v4692_v20  ;;  %v6623_v48 = vadd.f32 %v4803_v44, %v3118_v52 }
 0x2ec   : > { %v4813_v26 = vpop.f32.mrf.mxu0  ;;  %v4695_v24 = vpop.f32.mrf.mxu1 }
 0x2ed   : > { %v3123_v23 = vadd.f32 %v4694_v35, %v6487_v57 }
 0x2ee   : > { %v4814_v58 = vpop.f32.mrf.mxu0  ;;  %v4696_v47 = vpop.f32.mrf.mxu1 }
 0x2ef   : > { %v4815_v50 = vadd.f32 %v4814_v58, %v4813_v26  ;;  %v4697_v43 = vadd.f32 %v4696_v47, %v4695_v24  ;;  %v6626_v3 = vadd.f32 %v4806_v14, %v3123_v23 }
 0x2f0   : > { %v4816_v8 = vpop.f32.mrf.mxu0  ;;  %v4698_v31 = vpop.f32.mrf.mxu1 }
 0x2f1   : > { %v3126_v28 = vadd.f32 %v4697_v43, %v6495_v30 }
 0x2f2   : > { %v4817_v4 = vpop.f32.mrf.mxu0  ;;  %v4699_v45 = vpop.f32.mrf.mxu1 }
 0x2f3   : > { %v4818_v53 = vadd.f32 %v4817_v4, %v4816_v8  ;;  %v4700_v16 = vadd.f32 %v4699_v45, %v4698_v31  ;;  %v6629_v44 = vadd.f32 %v4809_v56, %v3126_v28 }
 0x2f4   : > { %v4819_v25 = vpop.f32.mrf.mxu0  ;;  %v4701_v18 = vpop.f32.mrf.mxu1 }
 0x2f5   : > { %v3131_v57 = vadd.f32 %v4700_v16, %v6503_v39 }
 0x2f6   : > { %v4820_v62 = vpop.f32.mrf.mxu0  ;;  %v4702_v5 = vpop.f32.mrf.mxu1 }
 0x2f7   : > { %v4821_v17 = vadd.f32 %v4820_v62, %v4819_v25  ;;  %v4703_v11 = vadd.f32 %v4702_v5, %v4701_v18  ;;  %v6632_v14 = vadd.f32 %v4812_v49, %v3131_v57 }
 0x2f8   : > { %v4822_v10 = vpop.f32.mrf.mxu0  ;;  %v4704_v51 = vpop.f32.mrf.mxu1 }
 0x2f9   : > { %v3134_v30 = vadd.f32 %v4703_v11, %v6509_v1 }
 0x2fa   : > { %v4823_v20 = vpop.f32.mrf.mxu0  ;;  %v4705_v52 = vpop.f32.mrf.mxu1 }
 0x2fb   : > { %v4824_v40 = vadd.f32 %v4823_v20, %v4822_v10  ;;  %v4706_v32 = vadd.f32 %v4705_v52, %v4704_v51  ;;  %v6635_v56 = vadd.f32 %v4815_v50, %v3134_v30 }
 0x2fc   : > { %v4825_v35 = vpop.f32.mrf.mxu0  ;;  %v4707_v26 = vpop.f32.mrf.mxu1 }
 0x2fd   : > { %v3139_v39 = vadd.f32 %v4706_v32, %v6514_v60 }
 0x2fe   : > { %v4826_v24 = vpop.f32.mrf.mxu0  ;;  %v4708_v23 = vpop.f32.mrf.mxu1 }
 0x2ff   : > { %v4827_v58 = vadd.f32 %v4826_v24, %v4825_v35  ;;  %v4709_v47 = vadd.f32 %v4708_v23, %v4707_v26  ;;  %v6638_v49 = vadd.f32 %v4818_v53, %v3139_v39 }
 0x300   : > { %v4828_v43 = vpop.f32.mrf.mxu0  ;;  %v4710_v8 = vpop.f32.mrf.mxu1 }
 0x301   : > { %v3142_v1 = vadd.f32 %v4709_v47, %v6520_v21 }
 0x302   : > { %v4829_v31 = vpop.f32.mrf.mxu0  ;;  %v4711_v28 = vpop.f32.mrf.mxu1 }
 0x303   : > { %v4830_v4 = vadd.f32 %v4829_v31, %v4828_v43  ;;  %v4712_v45 = vadd.f32 %v4711_v28, %v4710_v8  ;;  %v6641_v50 = vadd.f32 %v4821_v17, %v3142_v1 }
 0x304   : > { %v4831_v16 = vpop.f32.mrf.mxu0  ;;  %v4713_v25 = vpop.f32.mrf.mxu1 }
 0x305   : > { %v3147_v60 = vadd.f32 %v4712_v45, %v6524_v41 }
 0x306   : > { %v4832_v18 = vpop.f32.mrf.mxu0  ;;  %v4714_v57 = vpop.f32.mrf.mxu1 }
 0x307   : > { %v4833_v62 = vadd.f32 %v4832_v18, %v4831_v16  ;;  %v4715_v5 = vadd.f32 %v4714_v57, %v4713_v25  ;;  %v6644_v53 = vadd.f32 %v4824_v40, %v3147_v60 }
 0x308   : > { %v4834_v11 = vpop.f32.mrf.mxu0  ;;  %v4716_v10 = vpop.f32.mrf.mxu1 }
 0x309   : > { %v3150_v21 = vadd.f32 %v4715_v5, %v6533_v59 }
 0x30a   : > { %v4835_v51 = vpop.f32.mrf.mxu0  ;;  %v4717_v30 = vpop.f32.mrf.mxu1 }
 0x30b   : > { %v4836_v20 = vadd.f32 %v4835_v51, %v4834_v11  ;;  %v4718_v52 = vadd.f32 %v4717_v30, %v4716_v10  ;;  %v6647_v17 = vadd.f32 %v4827_v58, %v3150_v21 }
 0x30c   : > { %v4837_v32 = vpop.f32.mrf.mxu0  ;;  %v4719_v35 = vpop.f32.mrf.mxu1 }
 0x30d   : > { %v3155_v41 = vadd.f32 %v4718_v52, %v6537_v37 }
 0x30e   : > { %v4838_v26 = vpop.f32.mrf.mxu0  ;;  %v4720_v39 = vpop.f32.mrf.mxu1 }
 0x30f   : > { %v4839_v24 = vadd.f32 %v4838_v26, %v4837_v32  ;;  %v4721_v23 = vadd.f32 %v4720_v39, %v4719_v35  ;;  %v6650_v40 = vadd.f32 %v4830_v4, %v3155_v41 }
 0x310   : > { %v4840_v47 = vpop.f32.mrf.mxu0  ;;  %v4722_v43 = vpop.f32.mrf.mxu1 }
 0x311   : > { %v3158_v59 = vadd.f32 %v4721_v23, %v6543_v22 }
 0x312   : > { %v4841_v8 = vpop.f32.mrf.mxu0  ;;  %v4723_v1 = vpop.f32.mrf.mxu1 }
 0x313   : > { %v4842_v31 = vadd.f32 %v4841_v8, %v4840_v47  ;;  %v4724_v28 = vadd.f32 %v4723_v1, %v4722_v43  ;;  %v6653_v58 = vadd.f32 %v4833_v62, %v3158_v59 }
 0x314   : > { %v4843_v45 = vpop.f32.mrf.mxu0  ;;  %v4725_v16 = vpop.f32.mrf.mxu1 }
 0x315   : > { %v3163_v37 = vadd.f32 %v4724_v28, %v6547_v9 }
 0x316   : > { %v4844_v25 = vpop.f32.mrf.mxu0  ;;  %v4726_v60 = vpop.f32.mrf.mxu1 }
 0x317   : > { %v4845_v18 = vadd.f32 %v4844_v25, %v4843_v45  ;;  %v4727_v57 = vadd.f32 %v4726_v60, %v4725_v16  ;;  %v6656_v4 = vadd.f32 %v4836_v20, %v3163_v37 }
 0x318   : > { %v4846_v5 = vpop.f32.mrf.mxu0  ;;  %v4728_v11 = vpop.f32.mrf.mxu1 }
 0x319   : > { %v3166_v22 = vadd.f32 %v4727_v57, %v6553_v15 }
 0x31a   : > { %v4847_v10 = vpop.f32.mrf.mxu0  ;;  %v4729_v21 = vpop.f32.mrf.mxu1 }
 0x31b   : > { %v4848_v51 = vadd.f32 %v4847_v10, %v4846_v5  ;;  %v4730_v30 = vadd.f32 %v4729_v21, %v4728_v11  ;;  %v6659_v62 = vadd.f32 %v4839_v24, %v3166_v22 }
 0x31c   : > { %v4849_v52 = vpop.f32.mrf.mxu0  ;;  %v4731_v32 = vpop.f32.mrf.mxu1 }
 0x31d   : > { %v3171_v9 = vadd.f32 %v4730_v30, %v6557_v42 }
 0x31e   : > { %v4850_v35 = vpop.f32.mrf.mxu0  ;;  %v4732_v41 = vpop.f32.mrf.mxu1 }
 0x31f   : > { %v4851_v26 = vadd.f32 %v4850_v35, %v4849_v52  ;;  %v4733_v39 = vadd.f32 %v4732_v41, %v4731_v32  ;;  %v6662_v20 = vadd.f32 %v4842_v31, %v3171_v9 }
 0x320   : > { %v4852_v23 = vpop.f32.mrf.mxu0  ;;  %v4734_v47 = vpop.f32.mrf.mxu1 }
 0x321   : > { %v3174_v15 = vadd.f32 %v4733_v39, %v6563_v55 }
 0x322   : > { %v4853_v43 = vpop.f32.mrf.mxu0  ;;  %v4735_v59 = vpop.f32.mrf.mxu1 }
 0x323   : > { %v4854_v8 = vadd.f32 %v4853_v43, %v4852_v23  ;;  %v4736_v1 = vadd.f32 %v4735_v59, %v4734_v47  ;;  %v6665_v24 = vadd.f32 %v4845_v18, %v3174_v15 }
 0x324   : > { %v4855_v28 = vpop.f32.mrf.mxu0  ;;  %v4737_v45 = vpop.f32.mrf.mxu1 }
 0x325   : > { %v3179_v42 = vadd.f32 %v4736_v1, %v6568_v38 }
 0x326   : > { %v4856_v16 = vpop.f32.mrf.mxu0  ;;  %v4738_v37 = vpop.f32.mrf.mxu1 }
 0x327   : > { %v4857_v25 = vadd.f32 %v4856_v16, %v4855_v28  ;;  %v4739_v60 = vadd.f32 %v4738_v37, %v4737_v45  ;;  %v6668_v31 = vadd.f32 %v4848_v51, %v3179_v42 }
 0x328   : > { %v4858_v57 = vpop.f32.mrf.mxu0  ;;  %v4740_v5 = vpop.f32.mrf.mxu1 }
 0x329   : > { %v3182_v55 = vadd.f32 %v4739_v60, %v6574_v33 }
 0x32a   : > { %v4859_v11 = vpop.f32.mrf.mxu0  ;;  %v4741_v22 = vpop.f32.mrf.mxu1 }
 0x32b   : > { %v4860_v10 = vadd.f32 %v4859_v11, %v4858_v57  ;;  %v4742_v21 = vadd.f32 %v4741_v22, %v4740_v5  ;;  %v6671_v18 = vadd.f32 %v4851_v26, %v3182_v55 }
 0x32c   : > { %v4861_v30 = vpop.f32.mrf.mxu0  ;;  %v4743_v52 = vpop.f32.mrf.mxu1 }
 0x32d   : > { %v3187_v38 = vadd.f32 %v4742_v21, %v6578_v36 }
 0x32e   : > { %v4862_v32 = vpop.f32.mrf.mxu0  ;;  %v4744_v9 = vpop.f32.mrf.mxu1 }
 0x32f   : > { %v4863_v35 = vadd.f32 %v4862_v32, %v4861_v30  ;;  %v4745_v41 = vadd.f32 %v4744_v9, %v4743_v52  ;;  %v6674_v51 = vadd.f32 %v4854_v8, %v3187_v38 }
 0x330   : > { %v4864_v39 = vpop.f32.mrf.mxu0  ;;  %v4746_v23 = vpop.f32.mrf.mxu1 }
 0x331   : > { %v3190_v33 = vadd.f32 %v4745_v41, %v6581_v13 }
 0x332   : > { %v4865_v47 = vpop.f32.mrf.mxu0  ;;  %v4747_v15 = vpop.f32.mrf.mxu1 }
 0x333   : > { %v4866_v43 = vadd.f32 %v4865_v47, %v4864_v39  ;;  %v4748_v59 = vadd.f32 %v4747_v15, %v4746_v23  ;;  %v6677_v26 = vadd.f32 %v4857_v25, %v3190_v33 }
 0x334   : > { %v4867_v1 = vpop.f32.mrf.mxu0  ;;  %v4749_v28 = vpop.f32.mrf.mxu1 }
 0x335   : > { %v3195_v36 = vadd.f32 %v4748_v59, %v6584_v19 }
 0x336   : > { %v4868_v45 = vpop.f32.mrf.mxu0  ;;  %v4750_v42 = vpop.f32.mrf.mxu1 }
 0x337   : > { %v4869_v16 = vadd.f32 %v4868_v45, %v4867_v1  ;;  %v4751_v37 = vadd.f32 %v4750_v42, %v4749_v28  ;;  %v6680_v8 = vadd.f32 %v4860_v10, %v3195_v36 }
 0x338   : > { %v4870_v60 = vpop.f32.mrf.mxu0  ;;  %v4752_v57 = vpop.f32.mrf.mxu1 }
 0x339   : > { %v3198_v13 = vadd.f32 %v4751_v37, %v6587_v27 }
 0x33a   : > { %v4871_v5 = vpop.f32.mrf.mxu0  ;;  %v4753_v55 = vpop.f32.mrf.mxu1 }
 0x33b   : > { %v4872_v11 = vadd.f32 %v4871_v5, %v4870_v60  ;;  %v4754_v22 = vadd.f32 %v4753_v55, %v4752_v57  ;;  %v6683_v25 = vadd.f32 %v4863_v35, %v3198_v13 }
 0x33c   : > { %v4873_v21 = vpop.f32.mrf.mxu0  ;;  %v4755_v30 = vpop.f32.mrf.mxu1 }
 0x33d   : > { %v3203_v19 = vadd.f32 %v4754_v22, %v6590_v34 }
 0x33e   : > { %v4874_v52 = vpop.f32.mrf.mxu0  ;;  %v4756_v38 = vpop.f32.mrf.mxu1 }
 0x33f   : > { %v4875_v32 = vadd.f32 %v4874_v52, %v4873_v21  ;;  %v4757_v9 = vadd.f32 %v4756_v38, %v4755_v30  ;;  %v6686_v10 = vadd.f32 %v4866_v43, %v3203_v19 }
 0x340   : > { %v4876_v41 = vpop.f32.mrf.mxu0  ;;  %v4758_v39 = vpop.f32.mrf.mxu1 }
 0x341   : > { %v3206_v27 = vadd.f32 %v4757_v9, %v6593_v54 }
 0x342   : > { %v4877_v23 = vpop.f32.mrf.mxu0  ;;  %v4759_v33 = vpop.f32.mrf.mxu1 }
 0x343   : > { %v4878_v47 = vadd.f32 %v4877_v23, %v4876_v41  ;;  %v4760_v15 = vadd.f32 %v4759_v33, %v4758_v39  ;;  %v6689_v35 = vadd.f32 %v4869_v16, %v3206_v27 }
 0x344   : > { %v4879_v59 = vpop.f32.mrf.mxu0  ;;  %v4761_v1 = vpop.f32.mrf.mxu1 }
 0x345   : > { %v3211_v34 = vadd.f32 %v4760_v15, %v6596_v2 }
 0x346   : > { %v4880_v28 = vpop.f32.mrf.mxu0  ;;  %v4762_v36 = vpop.f32.mrf.mxu1 }
 0x347   : > { %v4763_v45 = vadd.f32 %v4762_v36, %v4761_v1  ;;  %v6692_v37 = vadd.f32 %v4872_v11, %v3211_v34 }
 0x348   : > { %v4882_v42 = vpop.f32.mrf.mxu0  ;;  %v4764_v43 = vpop.f32.mrf.mxu1 }
 0x349   : > { %v3214_v60 = vadd.f32 %v4763_v45, %v6599_v6  ;;  %v4881_v6 = vadd.f32 %v4880_v28, %v4879_v59 }
 0x34a   : > { %v4883_v54 = vpop.f32.mrf.mxu0  ;;  %v4765_v57 = vpop.f32.mrf.mxu1 }
 0x34b   : > { %v4884_v13 = vadd.f32 %v4883_v54, %v4882_v42  ;;  %v4766_v5 = vadd.f32 %v4765_v57, %v4764_v43  ;;  %v6697_v16 = vadd.f32 %v4875_v32, %v3214_v60 }
 0x34c   : > { %v6695_v55 = vpop.f32.mrf.mxu0  ;;  %v4767_v22 = vpop.f32.mrf.mxu1 }
 0x34d   : > { %v3219_v2 = vadd.f32 %v4766_v5, %v6602_v0 }
 0x34e   : > { %v6700_v21 = vpop.f32.mrf.mxu0  ;;  %v4768_v30 = vpop.f32.mrf.mxu1 }
 0x34f   : > { %v4769_v19 = vadd.f32 %v4768_v30, %v4767_v22  ;;  %v6702_v52 = vadd.f32 %v4878_v47, %v3219_v2 }
 0x350   : > { %v5006_v11 = vpop.f32.mrf.mxu0  ;;  %v4770_v38 = vpop.f32.mrf.mxu1 }
 0x351   : > { %v3222_v9 = vadd.f32 %v4769_v19, %v6605_v46  ;;  %v3437_v27 = vadd.f32 %v5006_v11, %v6620_v63 }
 0x352   : > { %v3428_v41 = vpop.f32.mrf.mxu0  ;;  %v4771_v39 = vpop.f32.mrf.mxu1 }
 0x353   : > { %v4772_v32 = vadd.f32 %v4771_v39, %v4770_v38  ;;  %v6706_v33 = vadd.f32 %v4881_v6, %v3222_v9  ;;  %v3429_v15 = vadd.f32 %v3428_v41, %v6614_v29  ;;  %v3557_v59 = vmax.f32 %v3437_v27, 0.0 }
 0x354   : > { %v5007_v23 = vpop.f32.mrf.mxu0  ;;  %v6708_v0 = vpop.f32.mrf.mxu1 }
 0x355   : > { %v3440_v1 = vadd.f32 %v5007_v23, %v6623_v48  ;;  %v3227_v47 = vadd.f32 %v4772_v32, %v6608_v12  ;;  %v3555_v42 = vmax.f32 %v3429_v15, 0.0 }
 0x356   : > { %v3431_v34 = vpop.f32.mrf.mxu0  ;;  %v6713_v28 = vpop.f32.mrf.mxu1 }
 0x357   : > { %v3558_v46 = vmax.f32 %v3440_v1, 0.0  ;;  %v3432_v36 = vadd.f32 %v3431_v34, %v6617_v61  ;;  %v6716_v45 = vadd.f32 %v4884_v13, %v3227_v47 }
 0x358   : > { %v5010_v63 = vpop.f32.mrf.mxu0  ;;  %v5022_v60 = vpop.f32.mrf.mxu1 }
 0x359   : > { %v3588_v43 = vpack.c.bf16 %v3558_v46, %v3557_v59  ;;  %v3556_v54 = vmax.f32 %v3432_v36, 0.0  ;;  %v3453_v48 = vadd.f32 %v5010_v63, %v6632_v14  ;;  %v3501_v12 = vadd.f32 %v5022_v60, %v6668_v31 }
 0x35a   : > { %v3444_v57 = vpop.f32.mrf.mxu0  ;;  %v3492_v5 = vpop.f32.mrf.mxu1 }
 0x35b   : > { %v3587_v29 = vpack.c.bf16 %v3556_v54, %v3555_v42  ;;  %v3445_v30 = vadd.f32 %v3444_v57, %v6626_v3  ;;  %v3493_v13 = vadd.f32 %v3492_v5, %v6662_v20  ;;  %v3561_v38 = vmax.f32 %v3453_v48, 0.0 }
 0x35c   : > { %v5011_v22 = vpop.f32.mrf.mxu0  ;;  %v5023_v2 = vpop.f32.mrf.mxu1  ;;  %v3573_v41 = vmax.f32 %v3501_v12, 0.0 }
 0x35d   : > { %v3456_v61 = vadd.f32 %v5011_v22, %v6635_v56  ;;  %5052 = vmatprep.mubr.bf16.mxu1 %v3587_v29  ;;  %v3504_v19 = vadd.f32 %v5023_v2, %v6671_v18  ;;  %v3559_v3 = vmax.f32 %v3445_v30, 0.0  ;;  %v3571_v15 = vmax.f32 %v3493_v13, 0.0 }
 0x35e   : > { %v3447_v11 = vpop.f32.mrf.mxu0  ;;  %5053 = vmatmul.mubr.bf16.vlgmr.msra.gmra.mxu1 %v3588_v43  ;;  %v3495_v6 = vpop.f32.mrf.mxu1 }
 0x35f   : > { %v3562_v9 = vmax.f32 %v3456_v61, 0.0  ;;  %v3448_v14 = vadd.f32 %v3447_v11, %v6629_v44  ;;  %v3574_v31 = vmax.f32 %v3504_v19, 0.0  ;;  %v3496_v39 = vadd.f32 %v3495_v6, %v6665_v24 }
 0x360   : > { %v5014_v27 = vpop.f32.mrf.mxu0  ;;  %v5026_v56 = vpop.f32.mrf.mxu1 }
 0x361   : > { %v3590_v32 = vpack.c.bf16 %v3562_v9, %v3561_v38  ;;  %v3560_v23 = vmax.f32 %v3448_v14, 0.0  ;;  %v6726_v20 = vpack.c.bf16 %v3574_v31, %v3573_v41  ;;  %v3572_v18 = vmax.f32 %v3496_v39, 0.0 }
 0x362   : > { %v3460_v1 = vpop.f32.mrf.mxu0  ;;  %v3508_v34 = vpop.f32.mrf.mxu1  ;;  %v3469_v59 = vadd.f32 %v5014_v27, %v6644_v53  ;;  %v3517_v44 = vadd.f32 %v5026_v56, %v6680_v8 }
 0x363   : > { %v3589_v47 = vpack.c.bf16 %v3560_v23, %v3559_v3  ;;  %v6729_v46 = vpack.c.bf16 %v3572_v18, %v3571_v15  ;;  %v3461_v63 = vadd.f32 %v3460_v1, %v6638_v49  ;;  %v3509_v43 = vadd.f32 %v3508_v34, %v6674_v51 }
 0x364   : > { %v5015_v36 = vpop.f32.mrf.mxu0  ;;  %v5027_v24 = vpop.f32.mrf.mxu1  ;;  %v3565_v57 = vmax.f32 %v3469_v59, 0.0  ;;  %v3577_v48 = vmax.f32 %v3517_v44, 0.0 }
 0x365   : > { %v3472_v42 = vadd.f32 %v5015_v36, %v6647_v17  ;;  %5056 = vmatprep.mubr.bf16.mxu1 %v3589_v47  ;;  %v3520_v60 = vadd.f32 %v5027_v24, %v6683_v25  ;;  %v3563_v49 = vmax.f32 %v3461_v63, 0.0  ;;  %v3575_v61 = vmax.f32 %v3509_v43, 0.0 }
 0x366   : > { %v3463_v54 = vpop.f32.mrf.mxu0  ;;  %5057 = vmatmul.mubr.bf16.gmra.mxu1 %v3590_v32  ;;  %v3511_v29 = vpop.f32.mrf.mxu1 }
 0x367   : > { %v3566_v53 = vmax.f32 %v3472_v42, 0.0  ;;  %v3464_v5 = vadd.f32 %v3463_v54, %v6641_v50  ;;  %v3578_v8 = vmax.f32 %v3520_v60, 0.0  ;;  %v3512_v12 = vadd.f32 %v3511_v29, %v6677_v26 }
 0x368   : > { %v5018_v22 = vpop.f32.mrf.mxu0  ;;  %v5030_v17 = vpop.f32.mrf.mxu1  ;;  %v4775_v50 = vadd.f32 %v6713_v28, %v6708_v0 }
 0x369   : > { %v3592_v2 = vpack.c.bf16 %v3566_v53, %v3565_v57  ;;  %v3564_v30 = vmax.f32 %v3464_v5, 0.0  ;;  %v3598_v51 = vpack.c.bf16 %v3578_v8, %v3577_v48  ;;  %v3576_v13 = vmax.f32 %v3512_v12, 0.0  ;;  %v5407_v5 = vld [vmem:[%s5939_s12] sm:$0xff]  }
 0x36a   : > { %v3476_v25 = vpop.f32.mrf.mxu0  ;;  %v3524_v11 = vpop.f32.mrf.mxu1  ;;  %v3485_v38 = vadd.f32 %v5018_v22, %v6656_v4  ;;  %v3533_v9 = vadd.f32 %v5030_v17, %v6692_v37  ;;  %v3230_v37 = vadd.f32 %v4775_v50, %v6611_v7  ;;  %v3835_v48 = vunpack.c.l.bf16 %v5407_v5 }
 0x36b   : > { %v3591_v19 = vpack.c.bf16 %v3564_v30, %v3563_v49  ;;  %v3597_v6 = vpack.c.bf16 %v3576_v13, %v3575_v61  ;;  %v3477_v41 = vadd.f32 %v3476_v25, %v6650_v40  ;;  %v3525_v39 = vadd.f32 %v3524_v11, %v6686_v10  ;;  %v5408_v11 = vld [vmem:[%s5939_s12 + $0x18] sm:$0xff]  }
 0x36c   : > { %v5019_v26 = vpop.f32.mrf.mxu0  ;;  %v5031_v14 = vpop.f32.mrf.mxu1  ;;  %v3569_v4 = vmax.f32 %v3485_v38, 0.0  ;;  %v3581_v28 = vmax.f32 %v3533_v9, 0.0  ;;  %v4887_v10 = vadd.f32 %v6700_v21, %v6695_v55  ;;  %v3836_v61 = vunpack.c.h.bf16 %v5407_v5 }
 0x36d   : > { %v3488_v31 = vadd.f32 %v5019_v26, %v6659_v62  ;;  %5060 = vmatprep.mubr.bf16.mxu1 %v3591_v19  ;;  %v3536_v27 = vadd.f32 %v5031_v14, %v6697_v16  ;;  %v3567_v15 = vmax.f32 %v3477_v41, 0.0  ;;  %v3579_v16 = vmax.f32 %v3525_v39, 0.0  ;;  %v5409_v14 = vld [vmem:[%s5939_s12 + $0x10] sm:$0xff]  }
 0x36e   : > { %v3479_v3 = vpop.f32.mrf.mxu0  ;;  %5061 = vmatmul.mubr.bf16.gmra.mxu1 %v3592_v2  ;;  %v3527_v32 = vpop.f32.mrf.mxu1  ;;  %v3391_v7 = vadd.f32 %v4887_v10, %v3230_v37  ;;  %v3841_v38 = vunpack.c.l.bf16 %v5408_v11  ;;  %v3839_v41 = vunpack.c.l.bf16 %v5409_v14 }
 0x36f   : > { %v3570_v56 = vmax.f32 %v3488_v31, 0.0  ;;  %v3480_v0 = vadd.f32 %v3479_v3, %v6653_v58  ;;  %v3582_v23 = vmax.f32 %v3536_v27, 0.0  ;;  %v3528_v40 = vadd.f32 %v3527_v32, %v6689_v35 }
 0x370   : > { %v5034_v18 = vpop.f32.mrf.mxu1 }
 0x371   : > { %v3594_v62 = vpack.c.bf16 %v3570_v56, %v3569_v4  ;;  %v3568_v1 = vmax.f32 %v3480_v0, 0.0  ;;  %v3600_v47 = vpack.c.bf16 %v3582_v23, %v3581_v28  ;;  %v3580_v34 = vmax.f32 %v3528_v40, 0.0 }
 0x372   : > { %v3540_v44 = vpop.f32.mrf.mxu1  ;;  %v3549_v58 = vadd.f32 %v5034_v18, %v6716_v45  ;;  %v3842_v4 = vunpack.c.h.bf16 %v5408_v11  ;;  %v3840_v28 = vunpack.c.h.bf16 %v5409_v14  ;;  %v5410_v18 = vld [vmem:[%s5939_s12 + $0x28] sm:$0xff]  }
 0x373   : > { %v3593_v59 = vpack.c.bf16 %v3568_v1, %v3567_v15  ;;  %v3599_v36 = vpack.c.bf16 %v3580_v34, %v3579_v16  ;;  %v3541_v35 = vadd.f32 %v3540_v44, %v6702_v52  ;;  %v6759_v52 = vld [vmem:[%s6907_s8] ss:$0 sm:$0xff]  ;;  %v3845_v1 = vunpack.c.l.bf16 %v5410_v18 }
 0x374   : > { %v5035_v24 = vpop.f32.mrf.mxu1  ;;  %v3585_v55 = vmax.f32 %v3549_v58, 0.0 }
 0x375   : > { %5064 = vmatprep.mubr.bf16.mxu1 %v3593_v59  ;;  %v3552_v63 = vadd.f32 %v5035_v24, %v3391_v7  ;;  %v3583_v60 = vmax.f32 %v3541_v35, 0.0  ;;  %v5411_v59 = vld [vmem:[%s5939_s12 + $0x20] sm:$0xff]   ;;  %v3846_v35 = vunpack.c.h.bf16 %v5410_v18 }
 0x376   : > { %5065 = vmatmul.mubr.bf16.gmra.mxu1 %v3594_v62  ;;  %v3543_v42 = vpop.f32.mrf.mxu1  ;;  %v3843_v44 = vunpack.c.l.bf16 %v5411_v59 }
 0x377   : > { %5068 = vmatprep.mubr.bf16.mxu1 %v6729_v46  ;;  %v3586_v21 = vmax.f32 %v3552_v63, 0.0  ;;  %v3544_v43 = vadd.f32 %v3543_v42, %v6706_v33  ;;  %v5406_v33 = vld [vmem:[%s5939_s12 + $0x8] sm:$0xff]  }
 0x378   : > { %v3837_v46 = vunpack.c.l.bf16 %v5406_v33  ;;  %v3838_v22 = vunpack.c.h.bf16 %v5406_v33  ;;  %v5412_v33 = vld [vmem:[%s5939_s12 + $0x38] sm:$0xff]  }
 0x379   : > { %v3602_v54 = vpack.c.bf16 %v3586_v21, %v3585_v55  ;;  %v3584_v45 = vmax.f32 %v3544_v43, 0.0  ;;  %v3844_v43 = vunpack.c.h.bf16 %v5411_v59 }
 0x37b   : > { %v3601_v57 = vpack.c.bf16 %v3584_v45, %v3583_v60 }
 0x37e   : > { %5069 = vmatmul.mubr.bf16.gmra.mxu1 %v6726_v20 }
 0x37f   : > { %5072 = vmatprep.mubr.bf16.mxu1 %v3597_v6 }
 0x386   : > { %5073 = vmatmul.mubr.bf16.gmra.mxu1 %v3598_v51 }
 0x387   : > { %5076 = vmatprep.mubr.bf16.mxu1 %v3599_v36 }
 0x38e   : > { %5077 = vmatmul.mubr.bf16.gmra.mxu1 %v3600_v47 }
 0x38f   : > { %5080 = vmatprep.mubr.bf16.mxu1 %v3601_v57 }
 0x396   : > { %5081 = vmatmul.mubr.bf16.gmra.mxu1 %v3602_v54 }
 0x41e   : > { %v5054_v29 = vpop.f32.mrf.mxu1 }
 0x41f   : > { %v3717_v53 = vadd.f32 %v5054_v29, %v6759_v52 }
 0x420   : > { %v3708_v20 = vpop.f32.mrf.mxu1 }
 0x421   : > { %v3869_v8 = vadd.f32 %v3837_v46, %v3717_v53  ;;  %v3709_v12 = vadd.f32 %v6759_v52, %v3708_v20  ;;  %v3849_v46 = vunpack.c.l.bf16 %v5412_v33  ;;  %v5413_v20 = vld [vmem:[%s5939_s12 + $0x30] sm:$0xff]  }
 0x422   : > { %v5055_v49 = vpop.f32.mrf.mxu1 }
 0x423   : > { %v3901_v2 = vmax.f32 %v3869_v8, 0.0  ;;  %v3867_v17 = vadd.f32 %v3835_v48, %v3709_v12  ;;  %v3720_v30 = vadd.f32 %v5055_v49, %v6759_v52  ;;  %v3847_v8 = vunpack.c.l.bf16 %v5413_v20 }
 0x424   : > { %v3711_v51 = vpop.f32.mrf.mxu1 }
 0x425   : > { %3933 = vst [vmem:[%s6767_s26 + $0x10] sm:$0xff] %v3901_v2  ;;  %v3899_v13 = vmax.f32 %v3867_v17, 0.0  ;;  %v3870_v25 = vadd.f32 %v3838_v22, %v3720_v30  ;;  %v3712_v19 = vadd.f32 %v6759_v52, %v3711_v51  ;;  %v3850_v17 = vunpack.c.h.bf16 %v5412_v33 }
 0x426   : > { %v5058_v50 = vpop.f32.mrf.mxu1 }
 0x427   : > { %3931 = vst [vmem:[%s6767_s26] sm:$0xff] %v3899_v13  ;;  %v3902_v6 = vmax.f32 %v3870_v25, 0.0  ;;  %v3868_v9 = vadd.f32 %v3836_v61, %v3712_v19  ;;  %v3733_v26 = vadd.f32 %v5058_v50, %v6759_v52  ;;  %v3848_v25 = vunpack.c.h.bf16 %v5413_v20 }
 0x428   : > { %v3724_v31 = vpop.f32.mrf.mxu1 }
 0x429   : > { %3934 = vst [vmem:[%s6767_s26 + $0x18] sm:$0xff] %v3902_v6  ;;  %v3900_v39 = vmax.f32 %v3868_v9, 0.0  ;;  %v3873_v27 = vadd.f32 %v3841_v38, %v3733_v26  ;;  %v3725_v3 = vadd.f32 %v6759_v52, %v3724_v31  ;;  %v5414_v6 = vld [vmem:[%s5939_s12 + $0x48] sm:$0xff]  }
 0x42a   : > { %v5059_v32 = vpop.f32.mrf.mxu1  ;;  %v3853_v9 = vunpack.c.l.bf16 %v5414_v6 }
 0x42b   : > { %3932 = vst [vmem:[%s6767_s26 + $0x8] sm:$0xff] %v3900_v39  ;;  %v3905_v56 = vmax.f32 %v3873_v27, 0.0  ;;  %v3871_v0 = vadd.f32 %v3839_v41, %v3725_v3  ;;  %v3736_v37 = vadd.f32 %v5059_v32, %v6759_v52  ;;  %v5415_v39 = vld [vmem:[%s5939_s12 + $0x40] sm:$0xff]  }
 0x42c   : > { %v3727_v23 = vpop.f32.mrf.mxu1  ;;  %v3851_v27 = vunpack.c.l.bf16 %v5415_v39 }
 0x42d   : > { %3937 = vst [vmem:[%s6767_s26 + $0x30] sm:$0xff] %v3905_v56  ;;  %v3903_v40 = vmax.f32 %v3871_v0, 0.0  ;;  %v3874_v15 = vadd.f32 %v3842_v4, %v3736_v37  ;;  %v3728_v62 = vadd.f32 %v6759_v52, %v3727_v23  ;;  %v3854_v0 = vunpack.c.h.bf16 %v5414_v6 }
 0x42e   : > { %v5062_v10 = vpop.f32.mrf.mxu1 }
 0x42f   : > { %3935 = vst [vmem:[%s6767_s26 + $0x20] sm:$0xff] %v3903_v40  ;;  %v3906_v16 = vmax.f32 %v3874_v15, 0.0  ;;  %v3872_v47 = vadd.f32 %v3840_v28, %v3728_v62  ;;  %v3749_v34 = vadd.f32 %v5062_v10, %v6759_v52  ;;  %v3852_v15 = vunpack.c.h.bf16 %v5415_v39 }
 0x430   : > { %v3740_v36 = vpop.f32.mrf.mxu1 }
 0x431   : > { %3938 = vst [vmem:[%s6767_s26 + $0x38] sm:$0xff] %v3906_v16  ;;  %v3904_v58 = vmax.f32 %v3872_v47, 0.0  ;;  %v3877_v7 = vadd.f32 %v3845_v1, %v3749_v34  ;;  %v3741_v24 = vadd.f32 %v6759_v52, %v3740_v36  ;;  %v5416_v16 = vld [vmem:[%s5939_s12 + $0x58] sm:$0xff]  }
 0x432   : > { %v5063_v63 = vpop.f32.mrf.mxu1  ;;  %v3857_v47 = vunpack.c.l.bf16 %v5416_v16 }
 0x433   : > { %3936 = vst [vmem:[%s6767_s26 + $0x28] sm:$0xff] %v3904_v58  ;;  %v3909_v42 = vmax.f32 %v3877_v7, 0.0  ;;  %v3875_v55 = vadd.f32 %v3843_v44, %v3741_v24  ;;  %v3752_v21 = vadd.f32 %v5063_v63, %v6759_v52  ;;  %v5417_v58 = vld [vmem:[%s5939_s12 + $0x50] sm:$0xff]  }
 0x434   : > { %v3743_v60 = vpop.f32.mrf.mxu1  ;;  %v3855_v7 = vunpack.c.l.bf16 %v5417_v58 }
 0x435   : > { %3941 = vst [vmem:[%s6767_s26 + $0x50] sm:$0xff] %v3909_v42  ;;  %v3907_v54 = vmax.f32 %v3875_v55, 0.0  ;;  %v3878_v45 = vadd.f32 %v3846_v35, %v3752_v21  ;;  %v3744_v57 = vadd.f32 %v6759_v52, %v3743_v60  ;;  %v3858_v55 = vunpack.c.h.bf16 %v5416_v16 }
 0x436   : > { %v5066_v29 = vpop.f32.mrf.mxu1 }
 0x437   : > { %3939 = vst [vmem:[%s6767_s26 + $0x40] sm:$0xff] %v3907_v54  ;;  %v3910_v53 = vmax.f32 %v3878_v45, 0.0  ;;  %v3876_v5 = vadd.f32 %v3844_v43, %v3744_v57  ;;  %v3765_v48 = vadd.f32 %v5066_v29, %v6759_v52  ;;  %v3856_v45 = vunpack.c.h.bf16 %v5417_v58 }
 0x438   : > { %v3756_v12 = vpop.f32.mrf.mxu1 }
 0x439   : > { %3942 = vst [vmem:[%s6767_s26 + $0x58] sm:$0xff] %v3910_v53  ;;  %v3908_v22 = vmax.f32 %v3876_v5, 0.0  ;;  %v3881_v49 = vadd.f32 %v3849_v46, %v3765_v48  ;;  %v3757_v2 = vadd.f32 %v6759_v52, %v3756_v12  ;;  %v5418_v53 = vld [vmem:[%s5939_s12 + $0x68] sm:$0xff]  }
 0x43a   : > { %v5067_v30 = vpop.f32.mrf.mxu1  ;;  %v3861_v5 = vunpack.c.l.bf16 %v5418_v53 }
 0x43b   : > { %3940 = vst [vmem:[%s6767_s26 + $0x48] sm:$0xff] %v3908_v22  ;;  %v3913_v61 = vmax.f32 %v3881_v49, 0.0  ;;  %v3879_v51 = vadd.f32 %v3847_v8, %v3757_v2  ;;  %v3768_v13 = vadd.f32 %v5067_v30, %v6759_v52  ;;  %v5419_v22 = vld [vmem:[%s5939_s12 + $0x60] sm:$0xff]  }
 0x43c   : > { %v3759_v19 = vpop.f32.mrf.mxu1  ;;  %v3859_v49 = vunpack.c.l.bf16 %v5419_v22 }
 0x43d   : > { %3945 = vst [vmem:[%s6767_s26 + $0x70] sm:$0xff] %v3913_v61  ;;  %v3911_v11 = vmax.f32 %v3879_v51, 0.0  ;;  %v3882_v38 = vadd.f32 %v3850_v17, %v3768_v13  ;;  %v3760_v50 = vadd.f32 %v6759_v52, %v3759_v19  ;;  %v3862_v51 = vunpack.c.h.bf16 %v5418_v53 }
 0x43e   : > { %v5070_v26 = vpop.f32.mrf.mxu1 }
 0x43f   : > { %3943 = vst [vmem:[%s6767_s26 + $0x60] sm:$0xff] %v3911_v11  ;;  %v3914_v14 = vmax.f32 %v3882_v38, 0.0  ;;  %v3880_v41 = vadd.f32 %v3848_v25, %v3760_v50  ;;  %v3781_v31 = vadd.f32 %v5070_v26, %v6759_v52  ;;  %v3860_v38 = vunpack.c.h.bf16 %v5419_v22 }
 0x440   : > { %v3772_v3 = vpop.f32.mrf.mxu1 }
 0x441   : > { %3946 = vst [vmem:[%s6767_s26 + $0x78] sm:$0xff] %v3914_v14  ;;  %v3912_v4 = vmax.f32 %v3880_v41, 0.0  ;;  %v3885_v32 = vadd.f32 %v3853_v9, %v3781_v31  ;;  %v3773_v56 = vadd.f32 %v6759_v52, %v3772_v3  ;;  %v5420_v14 = vld [vmem:[%s5939_s12 + $0x78] sm:$0xff]  }
 0x442   : > { %v5071_v37 = vpop.f32.mrf.mxu1  ;;  %v3865_v41 = vunpack.c.l.bf16 %v5420_v14 }
 0x443   : > { %3944 = vst [vmem:[%s6767_s26 + $0x68] sm:$0xff] %v3912_v4  ;;  %v3917_v28 = vmax.f32 %v3885_v32, 0.0  ;;  %v3883_v23 = vadd.f32 %v3851_v27, %v3773_v56  ;;  %v3784_v40 = vadd.f32 %v5071_v37, %v6759_v52  ;;  %v5421_v4 = vld [vmem:[%s5939_s12 + $0x70] sm:$0xff]   ;;  %s6847_s12 = scalar_lea.hbm %s6960_s22, %s4412_s5 }
 0x444   : > { %v3775_v62 = vpop.f32.mrf.mxu1  ;;  %v3863_v32 = vunpack.c.l.bf16 %v5421_v4 }
 0x445   : > { %3949 = vst [vmem:[%s6767_s26 + $0x90] sm:$0xff] %v3917_v28  ;;  %v3915_v18 = vmax.f32 %v3883_v23, 0.0  ;;  %v3886_v1 = vadd.f32 %v3854_v0, %v3784_v40  ;;  %v3776_v10 = vadd.f32 %v6759_v52, %v3775_v62  ;;  %v3866_v23 = vunpack.c.h.bf16 %v5420_v14 }
 0x446   : > { %v5074_v34 = vpop.f32.mrf.mxu1 }
 0x447   : > { %3947 = vst [vmem:[%s6767_s26 + $0x80] sm:$0xff] %v3915_v18  ;;  %v3918_v59 = vmax.f32 %v3886_v1, 0.0  ;;  %v3884_v44 = vadd.f32 %v3852_v15, %v3776_v10  ;;  %v3797_v36 = vadd.f32 %v5074_v34, %v6759_v52  ;;  %v3864_v1 = vunpack.c.h.bf16 %v5421_v4 }
 0x448   : > { %v3788_v24 = vpop.f32.mrf.mxu1 }
 0x449   : > { %3950 = vst [vmem:[%s6767_s26 + $0x98] sm:$0xff] %v3918_v59  ;;  %v3916_v35 = vmax.f32 %v3884_v44, 0.0  ;;  %v3889_v63 = vadd.f32 %v3857_v47, %v3797_v36  ;;  %v3789_v42 = vadd.f32 %v6759_v52, %v3788_v24 }
 0x44a   : > { %v5075_v21 = vpop.f32.mrf.mxu1 }
 0x44b   : > { %3948 = vst [vmem:[%s6767_s26 + $0x88] sm:$0xff] %v3916_v35  ;;  %v3921_v43 = vmax.f32 %v3889_v63, 0.0  ;;  %v3887_v60 = vadd.f32 %v3855_v7, %v3789_v42  ;;  %v3800_v54 = vadd.f32 %v5075_v21, %v6759_v52 }
 0x44c   : > { %v3791_v57 = vpop.f32.mrf.mxu1 }
 0x44d   : > { %3953 = vst [vmem:[%s6767_s26 + $0xb0] sm:$0xff] %v3921_v43  ;;  %v3919_v33 = vmax.f32 %v3887_v60, 0.0  ;;  %v3890_v46 = vadd.f32 %v3858_v55, %v3800_v54  ;;  %v3792_v29 = vadd.f32 %v6759_v52, %v3791_v57 }
 0x44e   : > { %v5078_v48 = vpop.f32.mrf.mxu1 }
 0x44f   : > { %3951 = vst [vmem:[%s6767_s26 + $0xa0] sm:$0xff] %v3919_v33  ;;  %v3922_v20 = vmax.f32 %v3890_v46, 0.0  ;;  %v3888_v8 = vadd.f32 %v3856_v45, %v3792_v29  ;;  %v3813_v12 = vadd.f32 %v5078_v48, %v6759_v52 }
 0x450   : > { %v3804_v2 = vpop.f32.mrf.mxu1 }
 0x451   : > { %3954 = vst [vmem:[%s6767_s26 + $0xb8] sm:$0xff] %v3922_v20  ;;  %v3920_v17 = vmax.f32 %v3888_v8, 0.0  ;;  %v3893_v30 = vadd.f32 %v3861_v5, %v3813_v12  ;;  %v3805_v61 = vadd.f32 %v6759_v52, %v3804_v2 }
 0x452   : > { %v5079_v13 = vpop.f32.mrf.mxu1 }
 0x453   : > { %3952 = vst [vmem:[%s6767_s26 + $0xa8] sm:$0xff] %v3920_v17  ;;  %v3925_v25 = vmax.f32 %v3893_v30, 0.0  ;;  %v3891_v19 = vadd.f32 %v3859_v49, %v3805_v61  ;;  %v3816_v11 = vadd.f32 %v5079_v13, %v6759_v52 }
 0x454   : > { %v3807_v50 = vpop.f32.mrf.mxu1 }
 0x455   : > { %3957 = vst [vmem:[%s6767_s26 + $0xd0] sm:$0xff] %v3925_v25  ;;  %v3923_v6 = vmax.f32 %v3891_v19, 0.0  ;;  %v3894_v9 = vadd.f32 %v3862_v51, %v3816_v11  ;;  %v3808_v26 = vadd.f32 %v6759_v52, %v3807_v50 }
 0x456   : > { %v5082_v31 = vpop.f32.mrf.mxu1 }
 0x457   : > { %3955 = vst [vmem:[%s6767_s26 + $0xc0] sm:$0xff] %v3923_v6  ;;  %v3926_v39 = vmax.f32 %v3894_v9, 0.0  ;;  %v3892_v27 = vadd.f32 %v3860_v38, %v3808_v26  ;;  %v3829_v3 = vadd.f32 %v5082_v31, %v6759_v52 }
 0x458   : > { %v3820_v56 = vpop.f32.mrf.mxu1 }
 0x459   : > { %3958 = vst [vmem:[%s6767_s26 + $0xd8] sm:$0xff] %v3926_v39  ;;  %v3924_v0 = vmax.f32 %v3892_v27, 0.0  ;;  %v3897_v37 = vadd.f32 %v3865_v41, %v3829_v3  ;;  %v3821_v28 = vadd.f32 %v6759_v52, %v3820_v56 }
 0x45a   : > { %v5083_v40 = vpop.f32.mrf.mxu1 }
 0x45b   : > { %3956 = vst [vmem:[%s6767_s26 + $0xc8] sm:$0xff] %v3924_v0  ;;  %v3929_v15 = vmax.f32 %v3897_v37, 0.0  ;;  %v3895_v62 = vadd.f32 %v3863_v32, %v3821_v28  ;;  %v3832_v18 = vadd.f32 %v5083_v40, %v6759_v52 }
 0x45c   : > { %v3823_v10 = vpop.f32.mrf.mxu1 }
 0x45d   : > { %3961 = vst [vmem:[%s6767_s26 + $0xf0] sm:$0xff] %v3929_v15  ;;  %v3927_v16 = vmax.f32 %v3895_v62, 0.0  ;;  %v3898_v47 = vadd.f32 %v3866_v23, %v3832_v18  ;;  %v3824_v34 = vadd.f32 %v6759_v52, %v3823_v10 }
 0x45f   : > { %3959 = vst [vmem:[%s6767_s26 + $0xe0] sm:$0xff] %v3927_v16  ;;  %v3930_v59 = vmax.f32 %v3898_v47, 0.0  ;;  %v3896_v44 = vadd.f32 %v3864_v1, %v3824_v34 }
 0x461   : > { %3962 = vst [vmem:[%s6767_s26 + $0xf8] sm:$0xff] %v3930_v59  ;;  %v3928_v36 = vmax.f32 %v3896_v44, 0.0 }
 0x463   : > { %3960 = vst [vmem:[%s6767_s26 + $0xe8] sm:$0xff] %v3928_v36 }
 0x464   : > { %5597 = shalt.err (!%p5594_p10)
}
 0x465   : > { %s5598_s15 = scalar_lea.hbm %s6847_s12, 4096  ;;  %s5602_s13 = scalar_lea.hbm %s6960_s22, 8192 }
 0x466   : > { %p5599_p2 = scmp.ne.s32.totalorder %s6847_s12, %s5598_s15  ;;  %p5603_p0 = scmp.lt.s32.totalorder %s6847_s12, %s6960_s22 }
 0x467   : > { %p5604_p11 = scmp.lt.s32.totalorder %s5602_s13, %s5598_s15 }
 0x468   : > { %p5600_p7 = pnand %p5599_p2, %p5791_p8 }
 0x469   : > { %p5605_p9 = por %p5604_p11, %p5603_p0 }
 0x46a   : > { %p5601_p12 = pneg %p5600_p7 }
 0x46c   : > { %p5606_p6 = pnand %p5605_p9, %p5601_p12 }
 0x46e   : > { %5609 = shalt.err (!%p5606_p6)
}
 0x46f   : > { %s5688_s24 = smov 128   ;;  %s5689_s29 = smov 8  }
 0x470   : > { %5118 = dma.vmem_to_hbm [thread:$0]  (%p5791_p8), %s6849_s7, 4096, %s6847_s12, %s3964_s11, %s5688_s24, %s5688_s24, %s5689_s29  }
 0x471 PF: > { %s6961_s23 = sld [smem:[#allocation20_spill]]  ;;  %p6964_p3 = scmp.ge.s32.totalorder %s5676_s14, 2 }
 0x472   : > { %s6962_s26 = sld [smem:[#allocation25_spill]] }
 0x477   : > { %s3994_s28 = sand.u32 1, %s6961_s23  }
 0x478   : > { %p6963_p13 = scmp.ne.s32.totalorder %s6962_s26, 0  ;;  %s3995_s5 = scalar_lea.sflag [#allocation5], %s3994_s28 }
 0x47a   : > { %p5141_p5 = pnand %p6964_p3, %p6963_p13 }
 0x47c   : > { %p5142_p4 = pneg %p5141_p5 }
 0x47e   : > { %5651 = dma.done.wait (%p5142_p4), %s3995_s5, 4096  }
 0x47f   : > { %5653 = vsyncadd (%p5142_p4), %s3995_s5, 4294963200  ;;  %s30_s14 = sadd.s32 1, %s5676_s14   ;;  %s6965_s9 = sld [smem:[#allocation21_spill]] }
 0x480   : > { %p27_p1 = scmp.ge.s32.totalorder %s30_s14, 4   ;;  %s6966_s11 = sld [smem:[#allocation27_spill]] }
 0x481   : > { %s6967_s12 = sld [smem:[#allocation23_spill]]  ;;  %s6969_s30 = smov %s5660_s10 }
 0x482   : > { %s6968_s13 = sld [smem:[#allocation26_spill]]  ;;  %29 = sbr.rel (!%p27_p1) target bundleno = 16 (0x10), region = 142 }
 0x485   : > { %s6970_s10 = smov %s6965_s9 }
 0x487   :  { %4000 = vsyncpa [#allocation4], 1 }
 0x488   :  { %4002 = vsyncpa [#allocation4 + $0x1], 1 }
 0x489   :  { %4003 = vsyncpa [#allocation7], 1 }
 0x48a   :  { %4005 = vsyncpa [#allocation7 + $0x1], 1 }
 0x48b   :  { %4006 = vsyncpa [#allocation10], 1 }
 0x48c   :  { %4007 = vsyncpa [#allocation13], 1 }
 0x48d   :  { %4008 = vsyncpa [#allocation5], 1 }
 0x48e   :  { %4010 = vsyncpa [#allocation5 + $0x1], 1 }

</bundles_post_ra>
